<compile_context>
chip_gen: v5e
topology: v5e:2x2
jax: 0.10.0
libtpu: 0.0.40
codegen_flags: <defaults>
</compile_context>

<pallas_src>
import numpy as np
import jax
import jax.numpy as jnp
from jax import lax
from jax.experimental import pallas as pl
from jax.experimental.pallas import tpu as pltpu

_F32 = jnp.float32


# ------------------------------ Pallas kernel ------------------------------ #

def _cnn_ri_kernel(p1_ref, w1_ref, w2_ref, b2_ref, sel_ref,
                   w3_ref, b3_ref, w4_ref, b4_ref, o_ref, a1_ref):
    n = sel_ref.shape[1]                     # B * 120 rows of padded conv2 grid

    # ---- conv1 (+bias via ones column) : one matmul over all 4 pool offsets
    h = jnp.dot(p1_ref[...], w1_ref[...],
                preferred_element_type=jnp.float32)          # [4n, 128]
    h = jnp.maximum(jnp.maximum(h[0:n], h[n:2 * n]),
                    jnp.maximum(h[2 * n:3 * n], h[3 * n:4 * n]))   # 2x2 maxpool
    h = jnp.maximum(h, 0.0)                  # relu (zero border rows stay zero)

    # ---- stage pooled conv1 output into zero-extended buffer for row shifts
    a1_ref[...] = jnp.zeros_like(a1_ref)
    a1_ref[pl.ds(16, n), :] = h

    # ---- conv2: 9 row-shifted views, lane-concat, single matmul
    parts = [a1_ref[pl.ds(16 + (dy - 1) * 12 + (dx - 1), n), :]
             for dy in range(3) for dx in range(3)]
    z = jnp.dot(jnp.concatenate(parts, axis=1), w2_ref[...],
                preferred_element_type=jnp.float32)          # [n, 128]

    # ---- 2x2 maxpool of conv2 via 0/1 row-selection matmul, then bias+relu
    s = jnp.dot(sel_ref[...], z, preferred_element_type=jnp.float32)  # [640,128]
    p = jnp.maximum(jnp.maximum(s[0:160], s[160:320]),
                    jnp.maximum(s[320:480], s[480:640]))     # [160, 128]
    p = jnp.maximum(p + b2_ref[...], 0.0)

    # ---- flatten (spatial-major, batch padded to 8 rows) + fc1 + relu
    flat = jnp.concatenate([p[r * 8:(r + 1) * 8, :] for r in range(20)],
                           axis=1)                           # [8, 2560]
    h1 = jnp.dot(flat, w3_ref[...], preferred_element_type=jnp.float32)
    h1 = jnp.maximum(h1 + b3_ref[...], 0.0)                  # [8, 128]

    # ---- fc2 as a lane reduction, relu, sigmoid; lane-dense store
    y = jnp.sum(h1 * w4_ref[...], axis=-1, keepdims=True) + b4_ref[...]
    y = jnp.maximum(y, 0.0)
    y = 1.0 / (1.0 + jnp.exp(-y))            # input >= 0, no overflow possible
    o_ref[...] = jnp.broadcast_to(y, o_ref.shape)


# ------------------------------ wrapper prep ------------------------------- #

def _full_spec(shape):
    return pl.BlockSpec(shape, lambda i, _n=len(shape): (0,) * _n)


def _build_patches(x_nchw):
    """conv1 im2col, one block per 2x2 pool offset, laid out on the zero-padded
    10x12 conv2 grid.  Feature order (dy, dx, cin) + a ones column for bias."""
    B = x_nchw.shape[0]
    x = jnp.transpose(x_nchw, (0, 2, 3, 1)).astype(_F32)            # [B,16,20,11]
    xp = jnp.pad(x, ((0, 0), (1, 1), (1, 1), (0, 0)))               # [B,18,22,11]
    cols = [xp[:, dy:dy + 16, dx:dx + 20, :]
            for dy in range(3) for dx in range(3)]
    feat = jnp.concatenate(cols, axis=-1)                           # [B,16,20,99]
    blocks = []
    for a in range(2):
        for c in range(2):
            sub = feat[:, a::2, c::2, :]                            # [B,8,10,99]
            sub = jnp.concatenate(
                [sub, jnp.ones((B, 8, 10, 1), _F32)], axis=-1)      # bias col
            sub = jnp.pad(sub, ((0, 0), (1, 1), (1, 1), (0, 28)))   # [B,10,12,128]
            blocks.append(sub.reshape(B * 120, 128))
    return jnp.concatenate(blocks, axis=0)                          # [4*B*120,128]


def _build_pool_select(B):
    """0/1 matrix: rows (offset o, r=yo*5+xo, b padded to 8) pick the conv2
    output row at padded coords (2yo+a+1, 2xo+c+1) of image b."""
    sel = np.zeros((4 * 20 * 8, B * 120), np.float32)
    for o, (a, c) in enumerate(((0, 0), (0, 1), (1, 0), (1, 1))):
        for yo in range(4):
            for xo in range(5):
                r = yo * 5 + xo
                for b in range(B):
                    col = b * 120 + (2 * yo + a + 1) * 12 + (2 * xo + c + 1)
                    sel[o * 160 + r * 8 + b, col] = 1.0
    return jnp.asarray(sel)


def _prep_weights(p):
    # conv1 [32,11,3,3] -> rows (dy,dx,cin), +bias row -> [128,128]
    w1 = jnp.transpose(p["conv1_w"], (2, 3, 1, 0)).reshape(99, 32)
    w1 = jnp.concatenate([w1, p["conv1_b"].reshape(1, 32)], axis=0)
    w1p = jnp.zeros((128, 128), _F32).at[:100, :32].set(w1)
    # conv2 [16,32,3,3] -> 9 blocks [32,16] at 128-row strides -> [1152,128]
    w2 = jnp.transpose(p["conv2_w"], (2, 3, 1, 0)).reshape(9, 32, 16)
    w2p = jnp.zeros((9, 128, 128), _F32).at[:, :32, :16].set(w2).reshape(1152, 128)
    b2p = jnp.zeros((1, 128), _F32).at[0, :16].set(p["conv2_b"])
    # fc1: torch flat index = c*20 + r ; kernel flat index = r*128 + c
    w3 = jnp.transpose(p["fc1_w"].reshape(100, 16, 20), (2, 1, 0))   # [r,c,h]
    w3p = jnp.zeros((20, 128, 128), _F32).at[:, :16, :100].set(w3).reshape(2560, 128)
    b3p = jnp.zeros((1, 128), _F32).at[0, :100].set(p["fc1_b"])
    w4p = jnp.zeros((1, 128), _F32).at[0, :100].set(p["fc2_w"].reshape(100))
    b4p = p["fc2_b"].reshape(1, 1).astype(_F32)
    return w1p, w2p, b2p, w3p, b3p, w4p, b4p


@jax.jit
def cnn_ri_forward(x_nchw, params):
    B = x_nchw.shape[0]
    assert x_nchw.shape[1:] == (11, 16, 20), x_nchw.shape
    assert B <= 8, "fused kernel packs the batch into 8 sublane rows"
    # TODO(synk): for large batches, tile the row dimension with a real grid.
    n = B * 120
    patches = _build_patches(x_nchw)
    sel = _build_pool_select(B)
    w1p, w2p, b2p, w3p, b3p, w4p, b4p = _prep_weights(params)
    out = pl.pallas_call(
        _cnn_ri_kernel,
        out_shape=jax.ShapeDtypeStruct((8, 128), _F32),
        grid=(1,),
        in_specs=[_full_spec((4 * n, 128)),
                  _full_spec((128, 128)),
                  _full_spec((1152, 128)),
                  _full_spec((1, 128)),
                  _full_spec((640, n)),
                  _full_spec((2560, 128)),
                  _full_spec((1, 128)),
                  _full_spec((1, 128)),
                  _full_spec((1, 1))],
        out_specs=_full_spec((8, 128)),
        scratch_shapes=[pltpu.VMEM((n + 32, 128), _F32)],
        compiler_params=pltpu.CompilerParams(
            dimension_semantics=("arbitrary",),
            vmem_limit_bytes=32 * 1024 * 1024),
    )(patches, w1p, w2p, b2p, sel, w3p, b3p, w4p, b4p)
    return out[:B, :1]


# --------------------------- params & reference ---------------------------- #

def init_params(key):
    ks = jax.random.split(key, 8)

    def u(k, shape, fan_in):
        bound = 1.0 / float(np.sqrt(fan_in))
        return jax.random.uniform(k, shape, _F32, -bound, bound)

    return {
        "conv1_w": u(ks[0], (32, 11, 3, 3), 11 * 9),
        "conv1_b": u(ks[1], (32,), 11 * 9),
        "conv2_w": u(ks[2], (16, 32, 3, 3), 32 * 9),
        "conv2_b": u(ks[3], (16,), 32 * 9),
        "fc1_w": u(ks[4], (100, 320), 320),
        "fc1_b": u(ks[5], (100,), 320),
        "fc2_w": u(ks[6], (1, 100), 100),
        "fc2_b": u(ks[7], (1,), 100),
    }


def reference_forward(x_nchw, p):
    def conv(x, w, b):
        y = lax.conv_general_dilated(x, w, (1, 1), "SAME",
                                     dimension_numbers=("NCHW", "OIHW", "NCHW"))
        return y + b[None, :, None, None]

    def pool(x):
        return lax.reduce_window(x, -jnp.inf, lax.max,
                                 (1, 1, 2, 2), (1, 1, 2, 2), "VALID")

    x = pool(jax.nn.relu(conv(x_nchw, p["conv1_w"], p["conv1_b"])))
    x = pool(jax.nn.relu(conv(x, p["conv2_w"], p["conv2_b"])))
    x = x.reshape(x.shape[0], -1)
    x = jax.nn.relu(x @ p["fc1_w"].T + p["fc1_b"])
    x = jax.nn.relu(x @ p["fc2_w"].T + p["fc2_b"])
    return jax.nn.sigmoid(x)


if __name__ == "__main__":
    key = jax.random.PRNGKey(0)
    pkey, xkey = jax.random.split(key)
    params = init_params(pkey)
    # batch=2, channels=11, spatial=(16, 20) -> 16*(16/4)*(20/4) = 320 fc1 inputs
    x = jax.random.normal(xkey, (2, 11, 16, 20), _F32)

    out = jax.block_until_ready(cnn_ri_forward(x, params))
    ref = jax.block_until_ready(reference_forward(x, params))

    assert out.shape == (2, 1), out.shape
    np.testing.assert_allclose(np.asarray(out), np.asarray(ref),
                               rtol=2e-4, atol=2e-5)
    print("KERNEL_OK")
</pallas_src>

<mosaic_0001>
module attributes {stable_mosaic.version = 11 : i64} {
  func.func @_cnn_ri_kernel(%arg0: i32, %arg1: memref<960x128xf32, #tpu.memory_space<vmem>>, %arg2: memref<128x128xf32, #tpu.memory_space<vmem>>, %arg3: memref<1152x128xf32, #tpu.memory_space<vmem>>, %arg4: memref<1x128xf32, #tpu.memory_space<vmem>>, %arg5: memref<640x240xf32, #tpu.memory_space<vmem>>, %arg6: memref<2560x128xf32, #tpu.memory_space<vmem>>, %arg7: memref<1x128xf32, #tpu.memory_space<vmem>>, %arg8: memref<1x128xf32, #tpu.memory_space<vmem>>, %arg9: memref<1x1xf32, #tpu.memory_space<vmem>>, %arg10: memref<8x128xf32, #tpu.memory_space<vmem>>, %arg11: memref<272x128xf32, #tpu.memory_space<vmem>>) attributes {dimension_semantics = [#tpu.dimension_semantics<arbitrary>], iteration_bounds = array<i64: 1>, scalar_prefetch = 0 : i64, scratch_operands = 1 : i64, tpu.core_type = #tpu.core_type<tc>, window_params = [{pipeline_mode = #tpu.pipeline_mode<synchronous>, transform_indices = @transform_0, window_bounds = array<i64: 960, 128>}, {pipeline_mode = #tpu.pipeline_mode<synchronous>, transform_indices = @transform_1, window_bounds = array<i64: 128, 128>}, {pipeline_mode = #tpu.pipeline_mode<synchronous>, transform_indices = @transform_2, window_bounds = array<i64: 1152, 128>}, {pipeline_mode = #tpu.pipeline_mode<synchronous>, transform_indices = @transform_3, window_bounds = array<i64: 1, 128>}, {pipeline_mode = #tpu.pipeline_mode<synchronous>, transform_indices = @transform_4, window_bounds = array<i64: 640, 240>}, {pipeline_mode = #tpu.pipeline_mode<synchronous>, transform_indices = @transform_5, window_bounds = array<i64: 2560, 128>}, {pipeline_mode = #tpu.pipeline_mode<synchronous>, transform_indices = @transform_6, window_bounds = array<i64: 1, 128>}, {pipeline_mode = #tpu.pipeline_mode<synchronous>, transform_indices = @transform_7, window_bounds = array<i64: 1, 128>}, {pipeline_mode = #tpu.pipeline_mode<synchronous>, transform_indices = @transform_8, window_bounds = array<i64: 1, 1>}, {pipeline_mode = #tpu.pipeline_mode<synchronous>, transform_indices = @transform_9, window_bounds = array<i64: 8, 128>}]} {
    %c0 = arith.constant 0 : index
    %c0_0 = arith.constant 0 : index
    %0 = vector.load %arg1[%c0, %c0_0] : memref<960x128xf32, #tpu.memory_space<vmem>>, vector<960x128xf32>
    %c0_1 = arith.constant 0 : index
    %c0_2 = arith.constant 0 : index
    %1 = vector.load %arg2[%c0_1, %c0_2] : memref<128x128xf32, #tpu.memory_space<vmem>>, vector<128x128xf32>
    %cst = arith.constant dense<0.000000e+00> : vector<960x128xf32>
    %2 = tpu.matmul %0, %1, %cst {dimension_numbers = #tpu.dot_dimension_numbers<[1], [0], [0], [1], [0, 0, 1, 1], [], []>} : vector<960x128xf32>, vector<128x128xf32>, vector<960x128xf32> -> vector<960x128xf32>
    %3 = vector.extract_strided_slice %2 {offsets = [0, 0], sizes = [240, 128], strides = [1, 1]} : vector<960x128xf32> to vector<240x128xf32>
    %4 = vector.extract_strided_slice %2 {offsets = [240, 0], sizes = [240, 128], strides = [1, 1]} : vector<960x128xf32> to vector<240x128xf32>
    %5 = arith.maximumf %3, %4 : vector<240x128xf32>
    %6 = vector.extract_strided_slice %2 {offsets = [480, 0], sizes = [240, 128], strides = [1, 1]} : vector<960x128xf32> to vector<240x128xf32>
    %7 = vector.extract_strided_slice %2 {offsets = [720, 0], sizes = [240, 128], strides = [1, 1]} : vector<960x128xf32> to vector<240x128xf32>
    %8 = arith.maximumf %6, %7 : vector<240x128xf32>
    %9 = arith.maximumf %5, %8 : vector<240x128xf32>
    %cst_3 = arith.constant 0.000000e+00 : f32
    %10 = vector.broadcast %cst_3 : f32 to vector<240x128xf32>
    %11 = arith.maximumf %9, %10 : vector<240x128xf32>
    %cst_4 = arith.constant 0.000000e+00 : f32
    %12 = vector.broadcast %cst_4 : f32 to vector<272x128xf32>
    %c0_5 = arith.constant 0 : index
    %c0_6 = arith.constant 0 : index
    %13 = vector.load %arg11[%c0_5, %c0_6] : memref<272x128xf32, #tpu.memory_space<vmem>>, vector<272x128xf32>
    tpu.vector_store %arg11[%c0_5, %c0_6], %12 {strides = array<i32>} : memref<272x128xf32, #tpu.memory_space<vmem>>, vector<272x128xf32>,
    %c16 = arith.constant 16 : index
    %c0_7 = arith.constant 0 : index
    %14 = vector.load %arg11[%c16, %c0_7] : memref<272x128xf32, #tpu.memory_space<vmem>>, vector<240x128xf32>
    tpu.vector_store %arg11[%c16, %c0_7], %11 {strides = array<i32>} : memref<272x128xf32, #tpu.memory_space<vmem>>, vector<240x128xf32>,
    %c3 = arith.constant 3 : index
    %c0_8 = arith.constant 0 : index
    %15 = vector.load %arg11[%c3, %c0_8] : memref<272x128xf32, #tpu.memory_space<vmem>>, vector<240x128xf32>
    %c4 = arith.constant 4 : index
    %c0_9 = arith.constant 0 : index
    %16 = vector.load %arg11[%c4, %c0_9] : memref<272x128xf32, #tpu.memory_space<vmem>>, vector<240x128xf32>
    %c5 = arith.constant 5 : index
    %c0_10 = arith.constant 0 : index
    %17 = vector.load %arg11[%c5, %c0_10] : memref<272x128xf32, #tpu.memory_space<vmem>>, vector<240x128xf32>
    %c15 = arith.constant 15 : index
    %c0_11 = arith.constant 0 : index
    %18 = vector.load %arg11[%c15, %c0_11] : memref<272x128xf32, #tpu.memory_space<vmem>>, vector<240x128xf32>
    %c16_12 = arith.constant 16 : index
    %c0_13 = arith.constant 0 : index
    %19 = vector.load %arg11[%c16_12, %c0_13] : memref<272x128xf32, #tpu.memory_space<vmem>>, vector<240x128xf32>
    %c17 = arith.constant 17 : index
    %c0_14 = arith.constant 0 : index
    %20 = vector.load %arg11[%c17, %c0_14] : memref<272x128xf32, #tpu.memory_space<vmem>>, vector<240x128xf32>
    %c27 = arith.constant 27 : index
    %c0_15 = arith.constant 0 : index
    %21 = vector.load %arg11[%c27, %c0_15] : memref<272x128xf32, #tpu.memory_space<vmem>>, vector<240x128xf32>
    %c28 = arith.constant 28 : index
    %c0_16 = arith.constant 0 : index
    %22 = vector.load %arg11[%c28, %c0_16] : memref<272x128xf32, #tpu.memory_space<vmem>>, vector<240x128xf32>
    %c29 = arith.constant 29 : index
    %c0_17 = arith.constant 0 : index
    %23 = vector.load %arg11[%c29, %c0_17] : memref<272x128xf32, #tpu.memory_space<vmem>>, vector<240x128xf32>
    %24 = tpu.concatenate %15, %16, %17, %18, %19, %20, %21, %22, %23 in 1 : vector<240x128xf32>, vector<240x128xf32>, vector<240x128xf32>, vector<240x128xf32>, vector<240x128xf32>, vector<240x128xf32>, vector<240x128xf32>, vector<240x128xf32>, vector<240x128xf32> -> vector<240x1152xf32>
    %c0_18 = arith.constant 0 : index
    %c0_19 = arith.constant 0 : index
    %25 = vector.load %arg3[%c0_18, %c0_19] : memref<1152x128xf32, #tpu.memory_space<vmem>>, vector<1152x128xf32>
    %cst_20 = arith.constant dense<0.000000e+00> : vector<240x128xf32>
    %26 = tpu.matmul %24, %25, %cst_20 {dimension_numbers = #tpu.dot_dimension_numbers<[1], [0], [0], [1], [0, 0, 1, 1], [], []>} : vector<240x1152xf32>, vector<1152x128xf32>, vector<240x128xf32> -> vector<240x128xf32>
    %c0_21 = arith.constant 0 : index
    %c0_22 = arith.constant 0 : index
    %27 = vector.load %arg5[%c0_21, %c0_22] : memref<640x240xf32, #tpu.memory_space<vmem>>, vector<640x240xf32>
    %cst_23 = arith.constant dense<0.000000e+00> : vector<640x128xf32>
    %28 = tpu.matmul %27, %26, %cst_23 {dimension_numbers = #tpu.dot_dimension_numbers<[1], [0], [0], [1], [0, 0, 1, 1], [], []>} : vector<640x240xf32>, vector<240x128xf32>, vector<640x128xf32> -> vector<640x128xf32>
    %29 = vector.extract_strided_slice %28 {offsets = [0, 0], sizes = [160, 128], strides = [1, 1]} : vector<640x128xf32> to vector<160x128xf32>
    %30 = vector.extract_strided_slice %28 {offsets = [160, 0], sizes = [160, 128], strides = [1, 1]} : vector<640x128xf32> to vector<160x128xf32>
    %31 = arith.maximumf %29, %30 : vector<160x128xf32>
    %32 = vector.extract_strided_slice %28 {offsets = [320, 0], sizes = [160, 128], strides = [1, 1]} : vector<640x128xf32> to vector<160x128xf32>
    %33 = vector.extract_strided_slice %28 {offsets = [480, 0], sizes = [160, 128], strides = [1, 1]} : vector<640x128xf32> to vector<160x128xf32>
    %34 = arith.maximumf %32, %33 : vector<160x128xf32>
    %35 = arith.maximumf %31, %34 : vector<160x128xf32>
    %c0_24 = arith.constant 0 : index
    %c0_25 = arith.constant 0 : index
    %36 = vector.load %arg4[%c0_24, %c0_25] : memref<1x128xf32, #tpu.memory_space<vmem>>, vector<1x128xf32>
    %37 = vector.broadcast %36 : vector<1x128xf32> to vector<160x128xf32>
    %38 = arith.addf %35, %37 : vector<160x128xf32>
    %cst_26 = arith.constant 0.000000e+00 : f32
    %39 = vector.broadcast %cst_26 : f32 to vector<160x128xf32>
    %40 = arith.maximumf %38, %39 : vector<160x128xf32>
    %41 = vector.extract_strided_slice %40 {offsets = [0, 0], sizes = [8, 128], strides = [1, 1]} : vector<160x128xf32> to vector<8x128xf32>
    %42 = vector.extract_strided_slice %40 {offsets = [8, 0], sizes = [8, 128], strides = [1, 1]} : vector<160x128xf32> to vector<8x128xf32>
    %43 = vector.extract_strided_slice %40 {offsets = [16, 0], sizes = [8, 128], strides = [1, 1]} : vector<160x128xf32> to vector<8x128xf32>
    %44 = vector.extract_strided_slice %40 {offsets = [24, 0], sizes = [8, 128], strides = [1, 1]} : vector<160x128xf32> to vector<8x128xf32>
    %45 = vector.extract_strided_slice %40 {offsets = [32, 0], sizes = [8, 128], strides = [1, 1]} : vector<160x128xf32> to vector<8x128xf32>
    %46 = vector.extract_strided_slice %40 {offsets = [40, 0], sizes = [8, 128], strides = [1, 1]} : vector<160x128xf32> to vector<8x128xf32>
    %47 = vector.extract_strided_slice %40 {offsets = [48, 0], sizes = [8, 128], strides = [1, 1]} : vector<160x128xf32> to vector<8x128xf32>
    %48 = vector.extract_strided_slice %40 {offsets = [56, 0], sizes = [8, 128], strides = [1, 1]} : vector<160x128xf32> to vector<8x128xf32>
    %49 = vector.extract_strided_slice %40 {offsets = [64, 0], sizes = [8, 128], strides = [1, 1]} : vector<160x128xf32> to vector<8x128xf32>
    %50 = vector.extract_strided_slice %40 {offsets = [72, 0], sizes = [8, 128], strides = [1, 1]} : vector<160x128xf32> to vector<8x128xf32>
    %51 = vector.extract_strided_slice %40 {offsets = [80, 0], sizes = [8, 128], strides = [1, 1]} : vector<160x128xf32> to vector<8x128xf32>
    %52 = vector.extract_strided_slice %40 {offsets = [88, 0], sizes = [8, 128], strides = [1, 1]} : vector<160x128xf32> to vector<8x128xf32>
    %53 = vector.extract_strided_slice %40 {offsets = [96, 0], sizes = [8, 128], strides = [1, 1]} : vector<160x128xf32> to vector<8x128xf32>
    %54 = vector.extract_strided_slice %40 {offsets = [104, 0], sizes = [8, 128], strides = [1, 1]} : vector<160x128xf32> to vector<8x128xf32>
    %55 = vector.extract_strided_slice %40 {offsets = [112, 0], sizes = [8, 128], strides = [1, 1]} : vector<160x128xf32> to vector<8x128xf32>
    %56 = vector.extract_strided_slice %40 {offsets = [120, 0], sizes = [8, 128], strides = [1, 1]} : vector<160x128xf32> to vector<8x128xf32>
    %57 = vector.extract_strided_slice %40 {offsets = [128, 0], sizes = [8, 128], strides = [1, 1]} : vector<160x128xf32> to vector<8x128xf32>
    %58 = vector.extract_strided_slice %40 {offsets = [136, 0], sizes = [8, 128], strides = [1, 1]} : vector<160x128xf32> to vector<8x128xf32>
    %59 = vector.extract_strided_slice %40 {offsets = [144, 0], sizes = [8, 128], strides = [1, 1]} : vector<160x128xf32> to vector<8x128xf32>
    %60 = vector.extract_strided_slice %40 {offsets = [152, 0], sizes = [8, 128], strides = [1, 1]} : vector<160x128xf32> to vector<8x128xf32>
    %61 = tpu.concatenate %41, %42, %43, %44, %45, %46, %47, %48, %49, %50, %51, %52, %53, %54, %55, %56 in 1 : vector<8x128xf32>, vector<8x128xf32>, vector<8x128xf32>, vector<8x128xf32>, vector<8x128xf32>, vector<8x128xf32>, vector<8x128xf32>, vector<8x128xf32>, vector<8x128xf32>, vector<8x128xf32>, vector<8x128xf32>, vector<8x128xf32>, vector<8x128xf32>, vector<8x128xf32>, vector<8x128xf32>, vector<8x128xf32> -> vector<8x2048xf32>
    %62 = tpu.concatenate %57, %58, %59, %60 in 1 : vector<8x128xf32>, vector<8x128xf32>, vector<8x128xf32>, vector<8x128xf32> -> vector<8x512xf32>
    %63 = tpu.concatenate %61, %62 in 1 : vector<8x2048xf32>, vector<8x512xf32> -> vector<8x2560xf32>
    %c0_27 = arith.constant 0 : index
    %c0_28 = arith.constant 0 : index
    %64 = vector.load %arg6[%c0_27, %c0_28] : memref<2560x128xf32, #tpu.memory_space<vmem>>, vector<2560x128xf32>
    %cst_29 = arith.constant dense<0.000000e+00> : vector<8x128xf32>
    %65 = tpu.matmul %63, %64, %cst_29 {dimension_numbers = #tpu.dot_dimension_numbers<[1], [0], [0], [1], [0, 0, 1, 1], [], []>} : vector<8x2560xf32>, vector<2560x128xf32>, vector<8x128xf32> -> vector<8x128xf32>
    %c0_30 = arith.constant 0 : index
    %c0_31 = arith.constant 0 : index
    %66 = vector.load %arg7[%c0_30, %c0_31] : memref<1x128xf32, #tpu.memory_space<vmem>>, vector<1x128xf32>
    %67 = vector.broadcast %66 : vector<1x128xf32> to vector<8x128xf32>
    %68 = arith.addf %65, %67 : vector<8x128xf32>
    %cst_32 = arith.constant 0.000000e+00 : f32
    %69 = vector.broadcast %cst_32 : f32 to vector<8x128xf32>
    %70 = arith.maximumf %68, %69 : vector<8x128xf32>
    %c0_33 = arith.constant 0 : index
    %c0_34 = arith.constant 0 : index
    %71 = vector.load %arg8[%c0_33, %c0_34] : memref<1x128xf32, #tpu.memory_space<vmem>>, vector<1x128xf32>
    %72 = vector.broadcast %71 : vector<1x128xf32> to vector<8x128xf32>
    %73 = arith.mulf %70, %72 : vector<8x128xf32>
    %cst_35 = arith.constant dense<0.000000e+00> : vector<8xf32>
    %74 = vector.multi_reduction <add>, %73, %cst_35 [1] : vector<8x128xf32> to vector<8xf32>
    %75 = vector.shape_cast %74 : vector<8xf32> to vector<8x1xf32>
    %c0_36 = arith.constant 0 : index
    %c0_37 = arith.constant 0 : index
    %76 = vector.load %arg9[%c0_36, %c0_37] : memref<1x1xf32, #tpu.memory_space<vmem>>, vector<1x1xf32>
    %77 = vector.broadcast %76 : vector<1x1xf32> to vector<8x1xf32>
    %78 = arith.addf %75, %77 : vector<8x1xf32>
    %cst_38 = arith.constant 0.000000e+00 : f32
    %79 = vector.broadcast %cst_38 : f32 to vector<8x1xf32>
    %80 = arith.maximumf %78, %79 : vector<8x1xf32>
    %cst_39 = arith.constant 0.000000e+00 : f32
    %81 = vector.broadcast %cst_39 : f32 to vector<8x1xf32>
    %82 = arith.subf %81, %80 : vector<8x1xf32>
    %83 = math.exp %82 : vector<8x1xf32>
    %cst_40 = arith.constant 1.000000e+00 : f32
    %84 = vector.broadcast %cst_40 : f32 to vector<8x1xf32>
    %85 = arith.addf %84, %83 : vector<8x1xf32>
    %cst_41 = arith.constant 1.000000e+00 : f32
    %86 = vector.broadcast %cst_41 : f32 to vector<8x1xf32>
    %87 = arith.divf %86, %85 : vector<8x1xf32>
    %88 = vector.shape_cast %87 : vector<8x1xf32> to vector<8x1xf32>
    %89 = vector.broadcast %88 : vector<8x1xf32> to vector<8x128xf32>
    %c0_42 = arith.constant 0 : index
    %c0_43 = arith.constant 0 : index
    %90 = vector.load %arg10[%c0_42, %c0_43] : memref<8x128xf32, #tpu.memory_space<vmem>>, vector<8x128xf32>
    tpu.vector_store %arg10[%c0_42, %c0_43], %89 {strides = array<i32>} : memref<8x128xf32, #tpu.memory_space<vmem>>, vector<8x128xf32>,
    return
  }
  func.func @transform_0(%arg0: i32) -> (i32, i32) {
    %c0_i32 = arith.constant 0 : i32
    %c0_i32_0 = arith.constant 0 : i32
    %c0_i32_1 = arith.constant 0 : i32
    return %c0_i32, %c0_i32_0 : i32, i32
  }
  func.func @transform_1(%arg0: i32) -> (i32, i32) {
    %c0_i32 = arith.constant 0 : i32
    %c0_i32_0 = arith.constant 0 : i32
    %c0_i32_1 = arith.constant 0 : i32
    return %c0_i32, %c0_i32_0 : i32, i32
  }
  func.func @transform_2(%arg0: i32) -> (i32, i32) {
    %c0_i32 = arith.constant 0 : i32
    %c0_i32_0 = arith.constant 0 : i32
    %c0_i32_1 = arith.constant 0 : i32
    return %c0_i32, %c0_i32_0 : i32, i32
  }
  func.func @transform_3(%arg0: i32) -> (i32, i32) {
    %c0_i32 = arith.constant 0 : i32
    %c0_i32_0 = arith.constant 0 : i32
    %c0_i32_1 = arith.constant 0 : i32
    return %c0_i32, %c0_i32_0 : i32, i32
  }
  func.func @transform_4(%arg0: i32) -> (i32, i32) {
    %c0_i32 = arith.constant 0 : i32
    %c0_i32_0 = arith.constant 0 : i32
    %c0_i32_1 = arith.constant 0 : i32
    return %c0_i32, %c0_i32_0 : i32, i32
  }
  func.func @transform_5(%arg0: i32) -> (i32, i32) {
    %c0_i32 = arith.constant 0 : i32
    %c0_i32_0 = arith.constant 0 : i32
    %c0_i32_1 = arith.constant 0 : i32
    return %c0_i32, %c0_i32_0 : i32, i32
  }
  func.func @transform_6(%arg0: i32) -> (i32, i32) {
    %c0_i32 = arith.constant 0 : i32
    %c0_i32_0 = arith.constant 0 : i32
    %c0_i32_1 = arith.constant 0 : i32
    return %c0_i32, %c0_i32_0 : i32, i32
  }
  func.func @transform_7(%arg0: i32) -> (i32, i32) {
    %c0_i32 = arith.constant 0 : i32
    %c0_i32_0 = arith.constant 0 : i32
    %c0_i32_1 = arith.constant 0 : i32
    return %c0_i32, %c0_i32_0 : i32, i32
  }
  func.func @transform_8(%arg0: i32) -> (i32, i32) {
    %c0_i32 = arith.constant 0 : i32
    %c0_i32_0 = arith.constant 0 : i32
    %c0_i32_1 = arith.constant 0 : i32
    return %c0_i32, %c0_i32_0 : i32, i32
  }
  func.func @transform_9(%arg0: i32) -> (i32, i32) {
    %c0_i32 = arith.constant 0 : i32
    %c0_i32_0 = arith.constant 0 : i32
    %c0_i32_1 = arith.constant 0 : i32
    return %c0_i32, %c0_i32_0 : i32, i32
  }
}

</mosaic_0001>

<bundles_post_ra>
// kernel: cnn_ri_forward.1
= control target key start
LH: loop header
LB: loop body
LE: loop exit
PB: predicated region body
PF: predicated region fallthrough
CT: control target
= control target key end

     0   :  { %vm2187_vm0 = vcmask 916480   ;;  %s7738_s1 = inlined_call_operand.vmem [shape: f32[128,128], index: 1, kind: input, shape index: {}]   ;;  %s7739_s0 = inlined_call_operand.vmem [shape: f32[960,128], index: 0, kind: input, shape index: {}]   ;;  %s7740_s2 = inlined_call_operand.vmem [shape: f32[1152,128], index: 2, kind: input, shape index: {}]   ;;  %s7741_s4 = inlined_call_operand.vmem [shape: f32[640,240], index: 4, kind: input, shape index: {}]   ;;  %s7742_s3 = inlined_call_operand.vmem [shape: f32[1,128], index: 3, kind: input, shape index: {}]   ;;  %s7743_s5 = inlined_call_operand.vmem [shape: f32[2560,128], index: 5, kind: input, shape index: {}]   ;;  %s7744_s6 = inlined_call_operand.vmem [shape: f32[1,128], index: 6, kind: input, shape index: {}]   ;;  %s7745_s7 = inlined_call_operand.vmem [shape: f32[1,128], index: 7, kind: input, shape index: {}]   ;;  %s7746_s8 = inlined_call_operand.<no memory space> [shape: f32[1,1], index: 8, kind: input, shape index: {}]   ;;  %s7747_s9 = inlined_call_operand.vmem [shape: f32[8,128], index: 9, kind: output, shape index: {}]  }
   0x1   :  { %v169_v0 = vld [vmem:[%s7738_s1 + $0x78] sm:$0xff]  ;;  %v168_v1 = vld [vmem:[%s7738_s1 + $0x70] sm:$0xff]  ;;  %v167_v2 = vld [vmem:[%s7738_s1 + $0x68] sm:$0xff] }
   0x2   :  { %170 = vmatpush.msra.mxu0 %v169_v0  ;;  %v166_v3 = vld [vmem:[%s7738_s1 + $0x60] sm:$0xff]  ;;  %v165_v4 = vld [vmem:[%s7738_s1 + $0x58] sm:$0xff]  ;;  %v164_v5 = vld [vmem:[%s7738_s1 + $0x50] sm:$0xff] }
   0x3   :  { %v163_v6 = vld [vmem:[%s7738_s1 + $0x48] sm:$0xff]  ;;  %v162_v7 = vld [vmem:[%s7738_s1 + $0x40] sm:$0xff]  ;;  %v161_v8 = vld [vmem:[%s7738_s1 + $0x38] sm:$0xff] }
   0x4   :  { %171 = vmatpush.msra.mxu0 %v168_v1  ;;  %v160_v9 = vld [vmem:[%s7738_s1 + $0x30] sm:$0xff]  ;;  %v159_v10 = vld [vmem:[%s7738_s1 + $0x28] sm:$0xff]  ;;  %v158_v11 = vld [vmem:[%s7738_s1 + $0x20] sm:$0xff] }
   0x5   :  { %v157_v12 = vld [vmem:[%s7738_s1 + $0x18] sm:$0xff]  ;;  %v156_v13 = vld [vmem:[%s7738_s1 + $0x10] sm:$0xff]  ;;  %v155_v14 = vld [vmem:[%s7738_s1 + $0x8] sm:$0xff] }
   0x6   :  { %172 = vmatpush.msra.mxu0 %v167_v2  ;;  %v154_v15 = vld [vmem:[%s7738_s1] sm:$0xff]  ;;  %v35_v17 = vld [vmem:[%s7739_s0 + $0x8] sm:$0xff]  ;;  %v36_v18 = vld [vmem:[%s7739_s0 + $0x10] sm:$0xff] }
   0x7   :  { %v34_v16 = vld [vmem:[%s7739_s0] sm:$0xff]  ;;  %v37_v19 = vld [vmem:[%s7739_s0 + $0x18] sm:$0xff]  ;;  %v39_v21 = vld [vmem:[%s7739_s0 + $0x28] sm:$0xff] }
   0x8   :  { %173 = vmatpush.msra.mxu0 %v166_v3  ;;  %v38_v20 = vld [vmem:[%s7739_s0 + $0x20] sm:$0xff]  ;;  %v40_v22 = vld [vmem:[%s7739_s0 + $0x30] sm:$0xff]  ;;  %v41_v23 = vld [vmem:[%s7739_s0 + $0x38] sm:$0xff] }
   0x9   :  { %v42_v24 = vld [vmem:[%s7739_s0 + $0x40] sm:$0xff]  ;;  %v43_v25 = vld [vmem:[%s7739_s0 + $0x48] sm:$0xff]  ;;  %v44_v26 = vld [vmem:[%s7739_s0 + $0x50] sm:$0xff] }
   0xa   :  { %174 = vmatpush.msra.mxu0 %v165_v4  ;;  %v45_v27 = vld [vmem:[%s7739_s0 + $0x58] sm:$0xff]  ;;  %v46_v28 = vld [vmem:[%s7739_s0 + $0x60] sm:$0xff]  ;;  %v47_v29 = vld [vmem:[%s7739_s0 + $0x68] sm:$0xff] }
   0xb   :  { %v48_v30 = vld [vmem:[%s7739_s0 + $0x70] sm:$0xff]  ;;  %v49_v31 = vld [vmem:[%s7739_s0 + $0x78] sm:$0xff]  ;;  %v50_v33 = vld [vmem:[%s7739_s0 + $0x80] sm:$0xff] }
   0xc   :  { %175 = vmatpush.msra.mxu0 %v164_v5  ;;  %v51_v35 = vld [vmem:[%s7739_s0 + $0x88] sm:$0xff]  ;;  %v52_v37 = vld [vmem:[%s7739_s0 + $0x90] sm:$0xff]  ;;  %v53_v39 = vld [vmem:[%s7739_s0 + $0x98] sm:$0xff] }
   0xd   :  { %v54_v41 = vld [vmem:[%s7739_s0 + $0xa0] sm:$0xff]  ;;  %v55_v43 = vld [vmem:[%s7739_s0 + $0xa8] sm:$0xff]  ;;  %v56_v45 = vld [vmem:[%s7739_s0 + $0xb0] sm:$0xff] }
   0xe   :  { %176 = vmatpush.msra.mxu0 %v163_v6  ;;  %v57_v47 = vld [vmem:[%s7739_s0 + $0xb8] sm:$0xff]  ;;  %v58_v49 = vld [vmem:[%s7739_s0 + $0xc0] sm:$0xff]  ;;  %v59_v51 = vld [vmem:[%s7739_s0 + $0xc8] sm:$0xff] }
   0xf   :  { %v60_v53 = vld [vmem:[%s7739_s0 + $0xd0] sm:$0xff]  ;;  %v61_v55 = vld [vmem:[%s7739_s0 + $0xd8] sm:$0xff]  ;;  %v62_v57 = vld [vmem:[%s7739_s0 + $0xe0] sm:$0xff] }
  0x10   :  { %177 = vmatpush.msra.mxu0 %v162_v7  ;;  %v63_v59 = vld [vmem:[%s7739_s0 + $0xe8] sm:$0xff]  ;;  %v64_v61 = vld [vmem:[%s7739_s0 + $0xf0] sm:$0xff]  ;;  %v65_v63 = vld [vmem:[%s7739_s0 + $0xf8] sm:$0xff] }
  0x11   :  { %v66_v1 = vld [vmem:[%s7739_s0 + $0x100] sm:$0xff]  ;;  %v67_v3 = vld [vmem:[%s7739_s0 + $0x108] sm:$0xff]  ;;  %v68_v5 = vld [vmem:[%s7739_s0 + $0x110] sm:$0xff] }
  0x12   :  { %178 = vmatpush.msra.mxu0 %v161_v8  ;;  %v69_v7 = vld [vmem:[%s7739_s0 + $0x118] sm:$0xff] }
  0x14   :  { %179 = vmatpush.msra.mxu0 %v160_v9  ;;  %v70_v9 = vld [vmem:[%s7739_s0 + $0x120] sm:$0xff] }
  0x16   :  { %180 = vmatpush.msra.mxu0 %v159_v10 }
  0x18   :  { %181 = vmatpush.msra.mxu0 %v158_v11  ;;  %v71_v11 = vld [vmem:[%s7739_s0 + $0x128] sm:$0xff] }
  0x1a   :  { %182 = vmatpush.msra.mxu0 %v157_v12 }
  0x1c   :  { %183 = vmatpush.msra.mxu0 %v156_v13  ;;  %v72_v13 = vld [vmem:[%s7739_s0 + $0x130] sm:$0xff] }
  0x1e   :  { %184 = vmatpush.msra.mxu0 %v155_v14 }
  0x20   :  { %185 = vmatpush.msra.mxu0 %v154_v15  ;;  %v73_v15 = vld [vmem:[%s7739_s0 + $0x138] sm:$0xff] }
  0x21   :  { %186 = vmatmul.f32.vlgmr.msra.gmra.mxu0 %v34_v16 }
  0x29   :  { %189 = vmatmul.f32.gmra.mxu0 %v35_v17  ;;  %v74_v17 = vld [vmem:[%s7739_s0 + $0x140] sm:$0xff] }
  0x31   :  { %192 = vmatmul.f32.gmra.mxu0 %v36_v18 }
  0x39   :  { %195 = vmatmul.f32.gmra.mxu0 %v37_v19  ;;  %v75_v19 = vld [vmem:[%s7739_s0 + $0x148] sm:$0xff] }
  0x41   :  { %198 = vmatmul.f32.gmra.mxu0 %v38_v20 }
  0x49   :  { %201 = vmatmul.f32.gmra.mxu0 %v39_v21  ;;  %v76_v21 = vld [vmem:[%s7739_s0 + $0x150] sm:$0xff] }
  0x51   :  { %204 = vmatmul.f32.gmra.mxu0 %v40_v22 }
  0x59   :  { %207 = vmatmul.f32.gmra.mxu0 %v41_v23  ;;  %v77_v23 = vld [vmem:[%s7739_s0 + $0x158] sm:$0xff] }
  0x61   :  { %210 = vmatmul.f32.gmra.mxu0 %v42_v24 }
  0x69   :  { %213 = vmatmul.f32.gmra.mxu0 %v43_v25  ;;  %v78_v25 = vld [vmem:[%s7739_s0 + $0x160] sm:$0xff] }
  0x71   :  { %216 = vmatmul.f32.gmra.mxu0 %v44_v26 }
  0x79   :  { %219 = vmatmul.f32.gmra.mxu0 %v45_v27  ;;  %v79_v27 = vld [vmem:[%s7739_s0 + $0x168] sm:$0xff] }
  0x81   :  { %222 = vmatmul.f32.gmra.mxu0 %v46_v28 }
  0x89   :  { %225 = vmatmul.f32.gmra.mxu0 %v47_v29  ;;  %v80_v29 = vld [vmem:[%s7739_s0 + $0x170] sm:$0xff] }
  0x91   :  { %228 = vmatmul.f32.gmra.mxu0 %v48_v30 }
  0x99   :  { %231 = vmatmul.f32.gmra.mxu0 %v49_v31  ;;  %v81_v31 = vld [vmem:[%s7739_s0 + $0x178] sm:$0xff] }
  0x9e   :  { %v4159_v32 = vpop.f32.mrf.mxu0 }
  0xa1   :  { %234 = vmatmul.f32.gmra.mxu0 %v50_v33 }
  0xa6   :  { %v4164_v34 = vpop.f32.mrf.mxu0 }
  0xa9   :  { %237 = vmatmul.f32.gmra.mxu0 %v51_v35  ;;  %v82_v35 = vld [vmem:[%s7739_s0 + $0x180] sm:$0xff] }
  0xae   :  { %v4169_v36 = vpop.f32.mrf.mxu0 }
  0xb1   :  { %240 = vmatmul.f32.gmra.mxu0 %v52_v37 }
  0xb6   :  { %v4174_v38 = vpop.f32.mrf.mxu0 }
  0xb9   :  { %243 = vmatmul.f32.gmra.mxu0 %v53_v39  ;;  %v83_v39 = vld [vmem:[%s7739_s0 + $0x188] sm:$0xff] }
  0xbe   :  { %v4179_v40 = vpop.f32.mrf.mxu0 }
  0xc1   :  { %246 = vmatmul.f32.gmra.mxu0 %v54_v41 }
  0xc6   :  { %v4184_v42 = vpop.f32.mrf.mxu0 }
  0xc9   :  { %249 = vmatmul.f32.gmra.mxu0 %v55_v43  ;;  %v84_v43 = vld [vmem:[%s7739_s0 + $0x190] sm:$0xff] }
  0xce   :  { %v4189_v44 = vpop.f32.mrf.mxu0 }
  0xd1   :  { %252 = vmatmul.f32.gmra.mxu0 %v56_v45 }
  0xd6   :  { %v4194_v46 = vpop.f32.mrf.mxu0 }
  0xd9   :  { %255 = vmatmul.f32.gmra.mxu0 %v57_v47  ;;  %v85_v47 = vld [vmem:[%s7739_s0 + $0x198] sm:$0xff] }
  0xde   :  { %v4199_v48 = vpop.f32.mrf.mxu0 }
  0xe1   :  { %258 = vmatmul.f32.gmra.mxu0 %v58_v49 }
  0xe6   :  { %v4204_v50 = vpop.f32.mrf.mxu0 }
  0xe9   :  { %261 = vmatmul.f32.gmra.mxu0 %v59_v51  ;;  %v86_v51 = vld [vmem:[%s7739_s0 + $0x1a0] sm:$0xff] }
  0xee   :  { %v4209_v52 = vpop.f32.mrf.mxu0 }
  0xf1   :  { %264 = vmatmul.f32.gmra.mxu0 %v60_v53 }
  0xf6   :  { %v4214_v54 = vpop.f32.mrf.mxu0 }
  0xf9   :  { %267 = vmatmul.f32.gmra.mxu0 %v61_v55  ;;  %v87_v55 = vld [vmem:[%s7739_s0 + $0x1a8] sm:$0xff] }
  0xfe   :  { %v4219_v56 = vpop.f32.mrf.mxu0 }
 0x101   :  { %270 = vmatmul.f32.gmra.mxu0 %v62_v57 }
 0x106   :  { %v4224_v58 = vpop.f32.mrf.mxu0 }
 0x109   :  { %273 = vmatmul.f32.gmra.mxu0 %v63_v59  ;;  %v88_v59 = vld [vmem:[%s7739_s0 + $0x1b0] sm:$0xff] }
 0x10e   :  { %v4229_v60 = vpop.f32.mrf.mxu0 }
 0x111   :  { %276 = vmatmul.f32.gmra.mxu0 %v64_v61 }
 0x116   :  { %v4234_v62 = vpop.f32.mrf.mxu0 }
 0x119   :  { %279 = vmatmul.f32.gmra.mxu0 %v65_v63  ;;  %v89_v63 = vld [vmem:[%s7739_s0 + $0x1b8] sm:$0xff] }
 0x11e   :  { %v4239_v0 = vpop.f32.mrf.mxu0 }
 0x121   :  { %282 = vmatmul.f32.gmra.mxu0 %v66_v1 }
 0x126   :  { %v4244_v2 = vpop.f32.mrf.mxu0 }
 0x129   :  { %285 = vmatmul.f32.gmra.mxu0 %v67_v3  ;;  %v90_v3 = vld [vmem:[%s7739_s0 + $0x1c0] sm:$0xff] }
 0x12e   :  { %v4249_v4 = vpop.f32.mrf.mxu0 }
 0x12f   :  { %7763 = vst [vmem:[#allocation4_spill] sm:$0xff] %v4249_v4 }
 0x131   :  { %288 = vmatmul.f32.gmra.mxu0 %v68_v5 }
 0x136   :  { %v4254_v6 = vpop.f32.mrf.mxu0 }
 0x137   :  { %7764 = vst [vmem:[#allocation5_spill] sm:$0xff] %v4254_v6 }
 0x139   :  { %291 = vmatmul.f32.gmra.mxu0 %v69_v7  ;;  %v91_v7 = vld [vmem:[%s7739_s0 + $0x1c8] sm:$0xff] }
 0x13e   :  { %v4259_v8 = vpop.f32.mrf.mxu0 }
 0x13f   :  { %7765 = vst [vmem:[#allocation6_spill] sm:$0xff] %v4259_v8 }
 0x141   :  { %294 = vmatmul.f32.gmra.mxu0 %v70_v9 }
 0x146   :  { %v4264_v10 = vpop.f32.mrf.mxu0 }
 0x147   :  { %7766 = vst [vmem:[#allocation7_spill] sm:$0xff] %v4264_v10 }
 0x149   :  { %297 = vmatmul.f32.gmra.mxu0 %v71_v11  ;;  %v92_v11 = vld [vmem:[%s7739_s0 + $0x1d0] sm:$0xff] }
 0x14e   :  { %v4269_v12 = vpop.f32.mrf.mxu0 }
 0x14f   :  { %7767 = vst [vmem:[#allocation8_spill] sm:$0xff] %v4269_v12 }
 0x151   :  { %300 = vmatmul.f32.gmra.mxu0 %v72_v13 }
 0x156   :  { %v4274_v14 = vpop.f32.mrf.mxu0 }
 0x157   :  { %7768 = vst [vmem:[#allocation9_spill] sm:$0xff] %v4274_v14 }
 0x159   :  { %303 = vmatmul.f32.gmra.mxu0 %v73_v15  ;;  %v93_v15 = vld [vmem:[%s7739_s0 + $0x1d8] sm:$0xff] }
 0x15e   :  { %v4279_v16 = vpop.f32.mrf.mxu0 }
 0x15f   :  { %7769 = vst [vmem:[#allocation10_spill] sm:$0xff] %v4279_v16 }
 0x161   :  { %306 = vmatmul.f32.gmra.mxu0 %v74_v17 }
 0x166   :  { %v4284_v18 = vpop.f32.mrf.mxu0 }
 0x167   :  { %7770 = vst [vmem:[#allocation11_spill] sm:$0xff] %v4284_v18 }
 0x169   :  { %309 = vmatmul.f32.gmra.mxu0 %v75_v19  ;;  %v94_v19 = vld [vmem:[%s7739_s0 + $0x1e0] sm:$0xff] }
 0x16e   :  { %v4289_v20 = vpop.f32.mrf.mxu0 }
 0x16f   :  { %7771 = vst [vmem:[#allocation12_spill] sm:$0xff] %v4289_v20 }
 0x171   :  { %312 = vmatmul.f32.gmra.mxu0 %v76_v21 }
 0x176   :  { %v4294_v22 = vpop.f32.mrf.mxu0 }
 0x177   :  { %7772 = vst [vmem:[#allocation13_spill] sm:$0xff] %v4294_v22 }
 0x179   :  { %315 = vmatmul.f32.gmra.mxu0 %v77_v23  ;;  %v95_v23 = vld [vmem:[%s7739_s0 + $0x1e8] sm:$0xff] }
 0x17e   :  { %v4299_v24 = vpop.f32.mrf.mxu0 }
 0x17f   :  { %7773 = vst [vmem:[#allocation14_spill] sm:$0xff] %v4299_v24 }
 0x181   :  { %318 = vmatmul.f32.gmra.mxu0 %v78_v25 }
 0x186   :  { %v4304_v26 = vpop.f32.mrf.mxu0 }
 0x187   :  { %7774 = vst [vmem:[#allocation15_spill] sm:$0xff] %v4304_v26 }
 0x189   :  { %321 = vmatmul.f32.gmra.mxu0 %v79_v27  ;;  %v96_v27 = vld [vmem:[%s7739_s0 + $0x1f0] sm:$0xff] }
 0x18e   :  { %v4309_v28 = vpop.f32.mrf.mxu0 }
 0x191   :  { %324 = vmatmul.f32.gmra.mxu0 %v80_v29 }
 0x196   :  { %v4314_v30 = vpop.f32.mrf.mxu0 }
 0x197   :  { %v548_v4 = vmax.f32 %v4164_v34, %v4314_v30 }
 0x199   :  { %327 = vmatmul.f32.gmra.mxu0 %v81_v31  ;;  %v97_v31 = vld [vmem:[%s7739_s0 + $0x1f8] sm:$0xff] }
 0x19e   :  { %v4319_v33 = vpop.f32.mrf.mxu0 }
 0x19f   :  { %v549_v34 = vmax.f32 %v4169_v36, %v4319_v33 }
 0x1a1   :  { %330 = vmatmul.f32.gmra.mxu0 %v82_v35 }
 0x1a6   :  { %v4324_v37 = vpop.f32.mrf.mxu0 }
 0x1a7   :  { %v550_v36 = vmax.f32 %v4174_v38, %v4324_v37 }
 0x1a9   :  { %333 = vmatmul.f32.gmra.mxu0 %v83_v39  ;;  %v98_v39 = vld [vmem:[%s7739_s0 + $0x200] sm:$0xff] }
 0x1ae   :  { %v4329_v41 = vpop.f32.mrf.mxu0 }
 0x1af   :  { %v551_v38 = vmax.f32 %v4179_v40, %v4329_v41 }
 0x1b1   :  { %336 = vmatmul.f32.gmra.mxu0 %v84_v43 }
 0x1b6   :  { %v4334_v45 = vpop.f32.mrf.mxu0 }
 0x1b7   :  { %v552_v40 = vmax.f32 %v4184_v42, %v4334_v45 }
 0x1b9   :  { %339 = vmatmul.f32.gmra.mxu0 %v85_v47  ;;  %v99_v47 = vld [vmem:[%s7739_s0 + $0x208] sm:$0xff] }
 0x1be   :  { %v4339_v49 = vpop.f32.mrf.mxu0 }
 0x1bf   :  { %v553_v42 = vmax.f32 %v4189_v44, %v4339_v49  ;;  %v933_v44 = vld [vmem:[%s7740_s2 + $0x68] sm:$0xff] }
 0x1c1   :  { %342 = vmatmul.f32.gmra.mxu0 %v86_v51 }
 0x1c6   :  { %v4344_v53 = vpop.f32.mrf.mxu0 }
 0x1c9   :  { %345 = vmatmul.f32.gmra.mxu0 %v87_v55  ;;  %v100_v55 = vld [vmem:[%s7739_s0 + $0x210] sm:$0xff] }
 0x1ce   :  { %v4349_v57 = vpop.f32.mrf.mxu0 }
 0x1d1   :  { %348 = vmatmul.f32.gmra.mxu0 %v88_v59 }
 0x1d6   :  { %v4354_v61 = vpop.f32.mrf.mxu0 }
 0x1d9   :  { %351 = vmatmul.f32.gmra.mxu0 %v89_v63  ;;  %v101_v63 = vld [vmem:[%s7739_s0 + $0x218] sm:$0xff] }
 0x1de   :  { %v4359_v1 = vpop.f32.mrf.mxu0 }
 0x1e1   :  { %354 = vmatmul.f32.gmra.mxu0 %v90_v3 }
 0x1e6   :  { %v4364_v5 = vpop.f32.mrf.mxu0 }
 0x1e9   :  { %357 = vmatmul.f32.gmra.mxu0 %v91_v7  ;;  %v102_v7 = vld [vmem:[%s7739_s0 + $0x220] sm:$0xff] }
 0x1ee   :  { %v4369_v9 = vpop.f32.mrf.mxu0 }
 0x1f1   :  { %360 = vmatmul.f32.gmra.mxu0 %v92_v11 }
 0x1f6   :  { %v4374_v13 = vpop.f32.mrf.mxu0 }
 0x1f9   :  { %363 = vmatmul.f32.gmra.mxu0 %v93_v15  ;;  %v103_v15 = vld [vmem:[%s7739_s0 + $0x228] sm:$0xff] }
 0x1fe   :  { %v4379_v17 = vpop.f32.mrf.mxu0 }
 0x201   :  { %366 = vmatmul.f32.gmra.mxu0 %v94_v19 }
 0x206   :  { %v4384_v21 = vpop.f32.mrf.mxu0 }
 0x209   :  { %369 = vmatmul.f32.gmra.mxu0 %v95_v23  ;;  %v104_v23 = vld [vmem:[%s7739_s0 + $0x230] sm:$0xff] }
 0x20e   :  { %v4389_v25 = vpop.f32.mrf.mxu0 }
 0x211   :  { %372 = vmatmul.f32.gmra.mxu0 %v96_v27 }
 0x216   :  { %v4394_v29 = vpop.f32.mrf.mxu0 }
 0x219   :  { %375 = vmatmul.f32.gmra.mxu0 %v97_v31  ;;  %v105_v31 = vld [vmem:[%s7739_s0 + $0x238] sm:$0xff] }
 0x21e   :  { %v4399_v35 = vpop.f32.mrf.mxu0 }
 0x221   :  { %378 = vmatmul.f32.gmra.mxu0 %v98_v39 }
 0x226   :  { %v4404_v43 = vpop.f32.mrf.mxu0 }
 0x227   :  { %7775 = vst [vmem:[#allocation16_spill] sm:$0xff] %v4404_v43 }
 0x229   :  { %381 = vmatmul.f32.gmra.mxu0 %v99_v47  ;;  %v106_v47 = vld [vmem:[%s7739_s0 + $0x240] sm:$0xff] }
 0x22e   :  { %v4409_v51 = vpop.f32.mrf.mxu0 }
 0x22f   :  { %7776 = vst [vmem:[#allocation17_spill] sm:$0xff] %v4409_v51 }
 0x231   :  { %384 = vmatmul.f32.gmra.mxu0 %v100_v55 }
 0x236   :  { %v4414_v59 = vpop.f32.mrf.mxu0 }
 0x237   :  { %7777 = vst [vmem:[#allocation18_spill] sm:$0xff] %v4414_v59 }
 0x239   :  { %387 = vmatmul.f32.gmra.mxu0 %v101_v63  ;;  %v107_v63 = vld [vmem:[%s7739_s0 + $0x248] sm:$0xff] }
 0x23e   :  { %v4419_v3 = vpop.f32.mrf.mxu0 }
 0x23f   :  { %7778 = vst [vmem:[#allocation19_spill] sm:$0xff] %v4419_v3 }
 0x241   :  { %390 = vmatmul.f32.gmra.mxu0 %v102_v7 }
 0x246   :  { %v4424_v11 = vpop.f32.mrf.mxu0 }
 0x247   :  { %7779 = vst [vmem:[#allocation20_spill] sm:$0xff] %v4424_v11 }
 0x249   :  { %393 = vmatmul.f32.gmra.mxu0 %v103_v15  ;;  %v108_v15 = vld [vmem:[%s7739_s0 + $0x250] sm:$0xff] }
 0x24e   :  { %v4429_v19 = vpop.f32.mrf.mxu0 }
 0x24f   :  { %7780 = vst [vmem:[#allocation21_spill] sm:$0xff] %v4429_v19 }
 0x251   :  { %396 = vmatmul.f32.gmra.mxu0 %v104_v23 }
 0x256   :  { %v4434_v27 = vpop.f32.mrf.mxu0 }
 0x257   :  { %7781 = vst [vmem:[#allocation22_spill] sm:$0xff] %v4434_v27 }
 0x259   :  { %399 = vmatmul.f32.gmra.mxu0 %v105_v31  ;;  %v109_v31 = vld [vmem:[%s7739_s0 + $0x258] sm:$0xff] }
 0x25e   :  { %v4439_v39 = vpop.f32.mrf.mxu0 }
 0x25f   :  { %7782 = vst [vmem:[#allocation23_spill] sm:$0xff] %v4439_v39 }
 0x261   :  { %402 = vmatmul.f32.gmra.mxu0 %v106_v47 }
 0x266   :  { %v4444_v55 = vpop.f32.mrf.mxu0 }
 0x267   :  { %7783 = vst [vmem:[#allocation24_spill] sm:$0xff] %v4444_v55 }
 0x269   :  { %405 = vmatmul.f32.gmra.mxu0 %v107_v63  ;;  %v110_v63 = vld [vmem:[%s7739_s0 + $0x260] sm:$0xff] }
 0x26e   :  { %v4449_v7 = vpop.f32.mrf.mxu0 }
 0x26f   :  { %7784 = vst [vmem:[#allocation25_spill] sm:$0xff] %v4449_v7 }
 0x271   :  { %408 = vmatmul.f32.gmra.mxu0 %v108_v15  ;;  %v111_v15 = vld [vmem:[%s7739_s0 + $0x268] sm:$0xff] }
 0x276   :  { %v4454_v23 = vpop.f32.mrf.mxu0 }
 0x277   :  { %7785 = vst [vmem:[#allocation26_spill] sm:$0xff] %v4454_v23 }
 0x279   :  { %411 = vmatmul.f32.gmra.mxu0 %v109_v31  ;;  %v112_v31 = vld [vmem:[%s7739_s0 + $0x270] sm:$0xff] }
 0x27e   :  { %v4459_v47 = vpop.f32.mrf.mxu0 }
 0x281   :  { %414 = vmatmul.f32.gmra.mxu0 %v110_v63  ;;  %v113_v63 = vld [vmem:[%s7739_s0 + $0x278] sm:$0xff] }
 0x286   :  { %v4464_v26 = vpop.f32.mrf.mxu0 }
 0x289   :  { %417 = vmatmul.f32.gmra.mxu0 %v111_v15  ;;  %v114_v15 = vld [vmem:[%s7739_s0 + $0x280] sm:$0xff] }
 0x28e   :  { %v4469_v23 = vpop.f32.mrf.mxu0 }
 0x291   :  { %420 = vmatmul.f32.gmra.mxu0 %v112_v31  ;;  %v115_v31 = vld [vmem:[%s7739_s0 + $0x288] sm:$0xff] }
 0x296   :  { %v4474_v24 = vpop.f32.mrf.mxu0 }
 0x299   :  { %423 = vmatmul.f32.gmra.mxu0 %v113_v63  ;;  %v116_v63 = vld [vmem:[%s7739_s0 + $0x290] sm:$0xff] }
 0x29e   :  { %v4479_v7 = vpop.f32.mrf.mxu0 }
 0x2a1   :  { %426 = vmatmul.f32.gmra.mxu0 %v114_v15  ;;  %v117_v15 = vld [vmem:[%s7739_s0 + $0x298] sm:$0xff] }
 0x2a6   :  { %v4484_v22 = vpop.f32.mrf.mxu0 }
 0x2a9   :  { %429 = vmatmul.f32.gmra.mxu0 %v115_v31  ;;  %v118_v31 = vld [vmem:[%s7739_s0 + $0x2a0] sm:$0xff] }
 0x2ae   :  { %v4489_v55 = vpop.f32.mrf.mxu0 }
 0x2b1   :  { %432 = vmatmul.f32.gmra.mxu0 %v116_v63  ;;  %v119_v63 = vld [vmem:[%s7739_s0 + $0x2a8] sm:$0xff] }
 0x2b6   :  { %v4494_v20 = vpop.f32.mrf.mxu0 }
 0x2b9   :  { %435 = vmatmul.f32.gmra.mxu0 %v117_v15  ;;  %v120_v15 = vld [vmem:[%s7739_s0 + $0x2b0] sm:$0xff] }
 0x2be   :  { %v4499_v39 = vpop.f32.mrf.mxu0 }
 0x2c1   :  { %438 = vmatmul.f32.gmra.mxu0 %v118_v31  ;;  %v121_v31 = vld [vmem:[%s7739_s0 + $0x2b8] sm:$0xff] }
 0x2c6   :  { %v4504_v18 = vpop.f32.mrf.mxu0 }
 0x2c9   :  { %441 = vmatmul.f32.gmra.mxu0 %v119_v63  ;;  %v122_v63 = vld [vmem:[%s7739_s0 + $0x2c0] sm:$0xff] }
 0x2ce   :  { %v4509_v27 = vpop.f32.mrf.mxu0 }
 0x2d1   :  { %444 = vmatmul.f32.gmra.mxu0 %v120_v15  ;;  %v123_v15 = vld [vmem:[%s7739_s0 + $0x2c8] sm:$0xff] }
 0x2d6   :  { %v4514_v16 = vpop.f32.mrf.mxu0 }
 0x2d9   :  { %447 = vmatmul.f32.gmra.mxu0 %v121_v31  ;;  %v124_v31 = vld [vmem:[%s7739_s0 + $0x2d0] sm:$0xff] }
 0x2de   :  { %v4519_v19 = vpop.f32.mrf.mxu0 }
 0x2e1   :  { %450 = vmatmul.f32.gmra.mxu0 %v122_v63  ;;  %v125_v63 = vld [vmem:[%s7739_s0 + $0x2d8] sm:$0xff] }
 0x2e6   :  { %v4524_v14 = vpop.f32.mrf.mxu0 }
 0x2e9   :  { %453 = vmatmul.f32.gmra.mxu0 %v123_v15  ;;  %v126_v15 = vld [vmem:[%s7739_s0 + $0x2e0] sm:$0xff] }
 0x2ee   :  { %v4529_v11 = vpop.f32.mrf.mxu0 }
 0x2f1   :  { %456 = vmatmul.f32.gmra.mxu0 %v124_v31  ;;  %v127_v31 = vld [vmem:[%s7739_s0 + $0x2e8] sm:$0xff] }
 0x2f6   :  { %v4534_v12 = vpop.f32.mrf.mxu0 }
 0x2f9   :  { %459 = vmatmul.f32.gmra.mxu0 %v125_v63  ;;  %v128_v63 = vld [vmem:[%s7739_s0 + $0x2f0] sm:$0xff] }
 0x2fe   :  { %v4539_v3 = vpop.f32.mrf.mxu0 }
 0x301   :  { %462 = vmatmul.f32.gmra.mxu0 %v126_v15  ;;  %v129_v15 = vld [vmem:[%s7739_s0 + $0x2f8] sm:$0xff] }
 0x306   :  { %v4544_v10 = vpop.f32.mrf.mxu0 }
 0x309   :  { %465 = vmatmul.f32.gmra.mxu0 %v127_v31  ;;  %v130_v31 = vld [vmem:[%s7739_s0 + $0x300] sm:$0xff] }
 0x30e   :  { %v4549_v59 = vpop.f32.mrf.mxu0 }
 0x30f   :  { %7786 = vst [vmem:[#allocation27_spill] sm:$0xff] %v4549_v59 }
 0x311   :  { %468 = vmatmul.f32.gmra.mxu0 %v128_v63  ;;  %v131_v63 = vld [vmem:[%s7739_s0 + $0x308] sm:$0xff] }
 0x316   :  { %v4554_v8 = vpop.f32.mrf.mxu0 }
 0x317   :  { %7787 = vst [vmem:[#allocation28_spill] sm:$0xff] %v4554_v8 }
 0x319   :  { %471 = vmatmul.f32.gmra.mxu0 %v129_v15  ;;  %v132_v15 = vld [vmem:[%s7739_s0 + $0x310] sm:$0xff] }
 0x31e   :  { %v4559_v51 = vpop.f32.mrf.mxu0 }
 0x31f   :  { %7788 = vst [vmem:[#allocation29_spill] sm:$0xff] %v4559_v51  ;;  %v951_v51 = vld [vmem:[%s7740_s2 + $0xf8] sm:$0xff] }
 0x320   :  { %1171 = vmatpush.msra.mxu2 %v951_v51  ;;  %3909 = vmatpush.msra.mxu3 %v951_v51 }
 0x321   :  { %474 = vmatmul.f32.gmra.mxu0 %v130_v31  ;;  %v133_v31 = vld [vmem:[%s7739_s0 + $0x318] sm:$0xff] }
 0x326   :  { %v4564_v6 = vpop.f32.mrf.mxu0 }
 0x327   :  { %7789 = vst [vmem:[#allocation30_spill] sm:$0xff] %v4564_v6 }
 0x329   :  { %477 = vmatmul.f32.gmra.mxu0 %v131_v63  ;;  %v950_v63 = vld [vmem:[%s7740_s2 + $0xf0] sm:$0xff] }
 0x32a   :  { %1172 = vmatpush.msra.mxu2 %v950_v63  ;;  %3910 = vmatpush.msra.mxu3 %v950_v63  ;;  %v946_v63 = vld [vmem:[%s7740_s2 + $0xd0] sm:$0xff] }
 0x32e   :  { %v4569_v8 = vpop.f32.mrf.mxu0 }
 0x32f   :  { %7790 = vst [vmem:[#allocation31_spill] sm:$0xff] %v4569_v8  ;;  %v947_v8 = vld [vmem:[%s7740_s2 + $0xd8] sm:$0xff] }
 0x331   :  { %480 = vmatmul.f32.gmra.mxu0 %v132_v15  ;;  %v949_v15 = vld [vmem:[%s7740_s2 + $0xe8] sm:$0xff] }
 0x332   :  { %1173 = vmatpush.msra.mxu2 %v949_v15  ;;  %3911 = vmatpush.msra.mxu3 %v949_v15  ;;  %v944_v15 = vld [vmem:[%s7740_s2 + $0xc0] sm:$0xff] }
 0x336   :  { %v4577_v43 = vpop.f32.mrf.mxu0 }
 0x337   :  { %7791 = vst [vmem:[#allocation32_spill] sm:$0xff] %v4577_v43  ;;  %v948_v43 = vld [vmem:[%s7740_s2 + $0xe0] sm:$0xff] }
 0x338   :  { %1174 = vmatpush.msra.mxu2 %v948_v43  ;;  %3912 = vmatpush.msra.mxu3 %v948_v43  ;;  %v945_v43 = vld [vmem:[%s7740_s2 + $0xc8] sm:$0xff] }
 0x339   :  { %483 = vmatmul.f32.gmra.mxu0 %v133_v31  ;;  %v134_v31 = vld [vmem:[%s7739_s0 + $0x320] sm:$0xff] }
 0x33a   :  { %1175 = vmatpush.msra.mxu2 %v947_v8  ;;  %3913 = vmatpush.msra.mxu3 %v947_v8 }
 0x33c   :  { %1176 = vmatpush.msra.mxu2 %v946_v63  ;;  %3914 = vmatpush.msra.mxu3 %v946_v63  ;;  %v942_v63 = vld [vmem:[%s7740_s2 + $0xb0] sm:$0xff] }
 0x33e   :  { %v4594_v51 = vpop.f32.mrf.mxu0  ;;  %1177 = vmatpush.msra.mxu2 %v945_v43  ;;  %3915 = vmatpush.msra.mxu3 %v945_v43  ;;  %v941_v43 = vld [vmem:[%s7740_s2 + $0xa8] sm:$0xff] }
 0x33f   :  { %7792 = vst [vmem:[#allocation33_spill] sm:$0xff] %v4594_v51  ;;  %v943_v51 = vld [vmem:[%s7740_s2 + $0xb8] sm:$0xff] }
 0x340   :  { %1178 = vmatpush.msra.mxu2 %v944_v15  ;;  %3916 = vmatpush.msra.mxu3 %v944_v15  ;;  %v940_v15 = vld [vmem:[%s7740_s2 + $0xa0] sm:$0xff] }
 0x341   :  { %486 = vmatmul.f32.gmra.mxu0 %v134_v31  ;;  %v135_v31 = vld [vmem:[%s7739_s0 + $0x328] sm:$0xff] }
 0x342   :  { %1179 = vmatpush.msra.mxu2 %v943_v51  ;;  %3917 = vmatpush.msra.mxu3 %v943_v51  ;;  %v939_v51 = vld [vmem:[%s7740_s2 + $0x98] sm:$0xff] }
 0x344   :  { %1180 = vmatpush.msra.mxu2 %v942_v63  ;;  %3918 = vmatpush.msra.mxu3 %v942_v63 }
 0x346   :  { %v4611_v8 = vpop.f32.mrf.mxu0  ;;  %1181 = vmatpush.msra.mxu2 %v941_v43  ;;  %3919 = vmatpush.msra.mxu3 %v941_v43  ;;  %v938_v43 = vld [vmem:[%s7740_s2 + $0x90] sm:$0xff] }
 0x347   :  { %7793 = vst [vmem:[#allocation34_spill] sm:$0xff] %v4611_v8  ;;  %v4011_v8 = vmov 0.0  }
 0x348   :  { %1182 = vmatpush.msra.mxu2 %v940_v15  ;;  %3920 = vmatpush.msra.mxu3 %v940_v15  ;;  %667 = vst [vmem:[#allocation2] sm:$0xff] %v4011_v8  ;;  %v937_v15 = vld [vmem:[%s7740_s2 + $0x88] sm:$0xff] }
 0x349   :  { %489 = vmatmul.f32.gmra.mxu0 %v135_v31  ;;  %v136_v31 = vld [vmem:[%s7739_s0 + $0x330] sm:$0xff]  ;;  %668 = vst [vmem:[#allocation2 + $0x8] sm:$0xff] %v4011_v8 }
 0x34a   :  { %1183 = vmatpush.msra.mxu2 %v939_v51  ;;  %3921 = vmatpush.msra.mxu3 %v939_v51  ;;  %699 = vst [vmem:[#allocation2 + $0x100] sm:$0xff] %v4011_v8 }
 0x34b   :  { %700 = vst [vmem:[#allocation2 + $0x108] sm:$0xff] %v4011_v8  ;;  %v137_v8 = vld [vmem:[%s7739_s0 + $0x338] sm:$0xff] }
 0x34c   :  { %1184 = vmatpush.msra.mxu2 %v938_v43  ;;  %3922 = vmatpush.msra.mxu3 %v938_v43  ;;  %v138_v43 = vld [vmem:[%s7739_s0 + $0x340] sm:$0xff] }
 0x34e   :  { %v4628_v63 = vpop.f32.mrf.mxu0  ;;  %1185 = vmatpush.msra.mxu2 %v937_v15  ;;  %3923 = vmatpush.msra.mxu3 %v937_v15 }
 0x34f   :  { %7794 = vst [vmem:[#allocation35_spill] sm:$0xff] %v4628_v63  ;;  %v936_v63 = vld [vmem:[%s7740_s2 + $0x80] sm:$0xff] }
 0x350   :  { %1186 = vmatpush.msra.mxu2 %v936_v63  ;;  %3924 = vmatpush.msra.mxu3 %v936_v63  ;;  %v761_v51 = vld [vmem:[#allocation2 + $0x4] sm:$0xff] }
 0x351   :  { %492 = vmatmul.f32.gmra.mxu0 %v136_v31  ;;  %1187 = vmatmul.f32.vlgmr.msra.gmra.mxu2 %v761_v51  ;;  %v139_v63 = vld [vmem:[%s7739_s0 + $0x348] sm:$0xff]  ;;  %v140_v51 = vld [vmem:[%s7739_s0 + $0x350] sm:$0xff] }
 0x356   :  { %v4642_v6 = vpop.f32.mrf.mxu0 }
 0x357   :  { %7795 = vst [vmem:[#allocation36_spill] sm:$0xff] %v4642_v6 }
 0x359   :  { %495 = vmatmul.f32.gmra.mxu0 %v137_v8  ;;  %v547_v8 = vmax.f32 %v4159_v32, %v4309_v28 }
 0x35e   :  { %v4647_v31 = vpop.f32.mrf.mxu0 }
 0x35f   :  { %7796 = vst [vmem:[#allocation37_spill] sm:$0xff] %v4647_v31 }
 0x361   :  { %498 = vmatmul.f32.gmra.mxu0 %v138_v43 }
 0x366   :  { %v4652_v15 = vpop.f32.mrf.mxu0 }
 0x367   :  { %7797 = vst [vmem:[#allocation38_spill] sm:$0xff] %v4652_v15 }
 0x369   :  { %501 = vmatmul.f32.gmra.mxu0 %v139_v63  ;;  %v141_v63 = vld [vmem:[%s7739_s0 + $0x358] sm:$0xff] }
 0x36e   :  { %v457_v6 = vpop.f32.mrf.mxu0 }
 0x36f   :  { %v577_v31 = vmax.f32 %v4459_v47, %v457_v6 }
 0x371   :  { %v4663_v59 = vmax.f32 %v547_v8, %v577_v31  ;;  %504 = vmatmul.f32.gmra.mxu0 %v140_v51  ;;  %v142_v51 = vld [vmem:[%s7739_s0 + $0x360] sm:$0xff] }
 0x373   :  { %v637_v43 = vmax.f32 %v4663_v59, 0.0 }
 0x375   :  { %701 = vst [vmem:[#allocation2 + $0x10] sm:$0xff] %v637_v43 }
 0x376   :  { %v460_v15 = vpop.f32.mrf.mxu0 }
 0x377   :  { %v578_v32 = vmax.f32 %v4464_v26, %v460_v15 }
 0x379   :  { %v4674_v28 = vmax.f32 %v548_v4, %v578_v32  ;;  %507 = vmatmul.f32.gmra.mxu0 %v141_v63  ;;  %v143_v63 = vld [vmem:[%s7739_s0 + $0x368] sm:$0xff] }
 0x37b   :  { %v638_v6 = vmax.f32 %v4674_v28, 0.0  ;;  %v7800_v28 = vld [vmem:[#allocation16_spill] sm:$0xff] }
 0x37c   :  { %v762_v47 = vld [vmem:[#allocation2 + $0xc] sm:$0xff] }
 0x37d   :  { %702 = vst [vmem:[#allocation2 + $0x18] sm:$0xff] %v638_v6  ;;  %1190 = vmatmul.f32.gmra.mxu2 %v762_v47 }
 0x37e   :  { %v463_v31 = vpop.f32.mrf.mxu0 }
 0x37f   :  { %v579_v26 = vmax.f32 %v4469_v23, %v463_v31 }
 0x381   :  { %v4685_v4 = vmax.f32 %v549_v34, %v579_v26  ;;  %510 = vmatmul.f32.gmra.mxu0 %v142_v51  ;;  %v144_v51 = vld [vmem:[%s7739_s0 + $0x370] sm:$0xff] }
 0x383   :  { %v639_v30 = vmax.f32 %v4685_v4, 0.0 }
 0x384   :  { %v763_v15 = vld [vmem:[#allocation2 + $0x14] sm:$0xff] }
 0x385   :  { %703 = vst [vmem:[#allocation2 + $0x20] sm:$0xff] %v639_v30  ;;  %1193 = vmatmul.f32.gmra.mxu2 %v763_v15 }
 0x386   :  { %v466_v8 = vpop.f32.mrf.mxu0 }
 0x387   :  { %v580_v33 = vmax.f32 %v4474_v24, %v466_v8  ;;  %v145_v8 = vld [vmem:[%s7739_s0 + $0x378] sm:$0xff] }
 0x389   :  { %v4696_v23 = vmax.f32 %v550_v36, %v580_v33  ;;  %513 = vmatmul.f32.gmra.mxu0 %v143_v63 }
 0x38b   :  { %v640_v32 = vmax.f32 %v4696_v23, 0.0 }
 0x38c   :  { %v764_v47 = vld [vmem:[#allocation2 + $0x1c] sm:$0xff] }
 0x38d   :  { %704 = vst [vmem:[#allocation2 + $0x28] sm:$0xff] %v640_v32  ;;  %1196 = vmatmul.f32.gmra.mxu2 %v764_v47  ;;  %v146_v47 = vld [vmem:[%s7739_s0 + $0x380] sm:$0xff] }
 0x38e   :  { %v469_v31 = vpop.f32.mrf.mxu0 }
 0x38f   :  { %v581_v24 = vmax.f32 %v4479_v7, %v469_v31  ;;  %v935_v31 = vld [vmem:[%s7740_s2 + $0x78] sm:$0xff] }
 0x390   :  { %1064 = vmatpush.msrb.mxu0 %v935_v31  ;;  %3893 = vmatpush.msra.mxu1 %v935_v31  ;;  %v928_v31 = vld [vmem:[%s7740_s2 + $0x40] sm:$0xff] }
 0x391   :  { %v4707_v37 = vmax.f32 %v551_v38, %v581_v24  ;;  %516 = vmatmul.f32.gmra.mxu0 %v144_v51  ;;  %v934_v38 = vld [vmem:[%s7740_s2 + $0x70] sm:$0xff] }
 0x392   :  { %1065 = vmatpush.msrb.mxu0 %v934_v38  ;;  %3894 = vmatpush.msra.mxu1 %v934_v38 }
 0x393   :  { %v641_v34 = vmax.f32 %v4707_v37, 0.0 }
 0x394   :  { %v765_v26 = vld [vmem:[#allocation2 + $0x24] sm:$0xff]  ;;  %1066 = vmatpush.msrb.mxu0 %v933_v44  ;;  %3895 = vmatpush.msra.mxu1 %v933_v44 }
 0x395   :  { %705 = vst [vmem:[#allocation2 + $0x30] sm:$0xff] %v641_v34  ;;  %1199 = vmatmul.f32.gmra.mxu2 %v765_v26  ;;  %v554_v26 = vmax.f32 %v4194_v46, %v4344_v53  ;;  %v930_v46 = vld [vmem:[%s7740_s2 + $0x50] sm:$0xff]  ;;  %v929_v53 = vld [vmem:[%s7740_s2 + $0x48] sm:$0xff] }
 0x396   :  { %v472_v15 = vpop.f32.mrf.mxu0 }
 0x397   :  { %v582_v41 = vmax.f32 %v4484_v22, %v472_v15 }
 0x399   :  { %v4718_v7 = vmax.f32 %v552_v40, %v582_v41  ;;  %519 = vmatmul.f32.gmra.mxu0 %v145_v8  ;;  %v932_v8 = vld [vmem:[%s7740_s2 + $0x60] sm:$0xff]  ;;  %v931_v41 = vld [vmem:[%s7740_s2 + $0x58] sm:$0xff] }
 0x39a   :  { %1067 = vmatpush.msrb.mxu0 %v932_v8  ;;  %3896 = vmatpush.msra.mxu1 %v932_v8 }
 0x39b   :  { %v642_v63 = vmax.f32 %v4718_v7, 0.0 }
 0x39c   :  { %v766_v36 = vld [vmem:[#allocation2 + $0x2c] sm:$0xff]  ;;  %1068 = vmatpush.msrb.mxu0 %v931_v41  ;;  %3897 = vmatpush.msra.mxu1 %v931_v41  ;;  %v924_v41 = vld [vmem:[%s7740_s2 + $0x20] sm:$0xff] }
 0x39d   :  { %706 = vst [vmem:[#allocation2 + $0x38] sm:$0xff] %v642_v63  ;;  %1202 = vmatmul.f32.gmra.mxu2 %v766_v36 }
 0x39e   :  { %v475_v33 = vpop.f32.mrf.mxu0  ;;  %1069 = vmatpush.msrb.mxu0 %v930_v46  ;;  %3898 = vmatpush.msra.mxu1 %v930_v46  ;;  %v998_v46 = vld [vmem:[%s7740_s2 + $0x270] sm:$0xff] }
 0x39f   :  { %v583_v22 = vmax.f32 %v4489_v55, %v475_v33  ;;  %v147_v55 = vld [vmem:[%s7739_s0 + $0x388] sm:$0xff] }
 0x3a0   :  { %1070 = vmatpush.msrb.mxu0 %v929_v53  ;;  %3899 = vmatpush.msra.mxu1 %v929_v53  ;;  %v922_v53 = vld [vmem:[%s7740_s2 + $0x10] sm:$0xff] }
 0x3a1   :  { %v4729_v45 = vmax.f32 %v553_v42, %v583_v22  ;;  %522 = vmatmul.f32.gmra.mxu0 %v146_v47  ;;  %v148_v47 = vld [vmem:[%s7739_s0 + $0x390] sm:$0xff]  ;;  %v555_v42 = vmax.f32 %v4199_v48, %v4349_v57 }
 0x3a2   :  { %1071 = vmatpush.msrb.mxu0 %v928_v31  ;;  %3900 = vmatpush.msra.mxu1 %v928_v31  ;;  %v926_v48 = vld [vmem:[%s7740_s2 + $0x30] sm:$0xff] }
 0x3a3   :  { %v643_v51 = vmax.f32 %v4729_v45, 0.0 }
 0x3a4   :  { %v767_v24 = vld [vmem:[#allocation2 + $0x34] sm:$0xff] }
 0x3a5   :  { %707 = vst [vmem:[#allocation2 + $0x40] sm:$0xff] %v643_v51  ;;  %1205 = vmatmul.f32.gmra.mxu2 %v767_v24  ;;  %v927_v24 = vld [vmem:[%s7740_s2 + $0x38] sm:$0xff] }
 0x3a6   :  { %v478_v49 = vpop.f32.mrf.mxu0  ;;  %1072 = vmatpush.msrb.mxu0 %v927_v24  ;;  %3901 = vmatpush.msra.mxu1 %v927_v24  ;;  %v150_v24 = vld [vmem:[%s7739_s0 + $0x3a0] sm:$0xff] }
 0x3a7   :  { %v584_v15 = vmax.f32 %v4494_v20, %v478_v49  ;;  %v999_v49 = vld [vmem:[%s7740_s2 + $0x278] sm:$0xff] }
 0x3a8   :  { %1073 = vmatpush.msrb.mxu0 %v926_v48  ;;  %3902 = vmatpush.msra.mxu1 %v926_v48  ;;  %v557_v48 = vmax.f32 %v4209_v52, %v4359_v1  ;;  %v993_v52 = vld [vmem:[%s7740_s2 + $0x248] sm:$0xff] }
 0x3a9   :  { %v4752_v40 = vmax.f32 %v554_v26, %v584_v15  ;;  %525 = vmatmul.f32.gmra.mxu0 %v147_v55  ;;  %v149_v26 = vld [vmem:[%s7739_s0 + $0x398] sm:$0xff]  ;;  %1492 = vmatpush.msrb.mxu2 %v999_v49  ;;  %v556_v15 = vmax.f32 %v4204_v50, %v4354_v61  ;;  %v994_v49 = vld [vmem:[%s7740_s2 + $0x250] sm:$0xff] }
 0x3aa   :  { %v923_v50 = vld [vmem:[%s7740_s2 + $0x18] sm:$0xff] }
 0x3ab   :  { %v644_v36 = vmax.f32 %v4752_v40, 0.0  ;;  %1493 = vmatpush.msrb.mxu2 %v998_v46  ;;  %v558_v46 = vmax.f32 %v4214_v54, %v4364_v5  ;;  %v988_v54 = vld [vmem:[%s7740_s2 + $0x220] sm:$0xff]  ;;  %v987_v5 = vld [vmem:[%s7740_s2 + $0x218] sm:$0xff] }
 0x3ac   :  { %v768_v20 = vld [vmem:[#allocation2 + $0x3c] sm:$0xff] }
 0x3ad   :  { %708 = vst [vmem:[#allocation2 + $0x48] sm:$0xff] %v644_v36  ;;  %1208 = vmatmul.f32.gmra.mxu2 %v768_v20 }
 0x3ae   :  { %v481_v33 = vpop.f32.mrf.mxu0 }
 0x3af   :  { %v585_v22 = vmax.f32 %v4499_v39, %v481_v33  ;;  %v925_v39 = vld [vmem:[%s7740_s2 + $0x28] sm:$0xff]  ;;  %v996_v33 = vld [vmem:[%s7740_s2 + $0x260] sm:$0xff] }
 0x3b0   :  { %1074 = vmatpush.msrb.mxu0 %v925_v39  ;;  %3903 = vmatpush.msra.mxu1 %v925_v39  ;;  %v920_v39 = vld [vmem:[%s7740_s2] sm:$0xff] }
 0x3b1   :  { %v4775_v38 = vmax.f32 %v555_v42, %v585_v22  ;;  %528 = vmatmul.f32.gmra.mxu0 %v148_v47  ;;  %v921_v42 = vld [vmem:[%s7740_s2 + $0x8] sm:$0xff]  ;;  %v995_v22 = vld [vmem:[%s7740_s2 + $0x258] sm:$0xff] }
 0x3b2   :  { %1075 = vmatpush.msrb.mxu0 %v924_v41  ;;  %3904 = vmatpush.msra.mxu1 %v924_v41  ;;  %v151_v41 = vld [vmem:[%s7739_s0 + $0x3a8] sm:$0xff] }
 0x3b3   :  { %v645_v44 = vmax.f32 %v4775_v38, 0.0 }
 0x3b4   :  { %v769_v57 = vld [vmem:[#allocation2 + $0x44] sm:$0xff]  ;;  %1076 = vmatpush.msrb.mxu0 %v923_v50  ;;  %3905 = vmatpush.msra.mxu1 %v923_v50 }
 0x3b5   :  { %709 = vst [vmem:[#allocation2 + $0x50] sm:$0xff] %v645_v44  ;;  %1211 = vmatmul.f32.gmra.mxu2 %v769_v57 }
 0x3b6   :  { %v484_v55 = vpop.f32.mrf.mxu0  ;;  %1077 = vmatpush.msrb.mxu0 %v922_v53  ;;  %3906 = vmatpush.msra.mxu1 %v922_v53 }
 0x3b7   :  { %v586_v8 = vmax.f32 %v4504_v18, %v484_v55  ;;  %v997_v18 = vld [vmem:[%s7740_s2 + $0x268] sm:$0xff] }
 0x3b8   :  { %1494 = vmatpush.msrb.mxu2 %v997_v18  ;;  %1078 = vmatpush.msrb.mxu0 %v921_v42  ;;  %v990_v18 = vld [vmem:[%s7740_s2 + $0x230] sm:$0xff] }
 0x3b9   :  { %v4804_v20 = vmax.f32 %v556_v15, %v586_v8  ;;  %531 = vmatmul.f32.gmra.mxu0 %v149_v26  ;;  %3907 = vmatpush.msra.mxu1 %v921_v42  ;;  %v991_v15 = vld [vmem:[%s7740_s2 + $0x238] sm:$0xff] }
 0x3ba   :  { %1495 = vmatpush.msrb.mxu2 %v996_v33  ;;  %1079 = vmatpush.msrb.mxu0 %v920_v39  ;;  %v989_v33 = vld [vmem:[%s7740_s2 + $0x228] sm:$0xff] }
 0x3bb   :  { %v646_v61 = vmax.f32 %v4804_v20, 0.0  ;;  %3908 = vmatpush.msra.mxu1 %v920_v39  ;;  %v985_v39 = vld [vmem:[%s7740_s2 + $0x208] sm:$0xff] }
 0x3bc   :  { %v770_v47 = vld [vmem:[#allocation2 + $0x4c] sm:$0xff]  ;;  %1496 = vmatpush.msrb.mxu2 %v995_v22 }
 0x3bd   :  { %710 = vst [vmem:[#allocation2 + $0x58] sm:$0xff] %v646_v61  ;;  %1214 = vmatmul.f32.gmra.mxu2 %v770_v47  ;;  %v152_v22 = vld [vmem:[%s7739_s0 + $0x3b0] sm:$0xff] }
 0x3be   :  { %v487_v31 = vpop.f32.mrf.mxu0  ;;  %1497 = vmatpush.msrb.mxu2 %v994_v49  ;;  %v740_v45 = vld [vmem:[#allocation2 + $0x4b] sm:$0xff] }
 0x3bf   :  { %v587_v57 = vmax.f32 %v4509_v27, %v487_v31  ;;  %v992_v27 = vld [vmem:[%s7740_s2 + $0x240] sm:$0xff]  ;;  %v559_v31 = vmax.f32 %v4219_v56, %v4369_v9 }
 0x3c0   :  { %1498 = vmatpush.msrb.mxu2 %v993_v52  ;;  %v984_v56 = vld [vmem:[%s7740_s2 + $0x200] sm:$0xff]  ;;  %v153_v52 = vld [vmem:[%s7739_s0 + $0x3b8] sm:$0xff] }
 0x3c1   :  { %v4839_v55 = vmax.f32 %v557_v48, %v587_v57  ;;  %534 = vmatmul.f32.gmra.mxu0 %v150_v24  ;;  %v986_v48 = vld [vmem:[%s7740_s2 + $0x210] sm:$0xff] }
 0x3c2   :  { %1499 = vmatpush.msrb.mxu2 %v992_v27  ;;  %v560_v27 = vmax.f32 %v4224_v58, %v4374_v13 }
 0x3c3   :  { %v647_v1 = vmax.f32 %v4839_v55, 0.0 }
 0x3c4   :  { %v771_v26 = vld [vmem:[#allocation2 + $0x54] sm:$0xff]  ;;  %1500 = vmatpush.msrb.mxu2 %v991_v15 }
 0x3c5   :  { %711 = vst [vmem:[#allocation2 + $0x60] sm:$0xff] %v647_v1  ;;  %1217 = vmatmul.f32.gmra.mxu2 %v771_v26  ;;  %v741_v40 = vld [vmem:[#allocation2 + $0x53] sm:$0xff] }
 0x3c6   :  { %v490_v8 = vpop.f32.mrf.mxu0  ;;  %1501 = vmatpush.msrb.mxu2 %v990_v18  ;;  %v561_v18 = vmax.f32 %v4229_v60, %v4379_v17  ;;  %v732_v17 = vld [vmem:[#allocation2 + $0xb] sm:$0xff] }
 0x3c7   :  { %v588_v50 = vmax.f32 %v4514_v16, %v490_v8 }
 0x3c8   :  { %1502 = vmatpush.msrb.mxu2 %v989_v33 }
 0x3c9   :  { %v4862_v53 = vmax.f32 %v558_v46, %v588_v50  ;;  %537 = vmatmul.f32.gmra.mxu0 %v151_v41  ;;  %v731_v50 = vld [vmem:[#allocation2 + $0x3] sm:$0xff] }
 0x3ca   :  { %1503 = vmatpush.msrb.mxu2 %v988_v54 }
 0x3cb   :  { %v648_v47 = vmax.f32 %v4862_v53, 0.0 }
 0x3cc   :  { %v772_v16 = vld [vmem:[#allocation2 + $0x5c] sm:$0xff]  ;;  %1504 = vmatpush.msrb.mxu2 %v987_v5  ;;  %v562_v5 = vmax.f32 %v4234_v62, %v4384_v21 }
 0x3cd   :  { %712 = vst [vmem:[#allocation2 + $0x68] sm:$0xff] %v648_v47  ;;  %1220 = vmatmul.f32.gmra.mxu2 %v772_v16  ;;  %v742_v38 = vld [vmem:[#allocation2 + $0x5b] sm:$0xff] }
 0x3ce   :  { %v493_v42 = vpop.f32.mrf.mxu0  ;;  %1505 = vmatpush.msrb.mxu2 %v986_v48  ;;  %v563_v48 = vmax.f32 %v4239_v0, %v4389_v25  ;;  %v564_v25 = vmax.f32 %v4244_v2, %v4394_v29  ;;  %v7798_v2 = vld [vmem:[#allocation4_spill] sm:$0xff]  ;;  %v7799_v29 = vld [vmem:[#allocation27_spill] sm:$0xff] }
 0x3cf   :  { %v589_v24 = vmax.f32 %v4519_v19, %v493_v42 }
 0x3d0   :  { %1506 = vmatpush.msrb.mxu2 %v985_v39 }
 0x3d1   :  { %v4885_v57 = vmax.f32 %v559_v31, %v589_v24  ;;  %540 = vmatmul.f32.gmra.mxu0 %v152_v22 }
 0x3d2   :  { %1507 = vmatpush.msrb.mxu2 %v984_v56 }
 0x3d3   :  { %v649_v49 = vmax.f32 %v4885_v57, 0.0 }
 0x3d4   :  { %v773_v9 = vld [vmem:[#allocation2 + $0x64] sm:$0xff]  ;;  %v4933_v0 = vpop.f32.mrf.mxu2 }
 0x3d5   :  { %713 = vst [vmem:[#allocation2 + $0x70] sm:$0xff] %v649_v49  ;;  %1223 = vmatmul.f32.gmra.mxu2 %v773_v9  ;;  %v743_v20 = vld [vmem:[#allocation2 + $0x63] sm:$0xff] }
 0x3d6   :  { %v496_v19 = vpop.f32.mrf.mxu0 }
 0x3d7   :  { %v590_v26 = vmax.f32 %v4524_v14, %v496_v19 }
 0x3d9   :  { %v4902_v15 = vmax.f32 %v560_v27, %v590_v26  ;;  %543 = vmatmul.f32.gmra.mxu0 %v153_v52  ;;  %v734_v52 = vld [vmem:[#allocation2 + $0x1b] sm:$0xff] }
 0x3db   :  { %v650_v8 = vmax.f32 %v4902_v15, 0.0 }
 0x3dc   :  { %v774_v41 = vld [vmem:[#allocation2 + $0x6c] sm:$0xff] }
 0x3dd   :  { %714 = vst [vmem:[#allocation2 + $0x78] sm:$0xff] %v650_v8  ;;  %1226 = vmatmul.f32.gmra.mxu2 %v774_v41  ;;  %v744_v55 = vld [vmem:[#allocation2 + $0x6b] sm:$0xff] }
 0x3de   :  { %v499_v46 = vpop.f32.mrf.mxu0 }
 0x3df   :  { %v591_v33 = vmax.f32 %v4529_v11, %v499_v46 }
 0x3e1   :  { %v4910_v58 = vmax.f32 %v561_v18, %v591_v33  ;;  %1080 = vmatmul.f32.vlgmr.msrb.gmra.mxu0 %v731_v50  ;;  %v735_v18 = vld [vmem:[#allocation2 + $0x23] sm:$0xff] }
 0x3e3   :  { %v651_v14 = vmax.f32 %v4910_v58, 0.0 }
 0x3e4   :  { %v745_v13 = vld [vmem:[#allocation2 + $0x73] sm:$0xff] }
 0x3e5   :  { %v775_v54 = vld [vmem:[#allocation2 + $0x74] sm:$0xff]  ;;  %715 = vst [vmem:[#allocation2 + $0x80] sm:$0xff] %v651_v14  ;;  %1122 = vmatmul.f32.vlgmr.msra.gmra.mxu1 %v745_v13 }
 0x3e6   :  { %1229 = vmatmul.f32.gmra.mxu2 %v775_v54  ;;  %v502_v16 = vpop.f32.mrf.mxu0 }
 0x3e7   :  { %v592_v60 = vmax.f32 %v4534_v12, %v502_v16  ;;  %v733_v12 = vld [vmem:[#allocation2 + $0x13] sm:$0xff] }
 0x3e9   :  { %v4918_v11 = vmax.f32 %v562_v5, %v592_v60  ;;  %1083 = vmatmul.f32.gmra.mxu0 %v732_v17  ;;  %v7802_v60 = vld [vmem:[#allocation28_spill] sm:$0xff] }
 0x3eb   :  { %v652_v42 = vmax.f32 %v4918_v11, 0.0  ;;  %v824_v11 = vld [vmem:[#allocation2 + $0x27] sm:$0xff] }
 0x3ec   :  { %v746_v22 = vld [vmem:[#allocation2 + $0x7b] sm:$0xff] }
 0x3ed   :  { %v776_v31 = vld [vmem:[#allocation2 + $0x7c] sm:$0xff]  ;;  %716 = vst [vmem:[#allocation2 + $0x88] sm:$0xff] %v652_v42  ;;  %1125 = vmatmul.f32.gmra.mxu1 %v746_v22 }
 0x3ee   :  { %1232 = vmatmul.f32.gmra.mxu2 %v776_v31  ;;  %v505_v24 = vpop.f32.mrf.mxu0  ;;  %v736_v31 = vld [vmem:[#allocation2 + $0x2b] sm:$0xff] }
 0x3ef   :  { %v593_v62 = vmax.f32 %v4539_v3, %v505_v24 }
 0x3f1   :  { %v4926_v21 = vmax.f32 %v563_v48, %v593_v62  ;;  %1086 = vmatmul.f32.gmra.mxu0 %v733_v12 }
 0x3f3   :  { %v653_v39 = vmax.f32 %v4926_v21, 0.0 }
 0x3f4   :  { %v747_v56 = vld [vmem:[#allocation2 + $0x83] sm:$0xff] }
 0x3f5   :  { %v777_v9 = vld [vmem:[#allocation2 + $0x84] sm:$0xff]  ;;  %717 = vst [vmem:[#allocation2 + $0x90] sm:$0xff] %v653_v39  ;;  %1128 = vmatmul.f32.gmra.mxu1 %v747_v56 }
 0x3f6   :  { %1235 = vmatmul.f32.vlgmr.msra.gmra.mxu3 %v777_v9  ;;  %1508 = vmatmul.f32.vlgmr.msrb.gmra.mxu2 %v637_v43  ;;  %v508_v19 = vpop.f32.mrf.mxu0  ;;  %v7804_v56 = vld [vmem:[#allocation6_spill] sm:$0xff] }
 0x3f7   :  { %v594_v3 = vmax.f32 %v4544_v10, %v508_v19  ;;  %v565_v10 = vmax.f32 %v7798_v2, %v4399_v35  ;;  %v7805_v19 = vld [vmem:[#allocation29_spill] sm:$0xff] }
 0x3f9   :  { %v4938_v27 = vmax.f32 %v564_v25, %v594_v3  ;;  %1089 = vmatmul.f32.gmra.mxu0 %v734_v52  ;;  %v737_v52 = vld [vmem:[#allocation2 + $0x33] sm:$0xff] }
 0x3fb   :  { %v654_v26 = vmax.f32 %v4938_v27, 0.0 }
 0x3fc   :  { %v748_v41 = vld [vmem:[#allocation2 + $0x8b] sm:$0xff] }
 0x3fd   :  { %v778_v46 = vld [vmem:[#allocation2 + $0x8c] sm:$0xff]  ;;  %718 = vst [vmem:[#allocation2 + $0x98] sm:$0xff] %v654_v26  ;;  %1131 = vmatmul.f32.gmra.mxu1 %v748_v41 }
 0x3fe   :  { %1238 = vmatmul.f32.gmra.mxu3 %v778_v46  ;;  %1511 = vmatmul.f32.gmra.mxu2 %v638_v6  ;;  %v511_v59 = vpop.f32.mrf.mxu0  ;;  %v7801_v6 = vld [vmem:[#allocation5_spill] sm:$0xff] }
 0x3ff   :  { %v595_v43 = vmax.f32 %v7799_v29, %v511_v59  ;;  %v566_v5 = vmax.f32 %v7801_v6, %v7800_v28 }
 0x400   :  { %v4948_v50 = vpop.f32.mrf.mxu2 }
 0x401   :  { %v4950_v33 = vmax.f32 %v565_v10, %v595_v43  ;;  %1092 = vmatmul.f32.gmra.mxu0 %v735_v18  ;;  %v7807_v10 = vld [vmem:[#allocation7_spill] sm:$0xff]  ;;  %v7808_v43 = vld [vmem:[#allocation30_spill] sm:$0xff] }
 0x403   :  { %v655_v13 = vmax.f32 %v4950_v33, 0.0 }
 0x404   :  { %v749_v54 = vld [vmem:[#allocation2 + $0x93] sm:$0xff] }
 0x405   :  { %v779_v16 = vld [vmem:[#allocation2 + $0x94] sm:$0xff]  ;;  %719 = vst [vmem:[#allocation2 + $0xa0] sm:$0xff] %v655_v13  ;;  %1134 = vmatmul.f32.gmra.mxu1 %v749_v54 }
 0x406   :  { %1241 = vmatmul.f32.gmra.mxu3 %v779_v16  ;;  %1514 = vmatmul.f32.gmra.mxu2 %v639_v30  ;;  %v514_v35 = vpop.f32.mrf.mxu0  ;;  %v7803_v30 = vld [vmem:[#allocation17_spill] sm:$0xff] }
 0x407   :  { %v596_v17 = vmax.f32 %v7802_v60, %v514_v35  ;;  %v567_v9 = vmax.f32 %v7804_v56, %v7803_v30  ;;  %v738_v16 = vld [vmem:[#allocation2 + $0x3b] sm:$0xff]  ;;  %v7810_v60 = vld [vmem:[#allocation8_spill] sm:$0xff] }
 0x408   :  { %v4960_v22 = vpop.f32.mrf.mxu2 }
 0x409   :  { %v4962_v24 = vmax.f32 %v566_v5, %v596_v17  ;;  %1095 = vmatmul.f32.gmra.mxu0 %v736_v31  ;;  %v7811_v31 = vld [vmem:[#allocation31_spill] sm:$0xff] }
 0x40b   :  { %v656_v48 = vmax.f32 %v4962_v24, 0.0 }
 0x40c   :  { %v750_v62 = vld [vmem:[#allocation2 + $0x9b] sm:$0xff] }
 0x40d   :  { %v780_v12 = vld [vmem:[#allocation2 + $0x9c] sm:$0xff]  ;;  %720 = vst [vmem:[#allocation2 + $0xa8] sm:$0xff] %v656_v48  ;;  %1137 = vmatmul.f32.gmra.mxu1 %v750_v62 }
 0x40e   :  { %1244 = vmatmul.f32.gmra.mxu3 %v780_v12  ;;  %1517 = vmatmul.f32.gmra.mxu2 %v640_v32  ;;  %v517_v4 = vpop.f32.mrf.mxu0  ;;  %v7806_v32 = vld [vmem:[#allocation18_spill] sm:$0xff] }
 0x40f   :  { %v597_v25 = vmax.f32 %v7805_v19, %v517_v4  ;;  %v568_v29 = vmax.f32 %v7807_v10, %v7806_v32  ;;  %v739_v4 = vld [vmem:[#allocation2 + $0x43] sm:$0xff] }
 0x410   :  { %v4972_v3 = vpop.f32.mrf.mxu2 }
 0x411   :  { %v4974_v41 = vmax.f32 %v567_v9, %v597_v25  ;;  %1098 = vmatmul.f32.gmra.mxu0 %v737_v52  ;;  %v983_v25 = vld [vmem:[%s7740_s2 + $0x1f8] sm:$0xff] }
 0x412   :  { %v7812_v52 = vld [vmem:[#allocation20_spill] sm:$0xff]  ;;  %1385 = vmatpush.msrb.mxu1 %v983_v25 }
 0x413   :  { %v657_v46 = vmax.f32 %v4974_v41, 0.0  ;;  %v799_v41 = vld [vmem:[#allocation2 + $0x45] sm:$0xff] }
 0x414   :  { %v751_v59 = vld [vmem:[#allocation2 + $0xa3] sm:$0xff] }
 0x415   :  { %v781_v2 = vld [vmem:[#allocation2 + $0xa4] sm:$0xff]  ;;  %721 = vst [vmem:[#allocation2 + $0xb0] sm:$0xff] %v657_v46  ;;  %1140 = vmatmul.f32.gmra.mxu1 %v751_v59  ;;  %v7813_v59 = vld [vmem:[#allocation9_spill] sm:$0xff] }
 0x416   :  { %1247 = vmatmul.f32.gmra.mxu3 %v781_v2  ;;  %1520 = vmatmul.f32.gmra.mxu2 %v641_v34  ;;  %v520_v23 = vpop.f32.mrf.mxu0  ;;  %v7809_v34 = vld [vmem:[#allocation19_spill] sm:$0xff]  ;;  %v570_v2 = vmax.f32 %v7813_v59, %v7812_v52 }
 0x417   :  { %v598_v18 = vmax.f32 %v7808_v43, %v520_v23  ;;  %v569_v17 = vmax.f32 %v7810_v60, %v7809_v34  ;;  %v7814_v23 = vld [vmem:[#allocation32_spill] sm:$0xff]  ;;  %v964_v34 = vld [vmem:[%s7740_s2 + $0x160] sm:$0xff] }
 0x418   :  { %v4984_v54 = vpop.f32.mrf.mxu2  ;;  %v980_v60 = vld [vmem:[%s7740_s2 + $0x1e0] sm:$0xff]  ;;  %v978_v52 = vld [vmem:[%s7740_s2 + $0x1d0] sm:$0xff] }
 0x419   :  { %v4986_v35 = vmax.f32 %v568_v29, %v598_v18  ;;  %1101 = vmatmul.f32.gmra.mxu0 %v738_v16  ;;  %v982_v29 = vld [vmem:[%s7740_s2 + $0x1f0] sm:$0xff]  ;;  %v965_v18 = vld [vmem:[%s7740_s2 + $0x168] sm:$0xff] }
 0x41a   :  { %1386 = vmatpush.msrb.mxu1 %v982_v29  ;;  %v981_v16 = vld [vmem:[%s7740_s2 + $0x1e8] sm:$0xff]  ;;  %v960_v29 = vld [vmem:[%s7740_s2 + $0x140] sm:$0xff] }
 0x41b   :  { %v658_v28 = vmax.f32 %v4986_v35, 0.0 }
 0x41c   :  { %v752_v6 = vld [vmem:[#allocation2 + $0xab] sm:$0xff]  ;;  %1387 = vmatpush.msrb.mxu1 %v981_v16 }
 0x41d   :  { %v782_v5 = vld [vmem:[#allocation2 + $0xac] sm:$0xff]  ;;  %722 = vst [vmem:[#allocation2 + $0xb8] sm:$0xff] %v658_v28  ;;  %1143 = vmatmul.f32.gmra.mxu1 %v752_v6 }
 0x41e   :  { %1250 = vmatmul.f32.gmra.mxu3 %v782_v5  ;;  %1523 = vmatmul.f32.gmra.mxu2 %v642_v63  ;;  %v523_v37 = vpop.f32.mrf.mxu0  ;;  %v967_v63 = vld [vmem:[%s7740_s2 + $0x178] sm:$0xff] }
 0x41f   :  { %v599_v62 = vmax.f32 %v7811_v31, %v523_v37  ;;  %1278 = vmatpush.msrb.mxu3 %v967_v63  ;;  %v963_v31 = vld [vmem:[%s7740_s2 + $0x158] sm:$0xff]  ;;  %1388 = vmatpush.msrb.mxu1 %v980_v60 }
 0x420   :  { %v4996_v12 = vpop.f32.mrf.mxu2 }
 0x421   :  { %v4998_v30 = vmax.f32 %v569_v17, %v599_v62  ;;  %1104 = vmatmul.f32.gmra.mxu0 %v739_v4  ;;  %v979_v62 = vld [vmem:[%s7740_s2 + $0x1d8] sm:$0xff] }
 0x422   :  { %v7815_v4 = vld [vmem:[#allocation21_spill] sm:$0xff]  ;;  %1389 = vmatpush.msrb.mxu1 %v979_v62 }
 0x423   :  { %v659_v56 = vmax.f32 %v4998_v30, 0.0  ;;  %v975_v62 = vld [vmem:[%s7740_s2 + $0x1b8] sm:$0xff]  ;;  %v800_v30 = vld [vmem:[#allocation2 + $0x4d] sm:$0xff] }
 0x424   :  { %v753_v9 = vld [vmem:[#allocation2 + $0xb3] sm:$0xff]  ;;  %1390 = vmatpush.msrb.mxu1 %v978_v52  ;;  %v973_v52 = vld [vmem:[%s7740_s2 + $0x1a8] sm:$0xff] }
 0x425   :  { %v783_v19 = vld [vmem:[#allocation2 + $0xb4] sm:$0xff]  ;;  %723 = vst [vmem:[#allocation2 + $0xc0] sm:$0xff] %v659_v56  ;;  %1146 = vmatmul.f32.gmra.mxu1 %v753_v9  ;;  %v7816_v9 = vld [vmem:[#allocation10_spill] sm:$0xff] }
 0x426   :  { %1253 = vmatmul.f32.gmra.mxu3 %v783_v19  ;;  %1526 = vmatmul.f32.gmra.mxu2 %v643_v51  ;;  %v526_v7 = vpop.f32.mrf.mxu0  ;;  %v966_v51 = vld [vmem:[%s7740_s2 + $0x170] sm:$0xff]  ;;  %v571_v19 = vmax.f32 %v7816_v9, %v7815_v4 }
 0x427   :  { %v600_v32 = vmax.f32 %v7814_v23, %v526_v7  ;;  %1279 = vmatpush.msrb.mxu3 %v966_v51  ;;  %v7817_v7 = vld [vmem:[#allocation33_spill] sm:$0xff] }
 0x428   :  { %v5014_v10 = vpop.f32.mrf.mxu2 }
 0x429   :  { %v5022_v43 = vmax.f32 %v570_v2, %v600_v32  ;;  %1107 = vmatmul.f32.gmra.mxu0 %v740_v45  ;;  %1280 = vmatpush.msrb.mxu3 %v965_v18  ;;  %v961_v2 = vld [vmem:[%s7740_s2 + $0x148] sm:$0xff]  ;;  %v976_v18 = vld [vmem:[%s7740_s2 + $0x1c0] sm:$0xff] }
 0x42a   :  { %v977_v32 = vld [vmem:[%s7740_s2 + $0x1c8] sm:$0xff] }
 0x42b   :  { %v660_v6 = vmax.f32 %v5022_v43, 0.0  ;;  %1281 = vmatpush.msrb.mxu3 %v964_v34  ;;  %1391 = vmatpush.msrb.mxu1 %v977_v32  ;;  %v7819_v34 = vld [vmem:[#allocation11_spill] sm:$0xff] }
 0x42c   :  { %v754_v5 = vld [vmem:[#allocation2 + $0xbb] sm:$0xff]  ;;  %v1041_v43 = vld [vmem:[%s7740_s2 + $0x3c8] sm:$0xff] }
 0x42d   :  { %v784_v37 = vld [vmem:[#allocation2 + $0xbc] sm:$0xff]  ;;  %724 = vst [vmem:[#allocation2 + $0xc8] sm:$0xff] %v660_v6  ;;  %1149 = vmatmul.f32.gmra.mxu1 %v754_v5  ;;  %1282 = vmatpush.msrb.mxu3 %v963_v31 }
 0x42e   :  { %1256 = vmatmul.f32.gmra.mxu3 %v784_v37  ;;  %1529 = vmatmul.f32.gmra.mxu2 %v644_v36  ;;  %v529_v17 = vpop.f32.mrf.mxu0  ;;  %v962_v36 = vld [vmem:[%s7740_s2 + $0x150] sm:$0xff]  ;;  %v959_v5 = vld [vmem:[%s7740_s2 + $0x138] sm:$0xff]  ;;  %v7818_v37 = vld [vmem:[#allocation22_spill] sm:$0xff] }
 0x42f   :  { %v601_v63 = vmax.f32 %v7817_v7, %v529_v17  ;;  %1283 = vmatpush.msrb.mxu3 %v962_v36  ;;  %v572_v60 = vmax.f32 %v7819_v34, %v7818_v37  ;;  %v7820_v17 = vld [vmem:[#allocation34_spill] sm:$0xff]  ;;  %1392 = vmatpush.msrb.mxu1 %v976_v18  ;;  %v955_v37 = vld [vmem:[%s7740_s2 + $0x118] sm:$0xff] }
 0x430   :  { %v5050_v25 = vpop.f32.mrf.mxu2 }
 0x431   :  { %v5058_v59 = vmax.f32 %v571_v19, %v601_v63  ;;  %1110 = vmatmul.f32.gmra.mxu0 %v741_v40  ;;  %1284 = vmatpush.msrb.mxu3 %v961_v2  ;;  %v974_v19 = vld [vmem:[%s7740_s2 + $0x1b0] sm:$0xff]  ;;  %v957_v63 = vld [vmem:[%s7740_s2 + $0x128] sm:$0xff]  ;;  %v956_v2 = vld [vmem:[%s7740_s2 + $0x120] sm:$0xff] }
 0x432   :  { %1393 = vmatpush.msrb.mxu1 %v975_v62  ;;  %v970_v62 = vld [vmem:[%s7740_s2 + $0x190] sm:$0xff] }
 0x433   :  { %v661_v23 = vmax.f32 %v5058_v59, 0.0  ;;  %1285 = vmatpush.msrb.mxu3 %v960_v29  ;;  %v7822_v29 = vld [vmem:[#allocation12_spill] sm:$0xff]  ;;  %v832_v59 = vld [vmem:[#allocation2 + $0x67] sm:$0xff] }
 0x434   :  { %v755_v45 = vld [vmem:[#allocation2 + $0xc3] sm:$0xff]  ;;  %1394 = vmatpush.msrb.mxu1 %v974_v19 }
 0x435   :  { %v785_v51 = vld [vmem:[#allocation2 + $0xc4] sm:$0xff]  ;;  %725 = vst [vmem:[#allocation2 + $0xd0] sm:$0xff] %v661_v23  ;;  %1152 = vmatmul.f32.gmra.mxu1 %v755_v45  ;;  %1286 = vmatpush.msrb.mxu3 %v959_v5 }
 0x436   :  { %1259 = vmatmul.f32.gmra.mxu3 %v785_v51  ;;  %1532 = vmatmul.f32.gmra.mxu2 %v645_v44  ;;  %v532_v16 = vpop.f32.mrf.mxu0  ;;  %v958_v44 = vld [vmem:[%s7740_s2 + $0x130] sm:$0xff]  ;;  %v972_v45 = vld [vmem:[%s7740_s2 + $0x1a0] sm:$0xff]  ;;  %v953_v19 = vld [vmem:[%s7740_s2 + $0x108] sm:$0xff] }
 0x437   :  { %v602_v31 = vmax.f32 %v7820_v17, %v532_v16  ;;  %1287 = vmatpush.msrb.mxu3 %v958_v44  ;;  %v7821_v51 = vld [vmem:[#allocation23_spill] sm:$0xff]  ;;  %1395 = vmatpush.msrb.mxu1 %v973_v52  ;;  %v7824_v52 = vld [vmem:[#allocation24_spill] sm:$0xff] }
 0x438   :  { %v5086_v4 = vpop.f32.mrf.mxu2  ;;  %v573_v18 = vmax.f32 %v7822_v29, %v7821_v51  ;;  %v7823_v16 = vld [vmem:[#allocation35_spill] sm:$0xff]  ;;  %v968_v29 = vld [vmem:[%s7740_s2 + $0x180] sm:$0xff] }
 0x439   :  { %v5091_v9 = vmax.f32 %v572_v60, %v602_v31  ;;  %1113 = vmatmul.f32.gmra.mxu0 %v742_v38  ;;  %1288 = vmatpush.msrb.mxu3 %v957_v63  ;;  %v954_v17 = vld [vmem:[%s7740_s2 + $0x110] sm:$0xff]  ;;  %v969_v63 = vld [vmem:[%s7740_s2 + $0x188] sm:$0xff] }
 0x43a   :  { %1396 = vmatpush.msrb.mxu1 %v972_v45  ;;  %v7826_v45 = vld [vmem:[#allocation36_spill] sm:$0xff] }
 0x43b   :  { %v662_v7 = vmax.f32 %v5091_v9, 0.0  ;;  %1289 = vmatpush.msrb.mxu3 %v956_v2  ;;  %v7825_v2 = vld [vmem:[#allocation13_spill] sm:$0xff]  ;;  %v833_v9 = vld [vmem:[#allocation2 + $0x6f] sm:$0xff] }
 0x43c   :  { %v756_v40 = vld [vmem:[#allocation2 + $0xcb] sm:$0xff] }
 0x43d   :  { %v786_v36 = vld [vmem:[#allocation2 + $0xcc] sm:$0xff]  ;;  %726 = vst [vmem:[#allocation2 + $0xd8] sm:$0xff] %v662_v7  ;;  %1155 = vmatmul.f32.gmra.mxu1 %v756_v40  ;;  %1290 = vmatpush.msrb.mxu3 %v955_v37 }
 0x43e   :  { %1262 = vmatmul.f32.gmra.mxu3 %v786_v36  ;;  %1535 = vmatmul.f32.gmra.mxu2 %v646_v61  ;;  %v535_v32 = vpop.f32.mrf.mxu0  ;;  %v971_v61 = vld [vmem:[%s7740_s2 + $0x198] sm:$0xff]  ;;  %v952_v36 = vld [vmem:[%s7740_s2 + $0x100] sm:$0xff] }
 0x43f   :  { %v603_v5 = vmax.f32 %v7823_v16, %v535_v32  ;;  %1397 = vmatpush.msrb.mxu1 %v971_v61  ;;  %1291 = vmatpush.msrb.mxu3 %v954_v17  ;;  %v574_v32 = vmax.f32 %v7825_v2, %v7824_v52  ;;  %v7827_v61 = vld [vmem:[#allocation25_spill] sm:$0xff]  ;;  %v7828_v17 = vld [vmem:[#allocation14_spill] sm:$0xff]  ;;  %v7831_v2 = vld [vmem:[#allocation15_spill] sm:$0xff] }
 0x440   :  { %v5119_v34 = vpop.f32.mrf.mxu2 }
 0x441   :  { %v5124_v60 = vmax.f32 %v573_v18, %v603_v5  ;;  %1116 = vmatmul.f32.gmra.mxu0 %v743_v20  ;;  %1398 = vmatpush.msrb.mxu1 %v970_v62  ;;  %v575_v62 = vmax.f32 %v7828_v17, %v7827_v61  ;;  %v791_v61 = vld [vmem:[#allocation2 + $0x5] sm:$0xff]  ;;  %v821_v17 = vld [vmem:[#allocation2 + $0xf] sm:$0xff] }
 0x442   :  { %1292 = vmatpush.msrb.mxu3 %v953_v19 }
 0x443   :  { %v663_v31 = vmax.f32 %v5124_v60, 0.0  ;;  %1399 = vmatpush.msrb.mxu1 %v969_v63  ;;  %v804_v60 = vld [vmem:[#allocation2 + $0x6d] sm:$0xff] }
 0x444   :  { %v757_v38 = vld [vmem:[#allocation2 + $0xd3] sm:$0xff]  ;;  %1293 = vmatpush.msrb.mxu3 %v952_v36 }
 0x445   :  { %v787_v44 = vld [vmem:[#allocation2 + $0xd4] sm:$0xff]  ;;  %727 = vst [vmem:[#allocation2 + $0xe0] sm:$0xff] %v663_v31  ;;  %1158 = vmatmul.f32.gmra.mxu1 %v757_v38 }
 0x446   :  { %1265 = vmatmul.f32.gmra.mxu3 %v787_v44  ;;  %1538 = vmatmul.f32.gmra.mxu2 %v647_v1  ;;  %v538_v40 = vpop.f32.mrf.mxu0  ;;  %v7829_v38 = vld [vmem:[#allocation37_spill] sm:$0xff] }
 0x447   :  { %v604_v51 = vmax.f32 %v7826_v45, %v538_v40  ;;  %1400 = vmatpush.msrb.mxu1 %v968_v29  ;;  %v7832_v45 = vld [vmem:[#allocation38_spill] sm:$0xff] }
 0x448   :  { %v5152_v18 = vpop.f32.mrf.mxu2 }
 0x449   :  { %v5154_v1 = vmax.f32 %v574_v32, %v604_v51  ;;  %1119 = vmatmul.f32.gmra.mxu0 %v744_v55 }
 0x44b   :  { %v664_v16 = vmax.f32 %v5154_v1, 0.0 }
 0x44c   :  { %v758_v5 = vld [vmem:[#allocation2 + $0xdb] sm:$0xff] }
 0x44d   :  { %v788_v37 = vld [vmem:[#allocation2 + $0xdc] sm:$0xff]  ;;  %728 = vst [vmem:[#allocation2 + $0xe8] sm:$0xff] %v664_v16  ;;  %1161 = vmatmul.f32.gmra.mxu1 %v758_v5 }
 0x44e   :  { %1268 = vmatmul.f32.gmra.mxu3 %v788_v37  ;;  %1541 = vmatmul.f32.gmra.mxu2 %v648_v47  ;;  %v541_v20 = vpop.f32.mrf.mxu0  ;;  %v7830_v47 = vld [vmem:[#allocation26_spill] sm:$0xff] }
 0x44f   :  { %v605_v44 = vmax.f32 %v7829_v38, %v541_v20  ;;  %v576_v32 = vmax.f32 %v7831_v2, %v7830_v47  ;;  %v793_v47 = vld [vmem:[#allocation2 + $0x15] sm:$0xff]  ;;  %v823_v2 = vld [vmem:[#allocation2 + $0x1f] sm:$0xff] }
 0x450   :  { %v5164_v19 = vpop.f32.mrf.mxu2 }
 0x451   :  { %v5166_v63 = vmax.f32 %v575_v62, %v605_v44 }
 0x453   :  { %v665_v40 = vmax.f32 %v5166_v63, 0.0  ;;  %v807_v63 = vld [vmem:[#allocation2 + $0x85] sm:$0xff] }
 0x454   :  { %v759_v36 = vld [vmem:[#allocation2 + $0xe3] sm:$0xff] }
 0x455   :  { %v789_v52 = vld [vmem:[#allocation2 + $0xe4] sm:$0xff]  ;;  %729 = vst [vmem:[#allocation2 + $0xf0] sm:$0xff] %v665_v40  ;;  %1164 = vmatmul.f32.gmra.mxu1 %v759_v36  ;;  %v792_v36 = vld [vmem:[#allocation2 + $0xd] sm:$0xff] }
 0x456   :  { %1271 = vmatmul.f32.gmra.mxu3 %v789_v52  ;;  %1544 = vmatmul.f32.gmra.mxu2 %v649_v49  ;;  %v544_v53 = vpop.f32.mrf.mxu0  ;;  %v822_v52 = vld [vmem:[#allocation2 + $0x17] sm:$0xff] }
 0x457   :  { %v606_v51 = vmax.f32 %v7832_v45, %v544_v53 }
 0x458   :  { %v5176_v29 = vpop.f32.mrf.mxu2 }
 0x459   :  { %v5178_v55 = vmax.f32 %v576_v32, %v606_v51  ;;  %v794_v51 = vld [vmem:[#allocation2 + $0x1d] sm:$0xff] }
 0x45b   :  { %v666_v5 = vmax.f32 %v5178_v55, 0.0 }
 0x45c   :  { %v760_v37 = vld [vmem:[#allocation2 + $0xeb] sm:$0xff] }
 0x45d   :  { %v790_v20 = vld [vmem:[#allocation2 + $0xec] sm:$0xff]  ;;  %730 = vst [vmem:[#allocation2 + $0xf8] sm:$0xff] %v666_v5  ;;  %1167 = vmatmul.f32.gmra.mxu1 %v760_v37 }
 0x45e   :  { %1274 = vmatmul.f32.gmra.mxu3 %v790_v20  ;;  %1547 = vmatmul.f32.gmra.mxu2 %v650_v8 }
 0x460   :  { %v5185_v57 = vpop.f32.mrf.mxu2 }
 0x462   :  { %v1123_v49 = vpop.f32.mrf.mxu1 }
 0x465   :  { %1401 = vmatmul.f32.vlgmr.msrb.gmra.mxu1 %v821_v17 }
 0x466   :  { %1294 = vmatmul.f32.vlgmr.msrb.gmra.mxu3 %v791_v61  ;;  %1550 = vmatmul.f32.gmra.mxu2 %v651_v14 }
 0x469   :  { %v1230_v62 = vpop.f32.mrf.mxu2 }
 0x46a   :  { %v5189_v38 = vadd.f32 %v1230_v62, %v1123_v49  ;;  %v1126_v44 = vpop.f32.mrf.mxu1  ;;  %v825_v49 = vld [vmem:[#allocation2 + $0x2f] sm:$0xff] }
 0x46d   :  { %1404 = vmatmul.f32.gmra.mxu1 %v822_v52 }
 0x46e   :  { %1297 = vmatmul.f32.gmra.mxu3 %v792_v36  ;;  %1553 = vmatmul.f32.gmra.mxu2 %v652_v42 }
 0x471   :  { %v1233_v15 = vpop.f32.mrf.mxu2 }
 0x472   :  { %v5193_v8 = vadd.f32 %v1233_v15, %v1126_v44  ;;  %v1129_v53 = vpop.f32.mrf.mxu1  ;;  %v826_v44 = vld [vmem:[#allocation2 + $0x37] sm:$0xff] }
 0x475   :  { %1407 = vmatmul.f32.gmra.mxu1 %v823_v2 }
 0x476   :  { %1300 = vmatmul.f32.gmra.mxu3 %v793_v47  ;;  %1556 = vmatmul.f32.gmra.mxu2 %v653_v39  ;;  %v795_v39 = vld [vmem:[#allocation2 + $0x25] sm:$0xff] }
 0x479   :  { %v1236_v58 = vpop.f32.mrf.mxu3  ;;  %v5199_v32 = vpop.f32.mrf.mxu2 }
 0x47a   :  { %v5197_v14 = vadd.f32 %v1236_v58, %v1129_v53  ;;  %v1132_v45 = vpop.f32.mrf.mxu1  ;;  %v827_v53 = vld [vmem:[#allocation2 + $0x3f] sm:$0xff] }
 0x47d   :  { %1410 = vmatmul.f32.gmra.mxu1 %v824_v11 }
 0x47e   :  { %1303 = vmatmul.f32.gmra.mxu3 %v794_v51  ;;  %1559 = vmatmul.f32.gmra.mxu2 %v654_v26  ;;  %v796_v26 = vld [vmem:[#allocation2 + $0x2d] sm:$0xff] }
 0x481   :  { %v1239_v42 = vpop.f32.mrf.mxu3  ;;  %v5205_v20 = vpop.f32.mrf.mxu2 }
 0x482   :  { %v5203_v37 = vadd.f32 %v1239_v42, %v1132_v45  ;;  %v1135_v21 = vpop.f32.mrf.mxu1  ;;  %v828_v45 = vld [vmem:[#allocation2 + $0x47] sm:$0xff] }
 0x485   :  { %1413 = vmatmul.f32.gmra.mxu1 %v825_v49 }
 0x486   :  { %1306 = vmatmul.f32.gmra.mxu3 %v795_v39  ;;  %1562 = vmatmul.f32.gmra.mxu2 %v655_v13  ;;  %v797_v13 = vld [vmem:[#allocation2 + $0x35] sm:$0xff] }
 0x487   :  { %v1047_v39 = vld [vmem:[%s7740_s2 + $0x3f8] sm:$0xff] }
 0x488   :  { %1813 = vmatpush.msra.mxu2 %v1047_v39  ;;  %v802_v39 = vld [vmem:[#allocation2 + $0x5d] sm:$0xff] }
 0x489   :  { %v1242_v61 = vpop.f32.mrf.mxu3  ;;  %v5211_v62 = vpop.f32.mrf.mxu2 }
 0x48a   :  { %v5209_v17 = vadd.f32 %v1242_v61, %v1135_v21  ;;  %v1138_v27 = vpop.f32.mrf.mxu1 }
 0x48d   :  { %1416 = vmatmul.f32.gmra.mxu1 %v826_v44 }
 0x48e   :  { %1309 = vmatmul.f32.gmra.mxu3 %v796_v26  ;;  %1565 = vmatmul.f32.gmra.mxu2 %v656_v48  ;;  %v798_v48 = vld [vmem:[#allocation2 + $0x3d] sm:$0xff] }
 0x48f   :  { %v1044_v26 = vld [vmem:[%s7740_s2 + $0x3e0] sm:$0xff] }
 0x491   :  { %v1245_v36 = vpop.f32.mrf.mxu3  ;;  %v5217_v15 = vpop.f32.mrf.mxu2 }
 0x492   :  { %v5215_v52 = vadd.f32 %v1245_v36, %v1138_v27  ;;  %v1141_v33 = vpop.f32.mrf.mxu1  ;;  %v1045_v27 = vld [vmem:[%s7740_s2 + $0x3e8] sm:$0xff]  ;;  %v1043_v36 = vld [vmem:[%s7740_s2 + $0x3d8] sm:$0xff] }
 0x495   :  { %1419 = vmatmul.f32.gmra.mxu1 %v827_v53 }
 0x496   :  { %1312 = vmatmul.f32.gmra.mxu3 %v797_v13  ;;  %1568 = vmatmul.f32.gmra.mxu2 %v657_v46  ;;  %v829_v46 = vld [vmem:[#allocation2 + $0x4f] sm:$0xff] }
 0x497   :  { %v1042_v13 = vld [vmem:[%s7740_s2 + $0x3d0] sm:$0xff] }
 0x499   :  { %v1248_v47 = vpop.f32.mrf.mxu3  ;;  %v5223_v58 = vpop.f32.mrf.mxu2 }
 0x49a   :  { %v5221_v2 = vadd.f32 %v1248_v47, %v1141_v33  ;;  %v1144_v24 = vpop.f32.mrf.mxu1 }
 0x49d   :  { %1422 = vmatmul.f32.gmra.mxu1 %v828_v45 }
 0x49e   :  { %1315 = vmatmul.f32.gmra.mxu3 %v798_v48  ;;  %1571 = vmatmul.f32.gmra.mxu2 %v658_v28  ;;  %v1046_v28 = vld [vmem:[%s7740_s2 + $0x3f0] sm:$0xff]  ;;  %v831_v48 = vld [vmem:[#allocation2 + $0x5f] sm:$0xff] }
 0x49f   :  { %1814 = vmatpush.msra.mxu2 %v1046_v28 }
 0x4a1   :  { %v1251_v51 = vpop.f32.mrf.mxu3  ;;  %v5229_v21 = vpop.f32.mrf.mxu2  ;;  %1815 = vmatpush.msra.mxu2 %v1045_v27 }
 0x4a2   :  { %v5227_v11 = vadd.f32 %v1251_v51, %v1144_v24  ;;  %v1147_v42 = vpop.f32.mrf.mxu1  ;;  %v801_v24 = vld [vmem:[#allocation2 + $0x55] sm:$0xff] }
 0x4a3   :  { %1816 = vmatpush.msra.mxu2 %v1044_v26  ;;  %v803_v26 = vld [vmem:[#allocation2 + $0x65] sm:$0xff] }
 0x4a5   :  { %1425 = vmatmul.f32.gmra.mxu1 %v829_v46  ;;  %1817 = vmatpush.msra.mxu2 %v1043_v36  ;;  %v1034_v36 = vld [vmem:[%s7740_s2 + $0x390] sm:$0xff] }
 0x4a6   :  { %1318 = vmatmul.f32.gmra.mxu3 %v799_v41  ;;  %1574 = vmatmul.f32.gmra.mxu2 %v659_v56  ;;  %v830_v56 = vld [vmem:[#allocation2 + $0x57] sm:$0xff] }
 0x4a7   :  { %1818 = vmatpush.msra.mxu2 %v1042_v13  ;;  %v1033_v13 = vld [vmem:[%s7740_s2 + $0x388] sm:$0xff] }
 0x4a9   :  { %v1254_v35 = vpop.f32.mrf.mxu3  ;;  %v5247_v44 = vpop.f32.mrf.mxu2  ;;  %1819 = vmatpush.msra.mxu2 %v1041_v43 }
 0x4aa   :  { %v5239_v49 = vadd.f32 %v1254_v35, %v1147_v42  ;;  %v1150_v61 = vpop.f32.mrf.mxu1  ;;  %v1039_v42 = vld [vmem:[%s7740_s2 + $0x3b8] sm:$0xff]  ;;  %v1037_v35 = vld [vmem:[%s7740_s2 + $0x3a8] sm:$0xff] }
 0x4ad   :  { %1428 = vmatmul.f32.gmra.mxu1 %v830_v56 }
 0x4ae   :  { %1321 = vmatmul.f32.gmra.mxu3 %v800_v30  ;;  %1577 = vmatmul.f32.gmra.mxu2 %v660_v6  ;;  %v1040_v6 = vld [vmem:[%s7740_s2 + $0x3c0] sm:$0xff] }
 0x4af   :  { %1820 = vmatpush.msra.mxu2 %v1040_v6  ;;  %v1032_v6 = vld [vmem:[%s7740_s2 + $0x380] sm:$0xff] }
 0x4b1   :  { %v1257_v33 = vpop.f32.mrf.mxu3  ;;  %v5267_v45 = vpop.f32.mrf.mxu2  ;;  %1821 = vmatpush.msra.mxu2 %v1039_v42 }
 0x4b2   :  { %v5257_v53 = vadd.f32 %v1257_v33, %v1150_v61  ;;  %v1153_v47 = vpop.f32.mrf.mxu1  ;;  %v1036_v61 = vld [vmem:[%s7740_s2 + $0x3a0] sm:$0xff] }
 0x4b5   :  { %1431 = vmatmul.f32.gmra.mxu1 %v831_v48 }
 0x4b6   :  { %1324 = vmatmul.f32.gmra.mxu3 %v801_v24  ;;  %1580 = vmatmul.f32.gmra.mxu2 %v661_v23  ;;  %v1038_v23 = vld [vmem:[%s7740_s2 + $0x3b0] sm:$0xff]  ;;  %v1081_v24 = vpop.f32.mrf.mxu0 }
 0x4b7   :  { %1822 = vmatpush.msra.mxu2 %v1038_v23  ;;  %v835_v23 = vld [vmem:[#allocation2 + $0x7f] sm:$0xff] }
 0x4b9   :  { %v1260_v51 = vpop.f32.mrf.mxu3  ;;  %1823 = vmatpush.msra.mxu2 %v1037_v35  ;;  %v5287_v30 = vpop.f32.mrf.mxu2 }
 0x4ba   :  { %v5272_v41 = vadd.f32 %v1260_v51, %v1153_v47  ;;  %v1156_v46 = vpop.f32.mrf.mxu1 }
 0x4bb   :  { %1824 = vmatpush.msra.mxu2 %v1036_v61 }
 0x4bd   :  { %1434 = vmatmul.f32.gmra.mxu1 %v832_v59  ;;  %v805_v59 = vld [vmem:[#allocation2 + $0x75] sm:$0xff] }
 0x4be   :  { %1327 = vmatmul.f32.gmra.mxu3 %v802_v39  ;;  %1583 = vmatmul.f32.gmra.mxu2 %v662_v7  ;;  %v1035_v7 = vld [vmem:[%s7740_s2 + $0x398] sm:$0xff]  ;;  %v1084_v39 = vpop.f32.mrf.mxu0 }
 0x4bf   :  { %1825 = vmatpush.msra.mxu2 %v1035_v7 }
 0x4c1   :  { %v1263_v28 = vpop.f32.mrf.mxu3  ;;  %1826 = vmatpush.msra.mxu2 %v1034_v36  ;;  %v5302_v43 = vpop.f32.mrf.mxu2 }
 0x4c2   :  { %v5285_v27 = vadd.f32 %v1263_v28, %v1156_v46  ;;  %v1159_v56 = vpop.f32.mrf.mxu1 }
 0x4c3   :  { %1827 = vmatpush.msra.mxu2 %v1033_v13  ;;  %v1189_v13 = vadd.f32 %v4933_v0, %v1081_v24  ;;  %v1192_v0 = vadd.f32 %v4948_v50, %v1084_v39 }
 0x4c5   :  { %1437 = vmatmul.f32.gmra.mxu1 %v833_v9  ;;  %1828 = vmatpush.msra.mxu2 %v1032_v6 }
 0x4c6   :  { %1330 = vmatmul.f32.gmra.mxu3 %v803_v26  ;;  %1586 = vmatmul.f32.gmra.mxu2 %v663_v31  ;;  %v834_v31 = vld [vmem:[#allocation2 + $0x77] sm:$0xff]  ;;  %v1087_v26 = vpop.f32.mrf.mxu0 }
 0x4c9   :  { %v1266_v33 = vpop.f32.mrf.mxu3  ;;  %v5311_v35 = vpop.f32.mrf.mxu2 }
 0x4ca   :  { %v5300_v47 = vadd.f32 %v1266_v33, %v1159_v56  ;;  %v1162_v48 = vpop.f32.mrf.mxu1  ;;  %v836_v56 = vld [vmem:[#allocation2 + $0x87] sm:$0xff] }
 0x4cd   :  { %1440 = vmatmul.f32.gmra.mxu1 %v834_v31 }
 0x4ce   :  { %1333 = vmatmul.f32.gmra.mxu3 %v804_v60  ;;  %1589 = vmatmul.f32.gmra.mxu2 %v664_v16  ;;  %v806_v16 = vld [vmem:[#allocation2 + $0x7d] sm:$0xff]  ;;  %v1090_v60 = vpop.f32.mrf.mxu0 }
 0x4d1   :  { %v1269_v51 = vpop.f32.mrf.mxu3  ;;  %v5319_v9 = vpop.f32.mrf.mxu2 }
 0x4d2   :  { %v5309_v42 = vadd.f32 %v1269_v51, %v1162_v48  ;;  %v1165_v46 = vpop.f32.mrf.mxu1  ;;  %v3936_v48 = vld [vmem:[#allocation2 + $0x1c] sm:$0xff] }
 0x4d5   :  { %1443 = vmatmul.f32.gmra.mxu1 %v835_v23  ;;  %v3937_v23 = vld [vmem:[#allocation2 + $0x24] sm:$0xff] }
 0x4d6   :  { %1336 = vmatmul.f32.gmra.mxu3 %v805_v59  ;;  %1592 = vmatmul.f32.gmra.mxu2 %v665_v40  ;;  %v837_v40 = vld [vmem:[#allocation2 + $0x8f] sm:$0xff]  ;;  %v838_v59 = vld [vmem:[#allocation2 + $0x97] sm:$0xff] }
 0x4d9   :  { %v1272_v28 = vpop.f32.mrf.mxu3  ;;  %v5324_v51 = vpop.f32.mrf.mxu2 }
 0x4da   :  { %v5315_v61 = vadd.f32 %v1272_v28, %v1165_v46  ;;  %v1168_v1 = vpop.f32.mrf.mxu1  ;;  %v808_v46 = vld [vmem:[#allocation2 + $0x8d] sm:$0xff] }
 0x4dd   :  { %1446 = vmatmul.f32.gmra.mxu1 %v836_v56 }
 0x4de   :  { %1339 = vmatmul.f32.gmra.mxu3 %v806_v16  ;;  %1595 = vmatmul.f32.gmra.mxu2 %v666_v5 }
 0x4e1   :  { %v1275_v7 = vpop.f32.mrf.mxu3 }
 0x4e2   :  { %v5321_v36 = vadd.f32 %v1275_v7, %v1168_v1  ;;  %v1402_v33 = vpop.f32.mrf.mxu1  ;;  %v1093_v1 = vpop.f32.mrf.mxu0 }
 0x4e3   :  { %v5331_v7 = vpop.f32.mrf.mxu2 }
 0x4e5   :  { %1449 = vmatmul.f32.gmra.mxu1 %v837_v40  ;;  %v839_v40 = vld [vmem:[#allocation2 + $0x9f] sm:$0xff] }
 0x4e6   :  { %1342 = vmatmul.f32.gmra.mxu3 %v807_v63  ;;  %1829 = vmatmul.f32.vlgmr.msra.gmra.mxu2 %v3936_v48  ;;  %v809_v63 = vld [vmem:[#allocation2 + $0x95] sm:$0xff] }
 0x4e9   :  { %v1295_v31 = vpop.f32.mrf.mxu3 }
 0x4ea   :  { %v1296_v6 = vadd.f32 %v1295_v31, %v1189_v13  ;;  %v1405_v55 = vpop.f32.mrf.mxu1  ;;  %v1195_v13 = vadd.f32 %v4960_v22, %v1087_v26  ;;  %v1096_v39 = vpop.f32.mrf.mxu0  ;;  %v811_v26 = vld [vmem:[#allocation2 + $0xa5] sm:$0xff] }
 0x4ec   :  { %v5326_v5 = vadd.f32 %v1402_v33, %v1296_v6  ;;  %v3938_v33 = vld [vmem:[#allocation2 + $0x2c] sm:$0xff] }
 0x4ed   :  { %1452 = vmatmul.f32.gmra.mxu1 %v838_v59  ;;  %v840_v59 = vld [vmem:[#allocation2 + $0xa7] sm:$0xff] }
 0x4ee   :  { %1345 = vmatmul.f32.gmra.mxu3 %v808_v46  ;;  %1832 = vmatmul.f32.gmra.mxu2 %v3937_v23  ;;  %v810_v46 = vld [vmem:[#allocation2 + $0x9d] sm:$0xff]  ;;  %v3939_v23 = vld [vmem:[#allocation2 + $0x34] sm:$0xff] }
 0x4f1   :  { %v1298_v24 = vpop.f32.mrf.mxu3 }
 0x4f2   :  { %v1299_v28 = vadd.f32 %v1298_v24, %v1192_v0  ;;  %v1408_v16 = vpop.f32.mrf.mxu1  ;;  %v1198_v0 = vadd.f32 %v4972_v3, %v1090_v60  ;;  %v812_v60 = vld [vmem:[#allocation2 + $0xad] sm:$0xff] }
 0x4f4   :  { %v5329_v56 = vadd.f32 %v1405_v55, %v1299_v28  ;;  %v5336_v55 = vpop.f32.mrf.mxu2 }
 0x4f5   :  { %1455 = vmatmul.f32.gmra.mxu1 %v839_v40  ;;  %v841_v40 = vld [vmem:[#allocation2 + $0xaf] sm:$0xff] }
 0x4f6   :  { %1348 = vmatmul.f32.gmra.mxu3 %v809_v63  ;;  %1835 = vmatmul.f32.gmra.mxu2 %v3938_v33  ;;  %v3940_v33 = vld [vmem:[#allocation2 + $0x3c] sm:$0xff] }
 0x4f9   :  { %v1301_v48 = vpop.f32.mrf.mxu3 }
 0x4fa   :  { %v1302_v31 = vadd.f32 %v1301_v48, %v1195_v13  ;;  %v1411_v6 = vpop.f32.mrf.mxu1  ;;  %v1201_v13 = vadd.f32 %v4984_v54, %v1093_v1 }
 0x4fc   :  { %v5334_v50 = vadd.f32 %v1408_v16, %v1302_v31  ;;  %v1099_v16 = vpop.f32.mrf.mxu0  ;;  %v5342_v48 = vpop.f32.mrf.mxu2 }
 0x4fd   :  { %1458 = vmatmul.f32.gmra.mxu1 %v840_v59 }
 0x4fe   :  { %1351 = vmatmul.f32.gmra.mxu3 %v810_v46  ;;  %1838 = vmatmul.f32.gmra.mxu2 %v3939_v23  ;;  %v842_v23 = vld [vmem:[#allocation2 + $0xb7] sm:$0xff] }
 0x501   :  { %v1304_v24 = vpop.f32.mrf.mxu3 }
 0x502   :  { %v1305_v28 = vadd.f32 %v1304_v24, %v1198_v0  ;;  %v1414_v63 = vpop.f32.mrf.mxu1  ;;  %v1204_v0 = vadd.f32 %v4996_v12, %v1096_v39  ;;  %v1031_v12 = vld [vmem:[%s7740_s2 + $0x378] sm:$0xff]  ;;  %v1207_v39 = vadd.f32 %v5014_v10, %v1099_v16  ;;  %v1013_v10 = vld [vmem:[%s7740_s2 + $0x2e8] sm:$0xff] }
 0x503   :  { %1706 = vmatpush.msra.mxu1 %v1031_v12  ;;  %v1029_v16 = vld [vmem:[%s7740_s2 + $0x368] sm:$0xff]  ;;  %v1011_v12 = vld [vmem:[%s7740_s2 + $0x2d8] sm:$0xff] }
 0x504   :  { %v5339_v22 = vadd.f32 %v1411_v6, %v1305_v28  ;;  %v3941_v6 = vld [vmem:[#allocation2 + $0x44] sm:$0xff]  ;;  %v1102_v24 = vpop.f32.mrf.mxu0 }
 0x505   :  { %1461 = vmatmul.f32.gmra.mxu1 %v841_v40  ;;  %v5347_v40 = vpop.f32.mrf.mxu2 }
 0x506   :  { %1354 = vmatmul.f32.gmra.mxu3 %v811_v26  ;;  %1841 = vmatmul.f32.gmra.mxu2 %v3940_v33  ;;  %v813_v33 = vld [vmem:[#allocation2 + $0xb5] sm:$0xff] }
 0x509   :  { %v1307_v31 = vpop.f32.mrf.mxu3 }
 0x50a   :  { %v1308_v46 = vadd.f32 %v1307_v31, %v1201_v13  ;;  %v1417_v59 = vpop.f32.mrf.mxu1  ;;  %v843_v13 = vld [vmem:[#allocation2 + $0xbf] sm:$0xff] }
 0x50b   :  { %v1015_v31 = vld [vmem:[%s7740_s2 + $0x2f8] sm:$0xff] }
 0x50c   :  { %v5344_v3 = vadd.f32 %v1414_v63, %v1308_v46  ;;  %v3942_v63 = vld [vmem:[#allocation2 + $0x4c] sm:$0xff]  ;;  %1599 = vmatpush.msra.mxu3 %v1015_v31  ;;  %v1028_v31 = vld [vmem:[%s7740_s2 + $0x360] sm:$0xff] }
 0x50d   :  { %1464 = vmatmul.f32.gmra.mxu1 %v842_v23 }
 0x50e   :  { %1357 = vmatmul.f32.gmra.mxu3 %v812_v60  ;;  %1844 = vmatmul.f32.gmra.mxu2 %v3941_v6  ;;  %v1030_v60 = vld [vmem:[%s7740_s2 + $0x370] sm:$0xff]  ;;  %v1105_v6 = vpop.f32.mrf.mxu0 }
 0x50f   :  { %1707 = vmatpush.msra.mxu1 %v1030_v60  ;;  %v1010_v60 = vld [vmem:[%s7740_s2 + $0x2d0] sm:$0xff] }
 0x511   :  { %v1310_v28 = vpop.f32.mrf.mxu3  ;;  %1708 = vmatpush.msra.mxu1 %v1029_v16 }
 0x512   :  { %v1311_v26 = vadd.f32 %v1310_v28, %v1204_v0  ;;  %v1420_v54 = vpop.f32.mrf.mxu1 }
 0x513   :  { %1709 = vmatpush.msra.mxu1 %v1028_v31  ;;  %v5404_v31 = vld [vmem:[#allocation2 + $0xc5] sm:$0xff] }
 0x514   :  { %v5349_v1 = vadd.f32 %v1417_v59, %v1311_v26  ;;  %v1014_v59 = vld [vmem:[%s7740_s2 + $0x2f0] sm:$0xff]  ;;  %v1012_v26 = vld [vmem:[%s7740_s2 + $0x2e0] sm:$0xff]  ;;  %7834 = vst [vmem:[#allocation27_spill] sm:$0xff] %v5404_v31 }
 0x515   :  { %1467 = vmatmul.f32.gmra.mxu1 %v843_v13  ;;  %1600 = vmatpush.msra.mxu3 %v1014_v59  ;;  %v5377_v13 = vld [vmem:[#allocation2 + $0xbd] sm:$0xff] }
 0x516   :  { %1360 = vmatmul.f32.gmra.mxu3 %v813_v33  ;;  %1847 = vmatmul.f32.gmra.mxu2 %v3942_v63  ;;  %v5375_v33 = vpop.f32.mrf.mxu2  ;;  %7833 = vst [vmem:[#allocation4_spill] sm:$0xff] %v5377_v13  ;;  %v844_v63 = vld [vmem:[#allocation2 + $0xc7] sm:$0xff] }
 0x517   :  { %1601 = vmatpush.msra.mxu3 %v1013_v10 }
 0x519   :  { %v1313_v46 = vpop.f32.mrf.mxu3  ;;  %1602 = vmatpush.msra.mxu3 %v1012_v26  ;;  %v1009_v26 = vld [vmem:[%s7740_s2 + $0x2c8] sm:$0xff] }
 0x51a   :  { %v1314_v23 = vadd.f32 %v1313_v46, %v1207_v39  ;;  %v1423_v0 = vpop.f32.mrf.mxu1  ;;  %v1027_v39 = vld [vmem:[%s7740_s2 + $0x358] sm:$0xff]  ;;  %v1210_v46 = vadd.f32 %v5050_v25, %v1102_v24  ;;  %v1025_v24 = vld [vmem:[%s7740_s2 + $0x348] sm:$0xff] }
 0x51b   :  { %1603 = vmatpush.msra.mxu3 %v1011_v12  ;;  %1710 = vmatpush.msra.mxu1 %v1027_v39  ;;  %v1008_v12 = vld [vmem:[%s7740_s2 + $0x2c0] sm:$0xff] }
 0x51c   :  { %v5370_v28 = vadd.f32 %v1420_v54, %v1314_v23  ;;  %v3943_v54 = vld [vmem:[#allocation2 + $0x54] sm:$0xff] }
 0x51d   :  { %1470 = vmatmul.f32.gmra.mxu1 %v844_v63  ;;  %v1026_v23 = vld [vmem:[%s7740_s2 + $0x350] sm:$0xff]  ;;  %1604 = vmatpush.msra.mxu3 %v1010_v60  ;;  %v1108_v63 = vpop.f32.mrf.mxu0  ;;  %v1213_v60 = vadd.f32 %v5086_v4, %v1105_v6  ;;  %v1005_v6 = vld [vmem:[%s7740_s2 + $0x2a8] sm:$0xff] }
 0x51e   :  { %1363 = vmatmul.f32.gmra.mxu3 %v5377_v13  ;;  %1850 = vmatmul.f32.gmra.mxu2 %v3943_v54  ;;  %v845_v54 = vld [vmem:[#allocation2 + $0xcf] sm:$0xff]  ;;  %v5413_v39 = vpop.f32.mrf.mxu2  ;;  %v5482_v13 = vld [vmem:[#allocation2 + $0xdd] sm:$0xff] }
 0x51f   :  { %1711 = vmatpush.msra.mxu1 %v1026_v23  ;;  %1605 = vmatpush.msra.mxu3 %v1009_v26  ;;  %v1023_v23 = vld [vmem:[%s7740_s2 + $0x338] sm:$0xff]  ;;  %v1006_v26 = vld [vmem:[%s7740_s2 + $0x2b0] sm:$0xff]  ;;  %7839 = vst [vmem:[#allocation6_spill] sm:$0xff] %v5482_v13 }
 0x521   :  { %v1316_v59 = vpop.f32.mrf.mxu3  ;;  %1712 = vmatpush.msra.mxu1 %v1025_v24  ;;  %1606 = vmatpush.msra.mxu3 %v1008_v12  ;;  %v1022_v24 = vld [vmem:[%s7740_s2 + $0x330] sm:$0xff] }
 0x522   :  { %v1317_v10 = vadd.f32 %v1316_v59, %v1210_v46  ;;  %v1426_v16 = vpop.f32.mrf.mxu1  ;;  %v3944_v46 = vld [vmem:[#allocation2 + $0x5c] sm:$0xff]  ;;  %v5433_v12 = vld [vmem:[#allocation2 + $0xcd] sm:$0xff] }
 0x523   :  { %v1007_v59 = vld [vmem:[%s7740_s2 + $0x2b8] sm:$0xff]  ;;  %7835 = vst [vmem:[#allocation16_spill] sm:$0xff] %v5433_v12 }
 0x524   :  { %v5399_v25 = vadd.f32 %v1423_v0, %v1317_v10  ;;  %v1024_v0 = vld [vmem:[%s7740_s2 + $0x340] sm:$0xff]  ;;  %1607 = vmatpush.msra.mxu3 %v1007_v59  ;;  %v1021_v59 = vld [vmem:[%s7740_s2 + $0x328] sm:$0xff] }
 0x525   :  { %1473 = vmatmul.f32.gmra.mxu1 %v845_v54 }
 0x526   :  { %1366 = vmatmul.f32.gmra.mxu3 %v5404_v31  ;;  %1853 = vmatmul.f32.gmra.mxu2 %v3944_v46  ;;  %v847_v31 = vld [vmem:[#allocation2 + $0xdf] sm:$0xff] }
 0x527   :  { %1713 = vmatpush.msra.mxu1 %v1024_v0  ;;  %1608 = vmatpush.msra.mxu3 %v1006_v26  ;;  %v846_v0 = vld [vmem:[#allocation2 + $0xd7] sm:$0xff]  ;;  %v1216_v26 = vadd.f32 %v5119_v34, %v1108_v63 }
 0x529   :  { %v1319_v10 = vpop.f32.mrf.mxu3  ;;  %1714 = vmatpush.msra.mxu1 %v1023_v23  ;;  %v3945_v23 = vld [vmem:[#allocation2 + $0x64] sm:$0xff]  ;;  %1609 = vmatpush.msra.mxu3 %v1005_v6 }
 0x52a   :  { %v1320_v54 = vadd.f32 %v1319_v10, %v1213_v60  ;;  %v1429_v46 = vpop.f32.mrf.mxu1  ;;  %v1111_v60 = vpop.f32.mrf.mxu0  ;;  %v1020_v10 = vld [vmem:[%s7740_s2 + $0x320] sm:$0xff] }
 0x52b   :  { %1715 = vmatpush.msra.mxu1 %v1022_v24  ;;  %v5449_v24 = vpop.f32.mrf.mxu2 }
 0x52c   :  { %v5428_v4 = vadd.f32 %v1426_v16, %v1320_v54  ;;  %v1004_v16 = vld [vmem:[%s7740_s2 + $0x2a0] sm:$0xff]  ;;  %v1003_v54 = vld [vmem:[%s7740_s2 + $0x298] sm:$0xff]  ;;  %7836 = vst [vmem:[#allocation5_spill] sm:$0xff] %v5449_v24 }
 0x52d   :  { %1476 = vmatmul.f32.gmra.mxu1 %v846_v0  ;;  %1610 = vmatpush.msra.mxu3 %v1004_v16  ;;  %v5462_v16 = vld [vmem:[#allocation2 + $0xd5] sm:$0xff]  ;;  %v848_v24 = vld [vmem:[#allocation2 + $0xe7] sm:$0xff] }
 0x52e   :  { %1369 = vmatmul.f32.gmra.mxu3 %v5433_v12  ;;  %1856 = vmatmul.f32.gmra.mxu2 %v3945_v23  ;;  %v1019_v23 = vld [vmem:[%s7740_s2 + $0x318] sm:$0xff]  ;;  %v1002_v12 = vld [vmem:[%s7740_s2 + $0x290] sm:$0xff]  ;;  %7837 = vst [vmem:[#allocation28_spill] sm:$0xff] %v5462_v16 }
 0x52f   :  { %1716 = vmatpush.msra.mxu1 %v1021_v59  ;;  %1611 = vmatpush.msra.mxu3 %v1003_v54  ;;  %v1018_v59 = vld [vmem:[%s7740_s2 + $0x310] sm:$0xff]  ;;  %v1000_v54 = vld [vmem:[%s7740_s2 + $0x280] sm:$0xff] }
 0x531   :  { %v1322_v0 = vpop.f32.mrf.mxu3  ;;  %1717 = vmatpush.msra.mxu1 %v1020_v10  ;;  %1612 = vmatpush.msra.mxu3 %v1002_v12  ;;  %v1001_v10 = vld [vmem:[%s7740_s2 + $0x288] sm:$0xff]  ;;  %v1219_v12 = vadd.f32 %v5152_v18, %v1111_v60  ;;  %v3947_v18 = vld [vmem:[#allocation2 + $0x74] sm:$0xff] }
 0x532   :  { %v1323_v6 = vadd.f32 %v1322_v0, %v1216_v26  ;;  %v1432_v34 = vpop.f32.mrf.mxu1  ;;  %v3946_v26 = vld [vmem:[#allocation2 + $0x6c] sm:$0xff]  ;;  %v1016_v0 = vld [vmem:[%s7740_s2 + $0x300] sm:$0xff] }
 0x533   :  { %1718 = vmatpush.msra.mxu1 %v1019_v23  ;;  %1613 = vmatpush.msra.mxu3 %v1001_v10  ;;  %v1114_v23 = vpop.f32.mrf.mxu0 }
 0x534   :  { %v5457_v63 = vadd.f32 %v1429_v46, %v1323_v6  ;;  %v1017_v46 = vld [vmem:[%s7740_s2 + $0x308] sm:$0xff]  ;;  %v1222_v60 = vadd.f32 %v5164_v19, %v1114_v23 }
 0x535   :  { %1479 = vmatmul.f32.gmra.mxu1 %v847_v31  ;;  %1614 = vmatpush.msra.mxu3 %v1000_v54 }
 0x536   :  { %1372 = vmatmul.f32.gmra.mxu3 %v5462_v16  ;;  %1859 = vmatmul.f32.gmra.mxu2 %v3946_v26  ;;  %v5478_v16 = vpop.f32.mrf.mxu2 }
 0x537   :  { %1719 = vmatpush.msra.mxu1 %v1018_v59  ;;  %7838 = vst [vmem:[#allocation17_spill] sm:$0xff] %v5478_v16 }
 0x539   :  { %v1325_v31 = vpop.f32.mrf.mxu3  ;;  %1720 = vmatpush.msra.mxu1 %v1017_v46 }
 0x53a   :  { %v1326_v6 = vadd.f32 %v1325_v31, %v1219_v12  ;;  %v1435_v26 = vpop.f32.mrf.mxu1 }
 0x53b   :  { %1721 = vmatpush.msra.mxu1 %v1016_v0  ;;  %v1117_v12 = vpop.f32.mrf.mxu0  ;;  %v849_v0 = vld [vmem:[#allocation2 + $0xef] sm:$0xff] }
 0x53c   :  { %v5480_v59 = vadd.f32 %v1432_v34, %v1326_v6  ;;  %v5490_v34 = vld [vmem:[#allocation2 + $0xe5] sm:$0xff]  ;;  %v3948_v6 = vld [vmem:[#allocation2 + $0x7c] sm:$0xff] }
 0x53d   :  { %1482 = vmatmul.f32.gmra.mxu1 %v848_v24  ;;  %7841 = vst [vmem:[#allocation18_spill] sm:$0xff] %v5490_v34  ;;  %v1225_v24 = vadd.f32 %v5176_v29, %v1117_v12 }
 0x53e   :  { %1375 = vmatmul.f32.gmra.mxu3 %v5482_v13  ;;  %1862 = vmatmul.f32.gmra.mxu2 %v3947_v18  ;;  %v5488_v16 = vpop.f32.mrf.mxu2 }
 0x53f   :  { %7840 = vst [vmem:[#allocation29_spill] sm:$0xff] %v5488_v16 }
 0x541   :  { %v1328_v10 = vpop.f32.mrf.mxu3 }
 0x542   :  { %v1329_v46 = vadd.f32 %v1328_v10, %v1222_v60  ;;  %v1438_v54 = vpop.f32.mrf.mxu1 }
 0x543   :  { %v1120_v10 = vpop.f32.mrf.mxu0 }
 0x544   :  { %v5486_v31 = vadd.f32 %v1435_v26, %v1329_v46  ;;  %v5496_v26 = vld [vmem:[#allocation2 + $0xed] sm:$0xff]  ;;  %v850_v46 = vld [vmem:[#allocation2 + $0xf7] sm:$0xff] }
 0x545   :  { %1485 = vmatmul.f32.gmra.mxu1 %v849_v0  ;;  %7842 = vst [vmem:[#allocation7_spill] sm:$0xff] %v5496_v26  ;;  %v1228_v0 = vadd.f32 %v5185_v57, %v1120_v10  ;;  %v882_v57 = vld [vmem:[#allocation2 + $0x19] sm:$0xff]  ;;  %v3952_v10 = vld [vmem:[#allocation2 + $0x23] sm:$0xff] }
 0x546   :  { %1378 = vmatmul.f32.gmra.mxu3 %v5490_v34  ;;  %1865 = vmatmul.f32.gmra.mxu2 %v3948_v6  ;;  %v5499_v13 = vpop.f32.mrf.mxu2  ;;  %v3949_v34 = vld [vmem:[#allocation2 + $0x84] sm:$0xff] }
 0x547   :  { %7843 = vst [vmem:[#allocation30_spill] sm:$0xff] %v5499_v13 }
 0x549   :  { %v1331_v18 = vpop.f32.mrf.mxu3 }
 0x54a   :  { %v1332_v19 = vadd.f32 %v1331_v18, %v1225_v24  ;;  %v1441_v23 = vpop.f32.mrf.mxu1  ;;  %v3950_v18 = vld [vmem:[#allocation2 + $0x1b] sm:$0xff] }
 0x54c   :  { %v5494_v60 = vadd.f32 %v1438_v54, %v1332_v19  ;;  %v881_v54 = vld [vmem:[#allocation2 + $0x11] sm:$0xff] }
 0x54d   :  { %1488 = vmatmul.f32.gmra.mxu1 %v850_v46  ;;  %v3951_v19 = vld [vmem:[#allocation2 + $0x8c] sm:$0xff] }
 0x54e   :  { %1381 = vmatmul.f32.gmra.mxu3 %v5496_v26  ;;  %1868 = vmatmul.f32.gmra.mxu2 %v3949_v34  ;;  %v5504_v16 = vpop.f32.mrf.mxu2 }
 0x551   :  { %v1334_v6 = vpop.f32.mrf.mxu3 }
 0x552   :  { %v1335_v29 = vadd.f32 %v1334_v6, %v1228_v0  ;;  %v1444_v12 = vpop.f32.mrf.mxu1 }
 0x554   :  { %v5502_v24 = vadd.f32 %v1441_v23, %v1335_v29  ;;  %v3953_v23 = vld [vmem:[#allocation2 + $0x94] sm:$0xff] }
 0x555   :  { %1722 = vmatmul.f32.vlgmr.msra.gmra.mxu1 %v3950_v18 }
 0x556   :  { %1615 = vmatmul.f32.vlgmr.msra.gmra.mxu3 %v881_v54  ;;  %1871 = vmatmul.f32.gmra.mxu2 %v3951_v19  ;;  %v5510_v29 = vpop.f32.mrf.mxu2  ;;  %v883_v19 = vld [vmem:[#allocation2 + $0x21] sm:$0xff] }
 0x557   :  { %7844 = vst [vmem:[#allocation19_spill] sm:$0xff] %v5510_v29 }
 0x559   :  { %v1337_v46 = vpop.f32.mrf.mxu3 }
 0x55a   :  { %v1338_v26 = vadd.f32 %v1337_v46, %v5189_v38  ;;  %v1447_v13 = vpop.f32.mrf.mxu1  ;;  %v3954_v38 = vld [vmem:[#allocation2 + $0x2b] sm:$0xff] }
 0x55c   :  { %v5507_v34 = vadd.f32 %v1444_v12, %v1338_v26  ;;  %v3955_v26 = vld [vmem:[#allocation2 + $0x9c] sm:$0xff] }
 0x55d   :  { %1725 = vmatmul.f32.gmra.mxu1 %v3952_v10 }
 0x55e   :  { %1618 = vmatmul.f32.gmra.mxu3 %v882_v57  ;;  %1874 = vmatmul.f32.gmra.mxu2 %v3953_v23  ;;  %v5517_v23 = vpop.f32.mrf.mxu2 }
 0x55f   :  { %7845 = vst [vmem:[#allocation8_spill] sm:$0xff] %v5517_v23 }
 0x561   :  { %v1340_v0 = vpop.f32.mrf.mxu3 }
 0x562   :  { %v1341_v6 = vadd.f32 %v1340_v0, %v5193_v8  ;;  %v1450_v54 = vpop.f32.mrf.mxu1  ;;  %v884_v8 = vld [vmem:[#allocation2 + $0x29] sm:$0xff]  ;;  %v3956_v0 = vld [vmem:[#allocation2 + $0x33] sm:$0xff] }
 0x564   :  { %v5512_v18 = vadd.f32 %v1447_v13, %v1341_v6  ;;  %v3957_v13 = vld [vmem:[#allocation2 + $0xa4] sm:$0xff] }
 0x565   :  { %1728 = vmatmul.f32.gmra.mxu1 %v3954_v38 }
 0x566   :  { %1621 = vmatmul.f32.gmra.mxu3 %v883_v19  ;;  %1877 = vmatmul.f32.gmra.mxu2 %v3955_v26  ;;  %v885_v26 = vld [vmem:[#allocation2 + $0x31] sm:$0xff] }
 0x569   :  { %v1343_v12 = vpop.f32.mrf.mxu3 }
 0x56a   :  { %v1344_v46 = vadd.f32 %v1343_v12, %v5197_v14  ;;  %v1453_v57 = vpop.f32.mrf.mxu1  ;;  %v3958_v14 = vld [vmem:[#allocation2 + $0x3b] sm:$0xff]  ;;  %v3959_v12 = vld [vmem:[#allocation2 + $0xac] sm:$0xff] }
 0x56c   :  { %v5515_v10 = vadd.f32 %v1450_v54, %v1344_v46  ;;  %v5522_v54 = vpop.f32.mrf.mxu2 }
 0x56d   :  { %1731 = vmatmul.f32.gmra.mxu1 %v3956_v0  ;;  %7846 = vst [vmem:[#allocation31_spill] sm:$0xff] %v5522_v54 }
 0x56e   :  { %1624 = vmatmul.f32.gmra.mxu3 %v884_v8  ;;  %1880 = vmatmul.f32.gmra.mxu2 %v3957_v13  ;;  %v886_v13 = vld [vmem:[#allocation2 + $0x39] sm:$0xff] }
 0x571   :  { %v1346_v6 = vpop.f32.mrf.mxu3 }
 0x572   :  { %v1347_v19 = vadd.f32 %v1346_v6, %v5203_v37  ;;  %v1456_v38 = vpop.f32.mrf.mxu1  ;;  %v3960_v37 = vld [vmem:[#allocation2 + $0x43] sm:$0xff] }
 0x574   :  { %v5520_v29 = vadd.f32 %v1453_v57, %v1347_v19  ;;  %v3961_v57 = vld [vmem:[#allocation2 + $0xb4] sm:$0xff]  ;;  %v5527_v6 = vpop.f32.mrf.mxu2 }
 0x575   :  { %1734 = vmatmul.f32.gmra.mxu1 %v3958_v14  ;;  %7847 = vst [vmem:[#allocation20_spill] sm:$0xff] %v5527_v6  ;;  %v888_v6 = vld [vmem:[#allocation2 + $0x49] sm:$0xff] }
 0x576   :  { %1627 = vmatmul.f32.gmra.mxu3 %v885_v26  ;;  %1883 = vmatmul.f32.gmra.mxu2 %v3959_v12  ;;  %v887_v12 = vld [vmem:[#allocation2 + $0x41] sm:$0xff] }
 0x579   :  { %v1349_v46 = vpop.f32.mrf.mxu3 }
 0x57a   :  { %v1350_v8 = vadd.f32 %v1349_v46, %v5209_v17  ;;  %v1459_v0 = vpop.f32.mrf.mxu1  ;;  %v3962_v17 = vld [vmem:[#allocation2 + $0x4b] sm:$0xff] }
 0x57c   :  { %v5525_v23 = vadd.f32 %v1456_v38, %v1350_v8  ;;  %v3963_v38 = vld [vmem:[#allocation2 + $0xbc] sm:$0xff] }
 0x57d   :  { %1737 = vmatmul.f32.gmra.mxu1 %v3960_v37 }
 0x57e   :  { %1630 = vmatmul.f32.gmra.mxu3 %v886_v13  ;;  %1886 = vmatmul.f32.gmra.mxu2 %v3961_v57  ;;  %v5533_v13 = vpop.f32.mrf.mxu2 }
 0x57f   :  { %7848 = vst [vmem:[#allocation9_spill] sm:$0xff] %v5533_v13 }
 0x581   :  { %v1352_v19 = vpop.f32.mrf.mxu3 }
 0x582   :  { %v1353_v26 = vadd.f32 %v1352_v19, %v5215_v52  ;;  %v1462_v14 = vpop.f32.mrf.mxu1  ;;  %v3964_v52 = vld [vmem:[#allocation2 + $0x53] sm:$0xff] }
 0x584   :  { %v5530_v54 = vadd.f32 %v1459_v0, %v1353_v26  ;;  %v3965_v0 = vld [vmem:[#allocation2 + $0xc4] sm:$0xff] }
 0x585   :  { %1740 = vmatmul.f32.gmra.mxu1 %v3962_v17 }
 0x586   :  { %1633 = vmatmul.f32.gmra.mxu3 %v887_v12  ;;  %1889 = vmatmul.f32.gmra.mxu2 %v3963_v38  ;;  %v5540_v38 = vpop.f32.mrf.mxu2 }
 0x587   :  { %7849 = vst [vmem:[#allocation32_spill] sm:$0xff] %v5540_v38 }
 0x589   :  { %v1355_v46 = vpop.f32.mrf.mxu3 }
 0x58a   :  { %v1356_v8 = vadd.f32 %v1355_v46, %v5221_v2  ;;  %v1465_v37 = vpop.f32.mrf.mxu1  ;;  %v889_v2 = vld [vmem:[#allocation2 + $0x51] sm:$0xff]  ;;  %v3966_v46 = vld [vmem:[#allocation2 + $0x5b] sm:$0xff] }
 0x58c   :  { %v5535_v57 = vadd.f32 %v1462_v14, %v1356_v8  ;;  %v3967_v14 = vld [vmem:[#allocation2 + $0xcc] sm:$0xff] }
 0x58d   :  { %1743 = vmatmul.f32.gmra.mxu1 %v3964_v52 }
 0x58e   :  { %1636 = vmatmul.f32.gmra.mxu3 %v888_v6  ;;  %1892 = vmatmul.f32.gmra.mxu2 %v3965_v0  ;;  %v890_v0 = vld [vmem:[#allocation2 + $0x59] sm:$0xff] }
 0x591   :  { %v1358_v19 = vpop.f32.mrf.mxu3 }
 0x592   :  { %v1359_v26 = vadd.f32 %v1358_v19, %v5227_v11  ;;  %v1468_v12 = vpop.f32.mrf.mxu1  ;;  %v3968_v11 = vld [vmem:[#allocation2 + $0x63] sm:$0xff]  ;;  %v3969_v19 = vld [vmem:[#allocation2 + $0xd4] sm:$0xff] }
 0x594   :  { %v5538_v17 = vadd.f32 %v1465_v37, %v1359_v26  ;;  %v5545_v37 = vpop.f32.mrf.mxu2 }
 0x595   :  { %1746 = vmatmul.f32.gmra.mxu1 %v3966_v46  ;;  %7850 = vst [vmem:[#allocation21_spill] sm:$0xff] %v5545_v37 }
 0x596   :  { %1639 = vmatmul.f32.gmra.mxu3 %v889_v2  ;;  %1895 = vmatmul.f32.gmra.mxu2 %v3967_v14  ;;  %v891_v14 = vld [vmem:[#allocation2 + $0x61] sm:$0xff] }
 0x599   :  { %v1361_v8 = vpop.f32.mrf.mxu3 }
 0x59a   :  { %v1362_v6 = vadd.f32 %v1361_v8, %v5239_v49  ;;  %v1471_v52 = vpop.f32.mrf.mxu1  ;;  %v3970_v49 = vld [vmem:[#allocation2 + $0x6b] sm:$0xff] }
 0x59c   :  { %v5543_v13 = vadd.f32 %v1468_v12, %v1362_v6  ;;  %v3971_v12 = vld [vmem:[#allocation2 + $0xdc] sm:$0xff]  ;;  %v5550_v8 = vpop.f32.mrf.mxu2 }
 0x59d   :  { %1749 = vmatmul.f32.gmra.mxu1 %v3968_v11  ;;  %7851 = vst [vmem:[#allocation10_spill] sm:$0xff] %v5550_v8  ;;  %v893_v8 = vld [vmem:[#allocation2 + $0x71] sm:$0xff] }
 0x59e   :  { %1642 = vmatmul.f32.gmra.mxu3 %v890_v0  ;;  %1898 = vmatmul.f32.gmra.mxu2 %v3969_v19  ;;  %v892_v19 = vld [vmem:[#allocation2 + $0x69] sm:$0xff] }
 0x5a1   :  { %v1364_v26 = vpop.f32.mrf.mxu3 }
 0x5a2   :  { %v1365_v2 = vadd.f32 %v1364_v26, %v5257_v53  ;;  %v1474_v46 = vpop.f32.mrf.mxu1  ;;  %v3972_v53 = vld [vmem:[#allocation2 + $0x73] sm:$0xff] }
 0x5a4   :  { %v5548_v38 = vadd.f32 %v1471_v52, %v1365_v2  ;;  %v3973_v52 = vld [vmem:[#allocation2 + $0xe4] sm:$0xff] }
 0x5a5   :  { %1752 = vmatmul.f32.gmra.mxu1 %v3970_v49 }
 0x5a6   :  { %1645 = vmatmul.f32.gmra.mxu3 %v891_v14  ;;  %1901 = vmatmul.f32.gmra.mxu2 %v3971_v12  ;;  %v5556_v14 = vpop.f32.mrf.mxu2 }
 0x5a7   :  { %7852 = vst [vmem:[#allocation33_spill] sm:$0xff] %v5556_v14 }
 0x5a9   :  { %v1367_v6 = vpop.f32.mrf.mxu3 }
 0x5aa   :  { %v1368_v0 = vadd.f32 %v1367_v6, %v5272_v41  ;;  %v1477_v11 = vpop.f32.mrf.mxu1  ;;  %v3974_v41 = vld [vmem:[#allocation2 + $0x7b] sm:$0xff] }
 0x5ac   :  { %v5553_v37 = vadd.f32 %v1474_v46, %v1368_v0  ;;  %v3975_v46 = vld [vmem:[#allocation2 + $0xec] sm:$0xff] }
 0x5ad   :  { %1755 = vmatmul.f32.gmra.mxu1 %v3972_v53 }
 0x5ae   :  { %1648 = vmatmul.f32.gmra.mxu3 %v892_v19  ;;  %1904 = vmatmul.f32.gmra.mxu2 %v3973_v52  ;;  %v5563_v52 = vpop.f32.mrf.mxu2 }
 0x5af   :  { %7853 = vst [vmem:[#allocation22_spill] sm:$0xff] %v5563_v52 }
 0x5b1   :  { %v1370_v26 = vpop.f32.mrf.mxu3 }
 0x5b2   :  { %v1371_v2 = vadd.f32 %v1370_v26, %v5285_v27  ;;  %v1480_v49 = vpop.f32.mrf.mxu1  ;;  %v894_v27 = vld [vmem:[#allocation2 + $0x79] sm:$0xff]  ;;  %v3976_v26 = vld [vmem:[#allocation2 + $0x83] sm:$0xff] }
 0x5b4   :  { %v5558_v12 = vadd.f32 %v1477_v11, %v1371_v2  ;;  %v914_v11 = vld [vmem:[#allocation2 + $0xf4] sm:$0xff] }
 0x5b5   :  { %1758 = vmatmul.f32.gmra.mxu1 %v3974_v41 }
 0x5b6   :  { %1651 = vmatmul.f32.gmra.mxu3 %v893_v8  ;;  %1907 = vmatmul.f32.gmra.mxu2 %v3975_v46  ;;  %v895_v46 = vld [vmem:[#allocation2 + $0x81] sm:$0xff] }
 0x5b9   :  { %v1373_v6 = vpop.f32.mrf.mxu3 }
 0x5ba   :  { %v1374_v0 = vadd.f32 %v1373_v6, %v5300_v47  ;;  %v1483_v19 = vpop.f32.mrf.mxu1  ;;  %v3977_v47 = vld [vmem:[#allocation2 + $0x8b] sm:$0xff]  ;;  %v5568_v6 = vpop.f32.mrf.mxu2 }
 0x5bb   :  { %7854 = vst [vmem:[#allocation11_spill] sm:$0xff] %v5568_v6  ;;  %v3979_v6 = vld [vmem:[#allocation2 + $0x9b] sm:$0xff] }
 0x5bc   :  { %v5561_v53 = vadd.f32 %v1480_v49, %v1374_v0  ;;  %v915_v49 = vld [vmem:[#allocation2 + $0xfc] sm:$0xff] }
 0x5bd   :  { %1761 = vmatmul.f32.gmra.mxu1 %v3976_v26 }
 0x5be   :  { %1654 = vmatmul.f32.gmra.mxu3 %v894_v27  ;;  %1910 = vmatmul.f32.gmra.mxu2 %v914_v11  ;;  %v896_v11 = vld [vmem:[#allocation2 + $0x89] sm:$0xff] }
 0x5c1   :  { %v1376_v2 = vpop.f32.mrf.mxu3 }
 0x5c2   :  { %v1377_v8 = vadd.f32 %v1376_v2, %v5309_v42  ;;  %v1486_v41 = vpop.f32.mrf.mxu1  ;;  %v3978_v42 = vld [vmem:[#allocation2 + $0x93] sm:$0xff] }
 0x5c4   :  { %v5566_v14 = vadd.f32 %v1483_v19, %v1377_v8 }
 0x5c5   :  { %1764 = vmatmul.f32.gmra.mxu1 %v3977_v47  ;;  %v897_v47 = vld [vmem:[#allocation2 + $0x91] sm:$0xff] }
 0x5c6   :  { %1657 = vmatmul.f32.gmra.mxu3 %v895_v46  ;;  %1913 = vmatmul.f32.gmra.mxu2 %v915_v49 }
 0x5c9   :  { %v1379_v0 = vpop.f32.mrf.mxu3 }
 0x5ca   :  { %v1380_v27 = vadd.f32 %v1379_v0, %v5315_v61  ;;  %v1489_v26 = vpop.f32.mrf.mxu1  ;;  %v1510_v61 = vadd.f32 %v5199_v32, %v5326_v5  ;;  %v3981_v32 = vld [vmem:[#allocation2 + $0xab] sm:$0xff]  ;;  %v1516_v5 = vadd.f32 %v5211_v62, %v5334_v50  ;;  %v1522_v62 = vadd.f32 %v5223_v58, %v5344_v3  ;;  %v1063_v3 = vld [vmem:[%s7740_s2 + $0x478] sm:$0xff] }
 0x5cb   :  { %v3985_v58 = vld [vmem:[#allocation2 + $0xcb] sm:$0xff]  ;;  %1920 = vmatpush.msrb.mxu3 %v1063_v3  ;;  %v1052_v3 = vld [vmem:[%s7740_s2 + $0x420] sm:$0xff] }
 0x5cc   :  { %v5571_v52 = vadd.f32 %v1486_v41, %v1380_v27 }
 0x5cd   :  { %1767 = vmatmul.f32.gmra.mxu1 %v3978_v42  ;;  %v3980_v42 = vld [vmem:[#allocation2 + $0xa3] sm:$0xff] }
 0x5ce   :  { %1660 = vmatmul.f32.gmra.mxu3 %v896_v11  ;;  %v898_v11 = vld [vmem:[#allocation2 + $0x99] sm:$0xff] }
 0x5d1   :  { %v1382_v19 = vpop.f32.mrf.mxu3 }
 0x5d2   :  { %v1383_v2 = vadd.f32 %v1382_v19, %v5321_v36  ;;  %v1723_v8 = vpop.f32.mrf.mxu1  ;;  %v1513_v36 = vadd.f32 %v5205_v20, %v5329_v56  ;;  %v1519_v56 = vadd.f32 %v5217_v15, %v5339_v22  ;;  %v1525_v15 = vadd.f32 %v5229_v21, %v5349_v1  ;;  %v1062_v21 = vld [vmem:[%s7740_s2 + $0x470] sm:$0xff]  ;;  %v1061_v1 = vld [vmem:[%s7740_s2 + $0x468] sm:$0xff] }
 0x5d3   :  { %1921 = vmatpush.msrb.mxu3 %v1062_v21 }
 0x5d4   :  { %v5574_v46 = vadd.f32 %v1489_v26, %v1383_v2 }
 0x5d5   :  { %1770 = vmatmul.f32.gmra.mxu1 %v3979_v6  ;;  %1922 = vmatpush.msrb.mxu3 %v1061_v1 }
 0x5d6   :  { %1663 = vmatmul.f32.gmra.mxu3 %v897_v47  ;;  %v899_v47 = vld [vmem:[#allocation2 + $0xa1] sm:$0xff] }
 0x5d9   :  { %v1616_v49 = vpop.f32.mrf.mxu3 }
 0x5da   :  { %v1617_v41 = vadd.f32 %v1616_v49, %v1510_v61  ;;  %v1726_v0 = vpop.f32.mrf.mxu1 }
 0x5dc   :  { %v5578_v27 = vadd.f32 %v1723_v8, %v1617_v41  ;;  %v900_v41 = vld [vmem:[#allocation2 + $0xa9] sm:$0xff] }
 0x5dd   :  { %1773 = vmatmul.f32.gmra.mxu1 %v3980_v42 }
 0x5de   :  { %1666 = vmatmul.f32.gmra.mxu3 %v898_v11  ;;  %v3982_v11 = vld [vmem:[#allocation2 + $0xb3] sm:$0xff] }
 0x5e1   :  { %v1619_v26 = vpop.f32.mrf.mxu3 }
 0x5e2   :  { %v1620_v19 = vadd.f32 %v1619_v26, %v1513_v36  ;;  %v1729_v6 = vpop.f32.mrf.mxu1  ;;  %v901_v26 = vld [vmem:[#allocation2 + $0xb1] sm:$0xff] }
 0x5e4   :  { %v5582_v2 = vadd.f32 %v1726_v0, %v1620_v19  ;;  %v3983_v19 = vld [vmem:[#allocation2 + $0xbb] sm:$0xff] }
 0x5e5   :  { %1776 = vmatmul.f32.gmra.mxu1 %v3981_v32 }
 0x5e6   :  { %1669 = vmatmul.f32.gmra.mxu3 %v899_v47 }
 0x5e9   :  { %v1622_v8 = vpop.f32.mrf.mxu3 }
 0x5ea   :  { %v1623_v61 = vadd.f32 %v1622_v8, %v1516_v5  ;;  %v1732_v20 = vpop.f32.mrf.mxu1  ;;  %v902_v5 = vld [vmem:[#allocation2 + $0xb9] sm:$0xff]  ;;  %v3984_v8 = vld [vmem:[#allocation2 + $0xc3] sm:$0xff] }
 0x5ec   :  { %v5586_v49 = vadd.f32 %v1729_v6, %v1623_v61 }
 0x5ed   :  { %1779 = vmatmul.f32.gmra.mxu1 %v3982_v11 }
 0x5ee   :  { %1672 = vmatmul.f32.gmra.mxu3 %v900_v41 }
 0x5f1   :  { %v1625_v0 = vpop.f32.mrf.mxu3 }
 0x5f2   :  { %v1626_v42 = vadd.f32 %v1625_v0, %v1519_v56  ;;  %v1735_v50 = vpop.f32.mrf.mxu1  ;;  %v1528_v56 = vadd.f32 %v5247_v44, %v5370_v28  ;;  %v3986_v44 = vld [vmem:[#allocation2 + $0xd3] sm:$0xff] }
 0x5f3   :  { %v1059_v28 = vld [vmem:[%s7740_s2 + $0x458] sm:$0xff] }
 0x5f4   :  { %v5590_v36 = vadd.f32 %v1732_v20, %v1626_v42  ;;  %v903_v20 = vld [vmem:[#allocation2 + $0xc1] sm:$0xff] }
 0x5f5   :  { %1782 = vmatmul.f32.gmra.mxu1 %v3983_v19  ;;  %v904_v19 = vld [vmem:[#allocation2 + $0xc9] sm:$0xff] }
 0x5f6   :  { %1675 = vmatmul.f32.gmra.mxu3 %v901_v26  ;;  %v1060_v26 = vld [vmem:[%s7740_s2 + $0x460] sm:$0xff] }
 0x5f7   :  { %1923 = vmatpush.msrb.mxu3 %v1060_v26  ;;  %v1050_v26 = vld [vmem:[%s7740_s2 + $0x410] sm:$0xff] }
 0x5f9   :  { %v1628_v6 = vpop.f32.mrf.mxu3  ;;  %1924 = vmatpush.msrb.mxu3 %v1059_v28  ;;  %v1049_v28 = vld [vmem:[%s7740_s2 + $0x408] sm:$0xff] }
 0x5fa   :  { %v1629_v47 = vadd.f32 %v1628_v6, %v1522_v62  ;;  %v1738_v41 = vpop.f32.mrf.mxu1  ;;  %v1531_v62 = vadd.f32 %v5267_v45, %v5399_v25  ;;  %v3987_v45 = vld [vmem:[#allocation2 + $0xdb] sm:$0xff] }
 0x5fb   :  { %v1055_v25 = vld [vmem:[%s7740_s2 + $0x438] sm:$0xff] }
 0x5fc   :  { %v5594_v32 = vadd.f32 %v1735_v50, %v1629_v47  ;;  %v1058_v47 = vld [vmem:[%s7740_s2 + $0x450] sm:$0xff] }
 0x5fd   :  { %1785 = vmatmul.f32.gmra.mxu1 %v3984_v8  ;;  %1925 = vmatpush.msrb.mxu3 %v1058_v47  ;;  %v1056_v8 = vld [vmem:[%s7740_s2 + $0x440] sm:$0xff] }
 0x5fe   :  { %1678 = vmatmul.f32.gmra.mxu3 %v902_v5  ;;  %v1057_v5 = vld [vmem:[%s7740_s2 + $0x448] sm:$0xff] }
 0x5ff   :  { %1926 = vmatpush.msrb.mxu3 %v1057_v5 }
 0x601   :  { %v1631_v22 = vpop.f32.mrf.mxu3  ;;  %1927 = vmatpush.msrb.mxu3 %v1056_v8  ;;  %v908_v8 = vld [vmem:[#allocation2 + $0xe9] sm:$0xff] }
 0x602   :  { %v1632_v61 = vadd.f32 %v1631_v22, %v1525_v15  ;;  %v905_v15 = vld [vmem:[#allocation2 + $0xd1] sm:$0xff]  ;;  %v1534_v22 = vadd.f32 %v5287_v30, %v5428_v4  ;;  %v3988_v30 = vld [vmem:[#allocation2 + $0xe3] sm:$0xff] }
 0x603   :  { %1928 = vmatpush.msrb.mxu3 %v1055_v25  ;;  %v1051_v4 = vld [vmem:[%s7740_s2 + $0x418] sm:$0xff] }
 0x604   :  { %v5598_v11 = vadd.f32 %v1738_v41, %v1632_v61 }
 0x605   :  { %1788 = vmatmul.f32.gmra.mxu1 %v3985_v58  ;;  %v1053_v58 = vld [vmem:[%s7740_s2 + $0x428] sm:$0xff] }
 0x606   :  { %1681 = vmatmul.f32.gmra.mxu3 %v903_v20  ;;  %v1054_v20 = vld [vmem:[%s7740_s2 + $0x430] sm:$0xff] }
 0x607   :  { %1929 = vmatpush.msrb.mxu3 %v1054_v20  ;;  %v912_v20 = vld [vmem:[#allocation2 + $0xfb] sm:$0xff] }
 0x609   :  { %v1634_v0 = vpop.f32.mrf.mxu3  ;;  %1930 = vmatpush.msrb.mxu3 %v1053_v58 }
 0x60a   :  { %v5605_v42 = vadd.f32 %v1634_v0, %v1528_v56  ;;  %v906_v56 = vld [vmem:[#allocation2 + $0xd9] sm:$0xff]  ;;  %v1537_v0 = vadd.f32 %v5302_v43, %v5457_v63  ;;  %v907_v63 = vld [vmem:[#allocation2 + $0xe1] sm:$0xff] }
 0x60b   :  { %1931 = vmatpush.msrb.mxu3 %v1052_v3  ;;  %v1048_v43 = vld [vmem:[%s7740_s2 + $0x400] sm:$0xff] }
 0x60c   :  { %v913_v3 = vld [vmem:[#allocation2 + $0x103] sm:$0xff] }
 0x60d   :  { %1791 = vmatmul.f32.gmra.mxu1 %v3986_v44  ;;  %1932 = vmatpush.msrb.mxu3 %v1051_v4  ;;  %v5658_v44 = vpop.f32.mrf.mxu2  ;;  %v3990_v4 = vld [vmem:[#allocation2 + $0x1d] sm:$0xff] }
 0x60e   :  { %1684 = vmatmul.f32.gmra.mxu3 %v904_v19  ;;  %v916_v19 = vld [vmem:[#allocation2 + $0x104] sm:$0xff] }
 0x60f   :  { %1933 = vmatpush.msrb.mxu3 %v1050_v26  ;;  %1916 = vmatmul.f32.gmra.mxu2 %v916_v19  ;;  %v1555_v26 = vadd.f32 %v5342_v48, %v5512_v18  ;;  %v3994_v48 = vld [vmem:[#allocation2 + $0x3d] sm:$0xff]  ;;  %v1564_v18 = vadd.f32 %v5413_v39, %v5525_v23  ;;  %v3997_v39 = vld [vmem:[#allocation2 + $0x55] sm:$0xff] }
 0x610   :  { %v7861_v23 = vld [vmem:[#allocation29_spill] sm:$0xff] }
 0x611   :  { %v1637_v50 = vpop.f32.mrf.mxu3  ;;  %1934 = vmatpush.msrb.mxu3 %v1049_v28 }
 0x612   :  { %v5621_v6 = vadd.f32 %v1637_v50, %v1531_v62  ;;  %v3989_v62 = vld [vmem:[#allocation2 + $0xeb] sm:$0xff]  ;;  %v1540_v50 = vadd.f32 %v5311_v35, %v5480_v59  ;;  %v1546_v35 = vadd.f32 %v5324_v51, %v5494_v60 }
 0x613   :  { %1935 = vmatpush.msrb.mxu3 %v1048_v43  ;;  %v3991_v60 = vld [vmem:[#allocation2 + $0x25] sm:$0xff] }
 0x615   :  { %1794 = vmatmul.f32.gmra.mxu1 %v3987_v45  ;;  %v1543_v45 = vadd.f32 %v5319_v9, %v5486_v31  ;;  %v1549_v9 = vadd.f32 %v5331_v7, %v5502_v24  ;;  %v3992_v7 = vld [vmem:[#allocation2 + $0x2d] sm:$0xff]  ;;  %v1558_v24 = vadd.f32 %v5347_v40, %v5515_v10  ;;  %v3995_v40 = vld [vmem:[#allocation2 + $0x45] sm:$0xff]  ;;  %v7858_v10 = vld [vmem:[#allocation5_spill] sm:$0xff] }
 0x616   :  { %1687 = vmatmul.f32.gmra.mxu3 %v905_v15  ;;  %v911_v15 = vld [vmem:[#allocation2 + $0xf3] sm:$0xff] }
 0x619   :  { %v1640_v61 = vpop.f32.mrf.mxu3 }
 0x61a   :  { %v5637_v41 = vadd.f32 %v1640_v61, %v1534_v22  ;;  %v909_v61 = vld [vmem:[#allocation2 + $0xf1] sm:$0xff] }
 0x61d   :  { %1797 = vmatmul.f32.gmra.mxu1 %v3988_v30 }
 0x61e   :  { %1690 = vmatmul.f32.gmra.mxu3 %v906_v56  ;;  %v910_v56 = vld [vmem:[#allocation2 + $0xf9] sm:$0xff] }
 0x621   :  { %v1643_v21 = vpop.f32.mrf.mxu3 }
 0x622   :  { %v5653_v1 = vadd.f32 %v1643_v21, %v1537_v0  ;;  %v1552_v0 = vadd.f32 %v5336_v55, %v5507_v34  ;;  %v3993_v55 = vld [vmem:[#allocation2 + $0x35] sm:$0xff]  ;;  %v1561_v34 = vadd.f32 %v5375_v33, %v5520_v29  ;;  %v3996_v33 = vld [vmem:[#allocation2 + $0x4d] sm:$0xff] }
 0x623   :  { %v7860_v29 = vld [vmem:[#allocation17_spill] sm:$0xff] }
 0x625   :  { %1800 = vmatmul.f32.gmra.mxu1 %v3989_v62 }
 0x626   :  { %1693 = vmatmul.f32.gmra.mxu3 %v907_v63 }
 0x629   :  { %v1646_v47 = vpop.f32.mrf.mxu3 }
 0x62a   :  { %v5668_v5 = vadd.f32 %v1646_v47, %v1540_v50 }
 0x62d   :  { %1803 = vmatmul.f32.gmra.mxu1 %v911_v15  ;;  %v1567_v15 = vadd.f32 %v7858_v10, %v5530_v54  ;;  %v3998_v54 = vld [vmem:[#allocation2 + $0x5d] sm:$0xff]  ;;  %v7870_v10 = vld [vmem:[#allocation20_spill] sm:$0xff] }
 0x62e   :  { %1696 = vmatmul.f32.gmra.mxu3 %v908_v8 }
 0x631   :  { %v1649_v25 = vpop.f32.mrf.mxu3 }
 0x632   :  { %v5672_v22 = vadd.f32 %v1649_v25, %v1543_v45 }
 0x635   :  { %1806 = vmatmul.f32.gmra.mxu1 %v912_v20 }
 0x636   :  { %1699 = vmatmul.f32.gmra.mxu3 %v909_v61  ;;  %v1570_v61 = vadd.f32 %v7860_v29, %v5535_v57  ;;  %v3999_v57 = vld [vmem:[#allocation2 + $0x65] sm:$0xff]  ;;  %v7871_v29 = vld [vmem:[#allocation9_spill] sm:$0xff] }
 0x639   :  { %v1652_v59 = vpop.f32.mrf.mxu3 }
 0x63a   :  { %v5676_v58 = vadd.f32 %v1652_v59, %v1546_v35  ;;  %v1573_v59 = vadd.f32 %v7861_v23, %v5538_v17  ;;  %v4000_v17 = vld [vmem:[#allocation2 + $0x6d] sm:$0xff] }
 0x63b   :  { %v7872_v23 = vld [vmem:[#allocation32_spill] sm:$0xff] }
 0x63d   :  { %1809 = vmatmul.f32.gmra.mxu1 %v913_v3 }
 0x63e   :  { %1702 = vmatmul.f32.gmra.mxu3 %v910_v56 }
 0x641   :  { %v1655_v31 = vpop.f32.mrf.mxu3 }
 0x642   :  { %v5680_v30 = vadd.f32 %v1655_v31, %v1549_v9  ;;  %v7862_v9 = vld [vmem:[#allocation30_spill] sm:$0xff] }
 0x643   :  { %v1576_v31 = vadd.f32 %v7862_v9, %v5543_v13  ;;  %v4001_v13 = vld [vmem:[#allocation2 + $0x75] sm:$0xff]  ;;  %v4006_v9 = vld [vmem:[#allocation2 + $0x9d] sm:$0xff] }
 0x646   :  { %1936 = vmatmul.f32.vlgmr.msrb.gmra.mxu3 %v3990_v4 }
 0x649   :  { %v1658_v21 = vpop.f32.mrf.mxu3 }
 0x64a   :  { %v5684_v51 = vadd.f32 %v1658_v21, %v1552_v0  ;;  %v1579_v21 = vadd.f32 %v5504_v16, %v5548_v38  ;;  %v4002_v16 = vld [vmem:[#allocation2 + $0x7d] sm:$0xff]  ;;  %v7868_v38 = vld [vmem:[#allocation31_spill] sm:$0xff] }
 0x64e   :  { %1939 = vmatmul.f32.gmra.mxu3 %v3991_v60 }
 0x651   :  { %v1661_v19 = vpop.f32.mrf.mxu3 }
 0x652   :  { %v5688_v28 = vadd.f32 %v1661_v19, %v1555_v26  ;;  %v7864_v19 = vld [vmem:[#allocation19_spill] sm:$0xff] }
 0x656   :  { %1942 = vmatmul.f32.gmra.mxu3 %v3992_v7  ;;  %v1582_v7 = vadd.f32 %v7864_v19, %v5553_v37  ;;  %v4003_v37 = vld [vmem:[#allocation2 + $0x85] sm:$0xff] }
 0x659   :  { %v1664_v43 = vpop.f32.mrf.mxu3 }
 0x65a   :  { %v5692_v63 = vadd.f32 %v1664_v43, %v1558_v24 }
 0x65c   :  { %7855 = vst [vmem:[#allocation34_spill] sm:$0xff] %v5692_v63 }
 0x65e   :  { %1945 = vmatmul.f32.gmra.mxu3 %v3993_v55  ;;  %v7866_v55 = vld [vmem:[#allocation8_spill] sm:$0xff] }
 0x661   :  { %v1667_v62 = vpop.f32.mrf.mxu3 }
 0x662   :  { %v5696_v50 = vadd.f32 %v1667_v62, %v1561_v34  ;;  %v1585_v34 = vadd.f32 %v7866_v55, %v5558_v12  ;;  %v4004_v12 = vld [vmem:[#allocation2 + $0x8d] sm:$0xff] }
 0x663   :  { %v4008_v55 = vld [vmem:[#allocation2 + $0xad] sm:$0xff] }
 0x664   :  { %7856 = vst [vmem:[#allocation23_spill] sm:$0xff] %v5696_v50 }
 0x666   :  { %1948 = vmatmul.f32.gmra.mxu3 %v3994_v48 }
 0x669   :  { %v1670_v47 = vpop.f32.mrf.mxu3 }
 0x66a   :  { %v5700_v8 = vadd.f32 %v1670_v47, %v1564_v18  ;;  %v1588_v18 = vadd.f32 %v7868_v38, %v5561_v53  ;;  %v4005_v53 = vld [vmem:[#allocation2 + $0x95] sm:$0xff] }
 0x66c   :  { %7857 = vst [vmem:[#allocation12_spill] sm:$0xff] %v5700_v8 }
 0x66e   :  { %1951 = vmatmul.f32.gmra.mxu3 %v3995_v40 }
 0x671   :  { %v1673_v45 = vpop.f32.mrf.mxu3 }
 0x672   :  { %v5704_v25 = vadd.f32 %v1673_v45, %v1567_v15  ;;  %v1591_v15 = vadd.f32 %v7870_v10, %v5566_v14  ;;  %v5746_v14 = vpop.f32.mrf.mxu1 }
 0x674   :  { %7859 = vst [vmem:[#allocation35_spill] sm:$0xff] %v5704_v25 }
 0x676   :  { %1954 = vmatmul.f32.gmra.mxu3 %v3996_v33 }
 0x679   :  { %v1676_v20 = vpop.f32.mrf.mxu3 }
 0x67a   :  { %v5708_v35 = vadd.f32 %v1676_v20, %v1570_v61  ;;  %v1594_v61 = vadd.f32 %v7871_v29, %v5571_v52  ;;  %v7878_v29 = vld [vmem:[#allocation11_spill] sm:$0xff] }
 0x67e   :  { %1957 = vmatmul.f32.gmra.mxu3 %v3997_v39 }
 0x681   :  { %v1679_v3 = vpop.f32.mrf.mxu3 }
 0x682   :  { %v5712_v56 = vadd.f32 %v1679_v3, %v1573_v59  ;;  %v1597_v59 = vadd.f32 %v7872_v23, %v5574_v46  ;;  %v7874_v46 = vld [vmem:[#allocation10_spill] sm:$0xff] }
 0x683   :  { %v1834_v19 = vadd.f32 %v7874_v46, %v5582_v2  ;;  %v7876_v2 = vld [vmem:[#allocation22_spill] sm:$0xff] }
 0x686   :  { %1960 = vmatmul.f32.gmra.mxu3 %v3998_v54 }
 0x689   :  { %v1682_v4 = vpop.f32.mrf.mxu3 }
 0x68a   :  { %v5716_v0 = vadd.f32 %v1682_v4, %v1576_v31  ;;  %v7873_v31 = vld [vmem:[#allocation21_spill] sm:$0xff] }
 0x68b   :  { %v1831_v4 = vadd.f32 %v7873_v31, %v5578_v27  ;;  %v7875_v27 = vld [vmem:[#allocation33_spill] sm:$0xff] }
 0x68e   :  { %1963 = vmatmul.f32.gmra.mxu3 %v3999_v57  ;;  %v5750_v57 = vpop.f32.mrf.mxu2 }
 0x691   :  { %v1685_v60 = vpop.f32.mrf.mxu3 }
 0x692   :  { %v5720_v26 = vadd.f32 %v1685_v60, %v1579_v21  ;;  %v4007_v60 = vld [vmem:[#allocation2 + $0xa5] sm:$0xff] }
 0x694   :  { %7863 = vst [vmem:[#allocation24_spill] sm:$0xff] %v5720_v26 }
 0x696   :  { %1966 = vmatmul.f32.gmra.mxu3 %v4000_v17  ;;  %v5754_v17 = vpop.f32.mrf.mxu1 }
 0x699   :  { %v1688_v24 = vpop.f32.mrf.mxu3 }
 0x69a   :  { %v5724_v43 = vadd.f32 %v1688_v24, %v1582_v7 }
 0x69c   :  { %7865 = vst [vmem:[#allocation13_spill] sm:$0xff] %v5724_v43 }
 0x69e   :  { %1969 = vmatmul.f32.gmra.mxu3 %v4001_v13  ;;  %v5760_v13 = vpop.f32.mrf.mxu2 }
 0x6a1   :  { %v1691_v62 = vpop.f32.mrf.mxu3 }
 0x6a2   :  { %v5728_v48 = vadd.f32 %v1691_v62, %v1585_v34  ;;  %v1837_v34 = vadd.f32 %v7875_v27, %v5586_v49  ;;  %v5764_v62 = vpop.f32.mrf.mxu1  ;;  %v7882_v27 = vld [vmem:[#allocation6_spill] sm:$0xff] }
 0x6a4   :  { %7867 = vst [vmem:[#allocation36_spill] sm:$0xff] %v5728_v48 }
 0x6a6   :  { %1972 = vmatmul.f32.gmra.mxu3 %v4002_v16 }
 0x6a9   :  { %v1694_v47 = vpop.f32.mrf.mxu3 }
 0x6aa   :  { %v5732_v40 = vadd.f32 %v1694_v47, %v1588_v18  ;;  %v5768_v18 = vpop.f32.mrf.mxu2  ;;  %v4009_v47 = vld [vmem:[#allocation2 + $0xb5] sm:$0xff] }
 0x6ac   :  { %7869 = vst [vmem:[#allocation25_spill] sm:$0xff] %v5732_v40 }
 0x6ae   :  { %1975 = vmatmul.f32.gmra.mxu3 %v4003_v37  ;;  %v1840_v37 = vadd.f32 %v7876_v2, %v5590_v36  ;;  %v1846_v36 = vadd.f32 %v5658_v44, %v5598_v11  ;;  %v7883_v44 = vld [vmem:[#allocation18_spill] sm:$0xff] }
 0x6b1   :  { %v1697_v45 = vpop.f32.mrf.mxu3 }
 0x6b2   :  { %v5736_v33 = vadd.f32 %v1697_v45, %v1591_v15  ;;  %v5774_v45 = vpop.f32.mrf.mxu1  ;;  %v5777_v49 = vpop.f32.mrf.mxu2 }
 0x6b6   :  { %1978 = vmatmul.f32.gmra.mxu3 %v4004_v12  ;;  %v7877_v12 = vld [vmem:[#allocation4_spill] sm:$0xff] }
 0x6b9   :  { %v1700_v20 = vpop.f32.mrf.mxu3 }
 0x6ba   :  { %v5740_v39 = vadd.f32 %v1700_v20, %v1594_v61  ;;  %v1843_v61 = vadd.f32 %v7878_v29, %v5594_v32  ;;  %v1753_v23 = vpop.f32.mrf.mxu1  ;;  %v7881_v32 = vld [vmem:[#allocation28_spill] sm:$0xff] }
 0x6bb   :  { %v917_v29 = vld [vmem:[#allocation2 + $0xf5] sm:$0xff] }
 0x6be   :  { %1981 = vmatmul.f32.gmra.mxu3 %v4005_v53 }
 0x6c1   :  { %v1703_v3 = vpop.f32.mrf.mxu3 }
 0x6c2   :  { %v5744_v54 = vadd.f32 %v1703_v3, %v1597_v59  ;;  %v7879_v59 = vld [vmem:[#allocation27_spill] sm:$0xff]  ;;  %v1860_v3 = vpop.f32.mrf.mxu2 }
 0x6c6   :  { %1984 = vmatmul.f32.gmra.mxu3 %v4006_v9 }
 0x6c9   :  { %v1937_v52 = vpop.f32.mrf.mxu3 }
 0x6ca   :  { %v5752_v21 = vadd.f32 %v1937_v52, %v1831_v4  ;;  %v7880_v4 = vld [vmem:[#allocation16_spill] sm:$0xff]  ;;  %v1756_v52 = vpop.f32.mrf.mxu1  ;;  %v1863_v46 = vpop.f32.mrf.mxu2 }
 0x6ce   :  { %1987 = vmatmul.f32.gmra.mxu3 %v4007_v60 }
 0x6d1   :  { %v1940_v7 = vpop.f32.mrf.mxu3 }
 0x6d2   :  { %v5758_v24 = vadd.f32 %v1940_v7, %v1834_v19  ;;  %v1759_v19 = vpop.f32.mrf.mxu1 }
 0x6d6   :  { %1990 = vmatmul.f32.gmra.mxu3 %v4008_v55  ;;  %v1866_v55 = vpop.f32.mrf.mxu2 }
 0x6d9   :  { %v1943_v16 = vpop.f32.mrf.mxu3 }
 0x6da   :  { %v5766_v38 = vadd.f32 %v1943_v16, %v1837_v34  ;;  %v1762_v11 = vpop.f32.mrf.mxu1 }
 0x6de   :  { %1993 = vmatmul.f32.gmra.mxu3 %v4009_v47  ;;  %v1869_v16 = vpop.f32.mrf.mxu2 }
 0x6e1   :  { %v1946_v10 = vpop.f32.mrf.mxu3 }
 0x6e2   :  { %v5772_v15 = vadd.f32 %v1946_v10, %v1840_v37  ;;  %v1765_v2 = vpop.f32.mrf.mxu1  ;;  %v7884_v37 = vld [vmem:[#allocation7_spill] sm:$0xff] }
 0x6e3   :  { %v1766_v25 = vadd.f32 %v1765_v2, %v5684_v51 }
 0x6e6   :  { %1996 = vmatmul.f32.gmra.mxu3 %v7877_v12  ;;  %v1872_v10 = vpop.f32.mrf.mxu2 }
 0x6e9   :  { %v1949_v20 = vpop.f32.mrf.mxu3 }
 0x6ea   :  { %v5781_v53 = vadd.f32 %v1949_v20, %v1843_v61  ;;  %v1768_v61 = vpop.f32.mrf.mxu1 }
 0x6ee   :  { %1999 = vmatmul.f32.gmra.mxu3 %v7879_v59  ;;  %v1875_v59 = vpop.f32.mrf.mxu2 }
 0x6f1   :  { %v1952_v9 = vpop.f32.mrf.mxu3 }
 0x6f2   :  { %v5786_v31 = vadd.f32 %v1952_v9, %v1846_v36  ;;  %v918_v36 = vld [vmem:[#allocation2 + $0xfd] sm:$0xff]  ;;  %v5799_v9 = vpop.f32.mrf.mxu1 }
 0x6f3   :  { %7885 = vst [vmem:[#allocation14_spill] sm:$0xff] %v5799_v9 }
 0x6f6   :  { %2002 = vmatmul.f32.gmra.mxu3 %v7880_v4 }
 0x6f9   :  { %v5789_v60 = vpop.f32.mrf.mxu3 }
 0x6fa   :  { %v5803_v63 = vpop.f32.mrf.mxu1 }
 0x6fb   :  { %7887 = vst [vmem:[#allocation26_spill] sm:$0xff] %v5803_v63  ;;  %v1757_v63 = vadd.f32 %v1756_v52, %v5672_v22  ;;  %v1748_v22 = vadd.f32 %v5764_v62, %v5637_v41 }
 0x6fe   :  { %2005 = vmatmul.f32.gmra.mxu3 %v7881_v32  ;;  %v919_v32 = vld [vmem:[#allocation2 + $0x105] sm:$0xff] }
 0x701   :  { %v5792_v7 = vpop.f32.mrf.mxu3 }
 0x702   :  { %v5808_v8 = vpop.f32.mrf.mxu1 }
 0x703   :  { %7889 = vst [vmem:[#allocation38_spill] sm:$0xff] %v5808_v8 }
 0x706   :  { %2008 = vmatmul.f32.gmra.mxu3 %v7882_v27  ;;  %v5801_v27 = vpop.f32.mrf.mxu2 }
 0x707   :  { %7886 = vst [vmem:[#allocation37_spill] sm:$0xff] %v5801_v27  ;;  %v1873_v27 = vadd.f32 %v1872_v10, %v1766_v25 }
 0x709   :  { %v5795_v34 = vpop.f32.mrf.mxu3 }
 0x70a   :  { %v5817_v51 = vpop.f32.mrf.mxu1 }
 0x70e   :  { %2011 = vmatmul.f32.gmra.mxu3 %v7883_v44 }
 0x711   :  { %v1964_v47 = vpop.f32.mrf.mxu3 }
 0x716   :  { %2014 = vmatmul.f32.gmra.mxu3 %v7884_v37  ;;  %v5805_v37 = vpop.f32.mrf.mxu2 }
 0x717   :  { %7888 = vst [vmem:[#allocation15_spill] sm:$0xff] %v5805_v37 }
 0x719   :  { %v1967_v12 = vpop.f32.mrf.mxu3 }
 0x71e   :  { %2017 = vmatmul.f32.gmra.mxu3 %v917_v29  ;;  %v1769_v29 = vadd.f32 %v1768_v61, %v5688_v28  ;;  %v5812_v26 = vpop.f32.mrf.mxu2  ;;  %v1754_v28 = vadd.f32 %v1753_v23, %v5668_v5 }
 0x720   :  { %v1876_v9 = vadd.f32 %v1875_v59, %v1769_v29 }
 0x721   :  { %v1970_v20 = vpop.f32.mrf.mxu3 }
 0x726   :  { %2020 = vmatmul.f32.gmra.mxu3 %v918_v36  ;;  %v1763_v36 = vadd.f32 %v1762_v11, %v5680_v30  ;;  %v1751_v30 = vadd.f32 %v5774_v45, %v5653_v1  ;;  %v1864_v11 = vadd.f32 %v1863_v46, %v1757_v63  ;;  %v5825_v5 = vpop.f32.mrf.mxu2  ;;  %v1742_v1 = vadd.f32 %v5746_v14, %v5605_v42  ;;  %v1783_v45 = vpop.f32.mrf.mxu1 }
 0x727   :  { %v1855_v63 = vadd.f32 %v5768_v18, %v1748_v22  ;;  %v2027_v22 = vld [vmem:[%s7741_s4] sm:$0xff] }
 0x728   :  { %v1870_v37 = vadd.f32 %v1869_v16, %v1763_v36  ;;  %v1971_v25 = vadd.f32 %v1970_v20, %v1864_v11 }
 0x729   :  { %v1973_v4 = vpop.f32.mrf.mxu3  ;;  %v1962_v62 = vadd.f32 %v5795_v34, %v1855_v63 }
 0x72e   :  { %2023 = vmatmul.f32.gmra.mxu3 %v919_v32  ;;  %v1760_v32 = vadd.f32 %v1759_v19, %v5676_v58  ;;  %v1890_v42 = vpop.f32.mrf.mxu2 }
 0x730   :  { %v1867_v61 = vadd.f32 %v1866_v55, %v1760_v32 }
 0x731   :  { %v1976_v44 = vpop.f32.mrf.mxu3 }
 0x732   :  { %v1977_v8 = vadd.f32 %v1976_v44, %v1870_v37  ;;  %v1974_v2 = vadd.f32 %v1973_v4, %v1867_v61 }
 0x739   :  { %v1979_v50 = vpop.f32.mrf.mxu3 }
 0x73a   :  { %v1980_v40 = vadd.f32 %v1979_v50, %v1873_v27  ;;  %v1861_v50 = vadd.f32 %v1860_v3, %v1754_v28  ;;  %v1784_v3 = vadd.f32 %v1783_v45, %v5708_v35  ;;  %v7892_v45 = vld [vmem:[#allocation13_spill] sm:$0xff] }
 0x741   :  { %v1982_v43 = vpop.f32.mrf.mxu3 }
 0x742   :  { %v1983_v48 = vadd.f32 %v1982_v43, %v1876_v9  ;;  %v1745_v43 = vadd.f32 %v5754_v17, %v5621_v6  ;;  %v1849_v6 = vadd.f32 %v5750_v57, %v1742_v1  ;;  %v1893_v57 = vpop.f32.mrf.mxu2 }
 0x744   :  { %2428 = vmatpush.msrb.mxu1 %v1983_v48  ;;  %v1858_v48 = vadd.f32 %v5777_v49, %v1751_v30  ;;  %v1852_v41 = vadd.f32 %v5760_v13, %v1745_v43  ;;  %v1956_v49 = vadd.f32 %v5789_v60, %v1849_v6  ;;  %v1786_v13 = vpop.f32.mrf.mxu1 }
 0x746   :  { %2429 = vmatpush.msrb.mxu1 %v1980_v40  ;;  %v1968_v40 = vadd.f32 %v1967_v12, %v1861_v50  ;;  %v1959_v17 = vadd.f32 %v5792_v7, %v1852_v41 }
 0x748   :  { %2430 = vmatpush.msrb.mxu1 %v1977_v8  ;;  %v1965_v8 = vadd.f32 %v1964_v47, %v1858_v48  ;;  %v7890_v48 = vld [vmem:[#allocation25_spill] sm:$0xff] }
 0x749   :  { %v5821_v58 = vpop.f32.mrf.mxu3 }
 0x74a   :  { %2431 = vmatpush.msrb.mxu1 %v1974_v2  ;;  %v1896_v60 = vpop.f32.mrf.mxu2 }
 0x74c   :  { %2432 = vmatpush.msrb.mxu1 %v1971_v25  ;;  %v1789_v52 = vpop.f32.mrf.mxu1 }
 0x74d   :  { %v1790_v34 = vadd.f32 %v1789_v52, %v5716_v0 }
 0x74e   :  { %2433 = vmatpush.msrb.mxu1 %v1968_v40 }
 0x74f   :  { %v1897_v16 = vadd.f32 %v1896_v60, %v1790_v34  ;;  %v7896_v34 = vld [vmem:[#allocation38_spill] sm:$0xff] }
 0x750   :  { %2434 = vmatpush.msrb.mxu1 %v1965_v8  ;;  %v7891_v8 = vld [vmem:[#allocation36_spill] sm:$0xff] }
 0x751   :  { %v5835_v23 = vpop.f32.mrf.mxu3 }
 0x752   :  { %2435 = vmatpush.msrb.mxu1 %v1962_v62 }
 0x754   :  { %2436 = vmatpush.msrb.mxu1 %v1959_v17 }
 0x756   :  { %2437 = vmatpush.msrb.mxu1 %v1956_v49  ;;  %v7893_v49 = vld [vmem:[#allocation24_spill] sm:$0xff] }
 0x758   :  { %2438 = vmatpush.msrb.mxu1 %v5786_v31  ;;  %v1891_v31 = vadd.f32 %v1890_v42, %v1784_v3 }
 0x759   :  { %v5841_v14 = vpop.f32.mrf.mxu3 }
 0x75a   :  { %2439 = vmatpush.msrb.mxu1 %v5781_v53  ;;  %v1787_v53 = vadd.f32 %v1786_v13, %v5712_v56 }
 0x75c   :  { %2440 = vmatpush.msrb.mxu1 %v5772_v15  ;;  %v1792_v15 = vpop.f32.mrf.mxu1  ;;  %v1894_v7 = vadd.f32 %v1893_v57, %v1787_v53  ;;  %v2031_v53 = vld [vmem:[%s7741_s4 + $0x20] sm:$0xff] }
 0x75d   :  { %v1793_v42 = vadd.f32 %v1792_v15, %v7893_v49  ;;  %v7895_v15 = vld [vmem:[#allocation12_spill] sm:$0xff]  ;;  %v2063_v49 = vld [vmem:[%s7741_s4 + $0x120] sm:$0xff] }
 0x75e   :  { %2441 = vmatpush.msrb.mxu1 %v5766_v38 }
 0x760   :  { %2442 = vmatpush.msrb.mxu1 %v5758_v24  ;;  %v1899_v24 = vpop.f32.mrf.mxu2 }
 0x761   :  { %v5847_v18 = vpop.f32.mrf.mxu3 }
 0x762   :  { %2443 = vmatpush.msrb.mxu1 %v5752_v21 }
 0x763   :  { %2444 = vmatmul.f32.vlgmr.msrb.gmra.mxu1 %v2027_v22  ;;  %v2049_v22 = vld [vmem:[%s7741_s4 + $0xb0] sm:$0xff] }
 0x764   :  { %v1795_v21 = vpop.f32.mrf.mxu1 }
 0x768   :  { %v1902_v10 = vpop.f32.mrf.mxu2 }
 0x769   :  { %v1997_v46 = vpop.f32.mrf.mxu3 }
 0x76a   :  { %v5851_v19 = vadd.f32 %v1997_v46, %v1891_v31  ;;  %v1900_v31 = vadd.f32 %v1899_v24, %v1793_v42  ;;  %v2058_v42 = vld [vmem:[%s7741_s4 + $0xf8] sm:$0xff] }
 0x76c   :  { %v1798_v20 = vpop.f32.mrf.mxu1 }
 0x76d   :  { %v1799_v41 = vadd.f32 %v1798_v20, %v7891_v8  ;;  %v7900_v20 = vld [vmem:[#allocation14_spill] sm:$0xff]  ;;  %v2057_v8 = vld [vmem:[%s7741_s4 + $0xf0] sm:$0xff] }
 0x770   :  { %v1905_v59 = vpop.f32.mrf.mxu2 }
 0x771   :  { %v2000_v38 = vpop.f32.mrf.mxu3  ;;  %v1906_v13 = vadd.f32 %v1905_v59, %v1799_v41  ;;  %v2052_v41 = vld [vmem:[%s7741_s4 + $0xc8] sm:$0xff] }
 0x772   :  { %v5854_v55 = vadd.f32 %v2000_v38, %v1894_v7  ;;  %v7894_v7 = vld [vmem:[#allocation35_spill] sm:$0xff] }
 0x773   :  { %v1781_v38 = vadd.f32 %v5817_v51, %v7894_v7 }
 0x774   :  { %v1801_v4 = vpop.f32.mrf.mxu1 }
 0x775   :  { %v1802_v40 = vadd.f32 %v1801_v4, %v7890_v48  ;;  %v7901_v4 = vld [vmem:[#allocation15_spill] sm:$0xff] }
 0x776   :  { %v2053_v48 = vld [vmem:[%s7741_s4 + $0xd0] sm:$0xff] }
 0x778   :  { %v1908_v27 = vpop.f32.mrf.mxu2 }
 0x779   :  { %v2003_v47 = vpop.f32.mrf.mxu3  ;;  %v1909_v6 = vadd.f32 %v1908_v27, %v1802_v40  ;;  %v2048_v40 = vld [vmem:[%s7741_s4 + $0xa8] sm:$0xff] }
 0x77a   :  { %v2004_v35 = vadd.f32 %v2003_v47, %v1897_v16  ;;  %v1778_v16 = vadd.f32 %v7896_v34, %v7895_v15  ;;  %v7898_v47 = vld [vmem:[#allocation26_spill] sm:$0xff]  ;;  %v2069_v34 = vld [vmem:[%s7741_s4 + $0x150] sm:$0xff] }
 0x77c   :  { %v1804_v44 = vpop.f32.mrf.mxu1 }
 0x77d   :  { %v1805_v50 = vadd.f32 %v1804_v44, %v5736_v33  ;;  %v2029_v33 = vld [vmem:[%s7741_s4 + $0x10] sm:$0xff] }
 0x77e   :  { %2447 = vmatmul.f32.gmra.mxu1 %v2029_v33 }
 0x780   :  { %v1911_v29 = vpop.f32.mrf.mxu2 }
 0x781   :  { %v2006_v12 = vpop.f32.mrf.mxu3  ;;  %v1912_v62 = vadd.f32 %v1911_v29, %v1805_v50  ;;  %v2034_v29 = vld [vmem:[%s7741_s4 + $0x38] sm:$0xff]  ;;  %v2044_v50 = vld [vmem:[%s7741_s4 + $0x88] sm:$0xff] }
 0x782   :  { %v2007_v46 = vadd.f32 %v2006_v12, %v1900_v31  ;;  %v7899_v12 = vld [vmem:[#allocation34_spill] sm:$0xff] }
 0x783   :  { %v1772_v59 = vadd.f32 %v7900_v20, %v7899_v12  ;;  %v2066_v12 = vld [vmem:[%s7741_s4 + $0x138] sm:$0xff] }
 0x784   :  { %v1807_v36 = vpop.f32.mrf.mxu1 }
 0x785   :  { %v1808_v2 = vadd.f32 %v1807_v36, %v5740_v39  ;;  %v1796_v39 = vadd.f32 %v1795_v21, %v7892_v45  ;;  %v7897_v21 = vld [vmem:[#allocation23_spill] sm:$0xff]  ;;  %v2054_v45 = vld [vmem:[%s7741_s4 + $0xd8] sm:$0xff] }
 0x786   :  { %2450 = vmatmul.f32.gmra.mxu1 %v2031_v53  ;;  %v1775_v24 = vadd.f32 %v7898_v47, %v7897_v21  ;;  %v2041_v36 = vld [vmem:[%s7741_s4 + $0x70] sm:$0xff]  ;;  %v2062_v53 = vld [vmem:[%s7741_s4 + $0x118] sm:$0xff] }
 0x787   :  { %v1903_v3 = vadd.f32 %v1902_v10, %v1796_v39  ;;  %v1888_v10 = vadd.f32 %v5825_v5, %v1781_v38  ;;  %v7902_v5 = vld [vmem:[#allocation37_spill] sm:$0xff] }
 0x788   :  { %v1914_v28 = vpop.f32.mrf.mxu2  ;;  %v1882_v27 = vadd.f32 %v7901_v4, %v1775_v24 }
 0x789   :  { %v2009_v9 = vpop.f32.mrf.mxu3  ;;  %v1915_v1 = vadd.f32 %v1914_v28, %v1808_v2  ;;  %v1995_v51 = vadd.f32 %v5847_v18, %v1888_v10  ;;  %v2028_v18 = vld [vmem:[%s7741_s4 + $0x8] sm:$0xff]  ;;  %v2043_v28 = vld [vmem:[%s7741_s4 + $0x80] sm:$0xff]  ;;  %v2042_v2 = vld [vmem:[%s7741_s4 + $0x78] sm:$0xff] }
 0x78a   :  { %v2010_v60 = vadd.f32 %v2009_v9, %v1903_v3  ;;  %v1885_v9 = vadd.f32 %v5812_v26, %v1778_v16  ;;  %v1989_v44 = vadd.f32 %v5835_v23, %v1882_v27  ;;  %v2030_v23 = vld [vmem:[%s7741_s4 + $0x18] sm:$0xff]  ;;  %v2060_v3 = vld [vmem:[%s7741_s4 + $0x108] sm:$0xff]  ;;  %v2071_v10 = vld [vmem:[%s7741_s4 + $0x160] sm:$0xff] }
 0x78b   :  { %v2064_v16 = vld [vmem:[%s7741_s4 + $0x128] sm:$0xff] }
 0x78c   :  { %v1810_v61 = vpop.f32.mrf.mxu1 }
 0x78d   :  { %v1811_v30 = vadd.f32 %v1810_v61, %v5744_v54  ;;  %v2038_v61 = vld [vmem:[%s7741_s4 + $0x58] sm:$0xff] }
 0x790   :  { %v1917_v11 = vpop.f32.mrf.mxu2 }
 0x791   :  { %v2012_v56 = vpop.f32.mrf.mxu3  ;;  %v1918_v25 = vadd.f32 %v1917_v11, %v1811_v30  ;;  %v2040_v30 = vld [vmem:[%s7741_s4 + $0x68] sm:$0xff]  ;;  %v2047_v11 = vld [vmem:[%s7741_s4 + $0xa0] sm:$0xff] }
 0x792   :  { %v2013_v52 = vadd.f32 %v2012_v56, %v1906_v13  ;;  %v1992_v56 = vadd.f32 %v5841_v14, %v1885_v9  ;;  %v2035_v14 = vld [vmem:[%s7741_s4 + $0x40] sm:$0xff] }
 0x799   :  { %v2015_v37 = vpop.f32.mrf.mxu3 }
 0x79a   :  { %v2016_v57 = vadd.f32 %v2015_v37, %v1909_v6  ;;  %v2039_v37 = vld [vmem:[%s7741_s4 + $0x60] sm:$0xff]  ;;  %v2061_v6 = vld [vmem:[%s7741_s4 + $0x110] sm:$0xff] }
 0x7a1   :  { %v2018_v32 = vpop.f32.mrf.mxu3 }
 0x7a2   :  { %v2019_v17 = vadd.f32 %v2018_v32, %v1912_v62  ;;  %v2036_v32 = vld [vmem:[%s7741_s4 + $0x48] sm:$0xff] }
 0x7a9   :  { %v2021_v0 = vpop.f32.mrf.mxu3 }
 0x7aa   :  { %v2022_v54 = vadd.f32 %v2021_v0, %v1915_v1  ;;  %v2045_v0 = vld [vmem:[%s7741_s4 + $0x90] sm:$0xff]  ;;  %v2055_v1 = vld [vmem:[%s7741_s4 + $0xe0] sm:$0xff] }
 0x7b1   :  { %v2024_v43 = vpop.f32.mrf.mxu3 }
 0x7b2   :  { %v2025_v63 = vadd.f32 %v2024_v43, %v1918_v25  ;;  %v2051_v25 = vld [vmem:[%s7741_s4 + $0xc0] sm:$0xff]  ;;  %v2046_v43 = vld [vmem:[%s7741_s4 + $0x98] sm:$0xff] }
 0x7b4   :  { %2687 = vmatpush.msrb.mxu2 %v2025_v63  ;;  %v2050_v63 = vld [vmem:[%s7741_s4 + $0xb8] sm:$0xff] }
 0x7b6   :  { %2688 = vmatpush.msrb.mxu2 %v2022_v54  ;;  %v2059_v54 = vld [vmem:[%s7741_s4 + $0x100] sm:$0xff] }
 0x7b8   :  { %2689 = vmatpush.msrb.mxu2 %v2019_v17  ;;  %v2056_v17 = vld [vmem:[%s7741_s4 + $0xe8] sm:$0xff] }
 0x7ba   :  { %2690 = vmatpush.msrb.mxu2 %v2016_v57  ;;  %v2065_v57 = vld [vmem:[%s7741_s4 + $0x130] sm:$0xff] }
 0x7bc   :  { %2691 = vmatpush.msrb.mxu2 %v2013_v52 }
 0x7be   :  { %2692 = vmatpush.msrb.mxu2 %v2010_v60 }
 0x7c0   :  { %2693 = vmatpush.msrb.mxu2 %v2007_v46  ;;  %v2067_v46 = vld [vmem:[%s7741_s4 + $0x140] sm:$0xff] }
 0x7c2   :  { %2694 = vmatpush.msrb.mxu2 %v2004_v35  ;;  %v2033_v35 = vld [vmem:[%s7741_s4 + $0x30] sm:$0xff] }
 0x7c3   :  { %2453 = vmatmul.f32.gmra.mxu1 %v2033_v35  ;;  %v2068_v35 = vld [vmem:[%s7741_s4 + $0x148] sm:$0xff] }
 0x7c4   :  { %2695 = vmatpush.msrb.mxu2 %v5854_v55  ;;  %v1879_v55 = vadd.f32 %v7902_v5, %v1772_v59  ;;  %v2075_v5 = vld [vmem:[%s7741_s4 + $0x180] sm:$0xff] }
 0x7c6   :  { %2696 = vmatpush.msrb.mxu2 %v5851_v19  ;;  %v1986_v26 = vadd.f32 %v5821_v58, %v1879_v55  ;;  %v2037_v58 = vld [vmem:[%s7741_s4 + $0x50] sm:$0xff]  ;;  %v2032_v19 = vld [vmem:[%s7741_s4 + $0x28] sm:$0xff]  ;;  %v2070_v55 = vld [vmem:[%s7741_s4 + $0x158] sm:$0xff] }
 0x7c8   :  { %2697 = vmatpush.msrb.mxu2 %v1995_v51  ;;  %v2073_v51 = vld [vmem:[%s7741_s4 + $0x170] sm:$0xff] }
 0x7ca   :  { %2698 = vmatpush.msrb.mxu2 %v1992_v56 }
 0x7cb   :  { %2456 = vmatmul.f32.gmra.mxu1 %v2035_v14  ;;  %v2077_v14 = vld [vmem:[%s7741_s4 + $0x190] sm:$0xff] }
 0x7cc   :  { %2699 = vmatpush.msrb.mxu2 %v1989_v44 }
 0x7ce   :  { %2700 = vmatpush.msrb.mxu2 %v1986_v26 }
 0x7cf   :  { %3813 = vmatmul.msk.f32.vlgmr.msrb.gmra.mxu2 %vm2187_vm0, %v2028_v18 }
 0x7d3   :  { %2459 = vmatmul.f32.gmra.mxu1 %v2037_v58 }
 0x7d7   :  { %3814 = vmatmul.msk.f32.gmra.mxu2 %vm2187_vm0, %v2030_v23  ;;  %v2072_v23 = vld [vmem:[%s7741_s4 + $0x168] sm:$0xff] }
 0x7db   :  { %2462 = vmatmul.f32.gmra.mxu1 %v2039_v37 }
 0x7df   :  { %3815 = vmatmul.msk.f32.gmra.mxu2 %vm2187_vm0, %v2032_v19 }
 0x7e0   :  { %v2445_v62 = vpop.f32.mrf.mxu1 }
 0x7e3   :  { %2465 = vmatmul.f32.gmra.mxu1 %v2041_v36  ;;  %v2074_v36 = vld [vmem:[%s7741_s4 + $0x178] sm:$0xff] }
 0x7e7   :  { %3816 = vmatmul.msk.f32.gmra.mxu2 %vm2187_vm0, %v2034_v29  ;;  %v2079_v29 = vld [vmem:[%s7741_s4 + $0x1a0] sm:$0xff] }
 0x7eb   :  { %2468 = vmatmul.f32.gmra.mxu1 %v2043_v28 }
 0x7ef   :  { %3817 = vmatmul.msk.f32.gmra.mxu2 %vm2187_vm0, %v2036_v32 }
 0x7f3   :  { %2471 = vmatmul.f32.gmra.mxu1 %v2045_v0  ;;  %v2081_v0 = vld [vmem:[%s7741_s4 + $0x1b0] sm:$0xff] }
 0x7f7   :  { %3818 = vmatmul.msk.f32.gmra.mxu2 %vm2187_vm0, %v2038_v61 }
 0x7fb   :  { %2474 = vmatmul.f32.gmra.mxu1 %v2047_v11  ;;  %v2448_v39 = vpop.f32.mrf.mxu1 }
 0x7ff   :  { %3819 = vmatmul.msk.f32.gmra.mxu2 %vm2187_vm0, %v2040_v30  ;;  %v2076_v30 = vld [vmem:[%s7741_s4 + $0x188] sm:$0xff] }
 0x803   :  { %2477 = vmatmul.f32.gmra.mxu1 %v2049_v22  ;;  %v2451_v33 = vpop.f32.mrf.mxu1 }
 0x807   :  { %3820 = vmatmul.msk.f32.gmra.mxu2 %vm2187_vm0, %v2042_v2 }
 0x80b   :  { %2480 = vmatmul.f32.gmra.mxu1 %v2051_v25  ;;  %v2078_v25 = vld [vmem:[%s7741_s4 + $0x198] sm:$0xff] }
 0x80f   :  { %3821 = vmatmul.msk.f32.gmra.mxu2 %vm2187_vm0, %v2044_v50  ;;  %v2083_v50 = vld [vmem:[%s7741_s4 + $0x1c0] sm:$0xff] }
 0x813   :  { %2483 = vmatmul.f32.gmra.mxu1 %v2053_v48 }
 0x817   :  { %3822 = vmatmul.msk.f32.gmra.mxu2 %vm2187_vm0, %v2046_v43 }
 0x81b   :  { %2486 = vmatmul.f32.gmra.mxu1 %v2055_v1  ;;  %v2085_v1 = vld [vmem:[%s7741_s4 + $0x1d0] sm:$0xff] }
 0x81f   :  { %3823 = vmatmul.msk.f32.gmra.mxu2 %vm2187_vm0, %v2048_v40 }
 0x823   :  { %2489 = vmatmul.f32.gmra.mxu1 %v2057_v8 }
 0x827   :  { %3824 = vmatmul.msk.f32.gmra.mxu2 %vm2187_vm0, %v2050_v63  ;;  %v2080_v63 = vld [vmem:[%s7741_s4 + $0x1a8] sm:$0xff] }
 0x82b   :  { %2492 = vmatmul.f32.gmra.mxu1 %v2059_v54  ;;  %v2087_v54 = vld [vmem:[%s7741_s4 + $0x1e0] sm:$0xff] }
 0x82f   :  { %3825 = vmatmul.msk.f32.gmra.mxu2 %vm2187_vm0, %v2052_v41 }
 0x833   :  { %2495 = vmatmul.f32.gmra.mxu1 %v2061_v6 }
 0x837   :  { %3826 = vmatmul.msk.f32.gmra.mxu2 %vm2187_vm0, %v2054_v45  ;;  %v2082_v45 = vld [vmem:[%s7741_s4 + $0x1b8] sm:$0xff] }
 0x83b   :  { %2498 = vmatmul.f32.gmra.mxu1 %v2063_v49  ;;  %v2084_v49 = vld [vmem:[%s7741_s4 + $0x1c8] sm:$0xff] }
 0x83f   :  { %3827 = vmatmul.msk.f32.gmra.mxu2 %vm2187_vm0, %v2056_v17 }
 0x840   :  { %v2454_v13 = vpop.f32.mrf.mxu1 }
 0x843   :  { %2501 = vmatmul.f32.gmra.mxu1 %v2065_v57 }
 0x847   :  { %3828 = vmatmul.msk.f32.gmra.mxu2 %vm2187_vm0, %v2058_v42 }
 0x848   :  { %v2457_v52 = vpop.f32.mrf.mxu1 }
 0x84b   :  { %2504 = vmatmul.f32.gmra.mxu1 %v2067_v46 }
 0x84f   :  { %3829 = vmatmul.msk.f32.gmra.mxu2 %vm2187_vm0, %v2060_v3  ;;  %v2091_v3 = vld [vmem:[%s7741_s4 + $0x200] sm:$0xff] }
 0x850   :  { %v2460_v7 = vpop.f32.mrf.mxu1 }
 0x852   :  { %v2702_v31 = vpop.f32.mrf.mxu2 }
 0x853   :  { %v6010_v60 = vadd.f32 %v2702_v31, %v2445_v62  ;;  %2507 = vmatmul.f32.gmra.mxu1 %v2069_v34 }
 0x857   :  { %3830 = vmatmul.msk.f32.gmra.mxu2 %vm2187_vm0, %v2062_v53 }
 0x858   :  { %v2463_v21 = vpop.f32.mrf.mxu1 }
 0x85a   :  { %v2705_v38 = vpop.f32.mrf.mxu2 }
 0x85b   :  { %v6019_v15 = vadd.f32 %v2705_v38, %v2448_v39  ;;  %2510 = vmatmul.f32.gmra.mxu1 %v2071_v10  ;;  %v2088_v38 = vld [vmem:[%s7741_s4 + $0x1e8] sm:$0xff]  ;;  %v2090_v10 = vld [vmem:[%s7741_s4 + $0x1f8] sm:$0xff] }
 0x85f   :  { %3831 = vmatmul.msk.f32.gmra.mxu2 %vm2187_vm0, %v2064_v16 }
 0x860   :  { %v2466_v20 = vpop.f32.mrf.mxu1 }
 0x862   :  { %v2708_v47 = vpop.f32.mrf.mxu2 }
 0x863   :  { %v6028_v24 = vadd.f32 %v2708_v47, %v2451_v33  ;;  %2513 = vmatmul.f32.gmra.mxu1 %v2073_v51  ;;  %v2089_v33 = vld [vmem:[%s7741_s4 + $0x1f0] sm:$0xff]  ;;  %v2095_v47 = vld [vmem:[%s7741_s4 + $0x220] sm:$0xff] }
 0x864   :  { %v2097_v51 = vld [vmem:[%s7741_s4 + $0x230] sm:$0xff] }
 0x867   :  { %3832 = vmatmul.msk.f32.gmra.mxu2 %vm2187_vm0, %v2066_v12 }
 0x868   :  { %v2469_v4 = vpop.f32.mrf.mxu1 }
 0x86a   :  { %v2711_v59 = vpop.f32.mrf.mxu2 }
 0x86b   :  { %v6037_v9 = vadd.f32 %v2711_v59, %v2454_v13  ;;  %2516 = vmatmul.f32.gmra.mxu1 %v2075_v5 }
 0x86f   :  { %3833 = vmatmul.msk.f32.gmra.mxu2 %vm2187_vm0, %v2068_v35  ;;  %v2092_v35 = vld [vmem:[%s7741_s4 + $0x208] sm:$0xff] }
 0x870   :  { %v2472_v44 = vpop.f32.mrf.mxu1 }
 0x872   :  { %v2714_v27 = vpop.f32.mrf.mxu2 }
 0x873   :  { %v6046_v56 = vadd.f32 %v2714_v27, %v2457_v52  ;;  %2519 = vmatmul.f32.gmra.mxu1 %v2077_v14  ;;  %v2086_v52 = vld [vmem:[%s7741_s4 + $0x1d8] sm:$0xff] }
 0x877   :  { %3834 = vmatmul.msk.f32.gmra.mxu2 %vm2187_vm0, %v2070_v55  ;;  %v2094_v55 = vld [vmem:[%s7741_s4 + $0x218] sm:$0xff] }
 0x878   :  { %v2475_v58 = vpop.f32.mrf.mxu1 }
 0x87a   :  { %v2717_v26 = vpop.f32.mrf.mxu2 }
 0x87b   :  { %v6055_v18 = vadd.f32 %v2717_v26, %v2460_v7  ;;  %2522 = vmatmul.f32.gmra.mxu1 %v2079_v29  ;;  %v2093_v7 = vld [vmem:[%s7741_s4 + $0x210] sm:$0xff] }
 0x87f   :  { %3835 = vmatmul.msk.f32.gmra.mxu2 %vm2187_vm0, %v2072_v23 }
 0x880   :  { %v2478_v32 = vpop.f32.mrf.mxu1 }
 0x882   :  { %v2720_v19 = vpop.f32.mrf.mxu2 }
 0x883   :  { %v6064_v37 = vadd.f32 %v2720_v19, %v2463_v21  ;;  %2525 = vmatmul.f32.gmra.mxu1 %v2081_v0  ;;  %v2101_v19 = vld [vmem:[%s7741_s4 + $0x250] sm:$0xff]  ;;  %v2103_v0 = vld [vmem:[%s7741_s4 + $0x260] sm:$0xff] }
 0x887   :  { %3836 = vmatmul.msk.f32.gmra.mxu2 %vm2187_vm0, %v2074_v36 }
 0x888   :  { %v2481_v11 = vpop.f32.mrf.mxu1 }
 0x88a   :  { %v2723_v28 = vpop.f32.mrf.mxu2 }
 0x88b   :  { %v6073_v61 = vadd.f32 %v2723_v28, %v2466_v20  ;;  %2528 = vmatmul.f32.gmra.mxu1 %v2083_v50  ;;  %v2098_v28 = vld [vmem:[%s7741_s4 + $0x238] sm:$0xff]  ;;  %v2100_v50 = vld [vmem:[%s7741_s4 + $0x248] sm:$0xff] }
 0x88f   :  { %3837 = vmatmul.msk.f32.gmra.mxu2 %vm2187_vm0, %v2076_v30 }
 0x890   :  { %v2484_v43 = vpop.f32.mrf.mxu1 }
 0x892   :  { %v2726_v2 = vpop.f32.mrf.mxu2 }
 0x893   :  { %v6082_v22 = vadd.f32 %v2726_v2, %v2469_v4  ;;  %2531 = vmatmul.f32.gmra.mxu1 %v2085_v1 }
 0x897   :  { %3838 = vmatmul.msk.f32.gmra.mxu2 %vm2187_vm0, %v2078_v25  ;;  %v2105_v25 = vld [vmem:[%s7741_s4 + $0x270] sm:$0xff] }
 0x898   :  { %v2487_v8 = vpop.f32.mrf.mxu1 }
 0x89a   :  { %v2729_v48 = vpop.f32.mrf.mxu2 }
 0x89b   :  { %v6091_v40 = vadd.f32 %v2729_v48, %v2472_v44  ;;  %2534 = vmatmul.f32.gmra.mxu1 %v2087_v54  ;;  %v2099_v44 = vld [vmem:[%s7741_s4 + $0x240] sm:$0xff] }
 0x89f   :  { %3839 = vmatmul.msk.f32.gmra.mxu2 %vm2187_vm0, %v2080_v63  ;;  %v2102_v63 = vld [vmem:[%s7741_s4 + $0x258] sm:$0xff] }
 0x8a0   :  { %v2490_v39 = vpop.f32.mrf.mxu1 }
 0x8a2   :  { %v2732_v41 = vpop.f32.mrf.mxu2 }
 0x8a3   :  { %v6100_v62 = vadd.f32 %v2732_v41, %v2475_v58  ;;  %2537 = vmatmul.f32.gmra.mxu1 %v2089_v33  ;;  %v2096_v58 = vld [vmem:[%s7741_s4 + $0x228] sm:$0xff]  ;;  %v2107_v41 = vld [vmem:[%s7741_s4 + $0x280] sm:$0xff] }
 0x8a7   :  { %3840 = vmatmul.msk.f32.gmra.mxu2 %vm2187_vm0, %v2082_v45 }
 0x8a8   :  { %v2493_v42 = vpop.f32.mrf.mxu1 }
 0x8aa   :  { %v2735_v6 = vpop.f32.mrf.mxu2 }
 0x8ab   :  { %v6109_v17 = vadd.f32 %v2735_v6, %v2478_v32  ;;  %2540 = vmatmul.f32.gmra.mxu1 %v2091_v3  ;;  %v2104_v6 = vld [vmem:[%s7741_s4 + $0x268] sm:$0xff] }
 0x8af   :  { %3841 = vmatmul.msk.f32.gmra.mxu2 %vm2187_vm0, %v2084_v49  ;;  %v2109_v49 = vld [vmem:[%s7741_s4 + $0x290] sm:$0xff] }
 0x8b0   :  { %v2496_v31 = vpop.f32.mrf.mxu1 }
 0x8b2   :  { %v2738_v13 = vpop.f32.mrf.mxu2 }
 0x8b3   :  { %v6118_v57 = vadd.f32 %v2738_v13, %v2481_v11  ;;  %2543 = vmatmul.f32.gmra.mxu1 %v2093_v7 }
 0x8b7   :  { %3842 = vmatmul.msk.f32.gmra.mxu2 %vm2187_vm0, %v2086_v52  ;;  %v2106_v52 = vld [vmem:[%s7741_s4 + $0x278] sm:$0xff] }
 0x8b8   :  { %v2499_v34 = vpop.f32.mrf.mxu1 }
 0x8ba   :  { %v2741_v46 = vpop.f32.mrf.mxu2 }
 0x8bb   :  { %v6127_v53 = vadd.f32 %v2741_v46, %v2484_v43  ;;  %2546 = vmatmul.f32.gmra.mxu1 %v2095_v47  ;;  %v2111_v46 = vld [vmem:[%s7741_s4 + $0x2a0] sm:$0xff] }
 0x8bf   :  { %3843 = vmatmul.msk.f32.gmra.mxu2 %vm2187_vm0, %v2088_v38 }
 0x8c0   :  { %v2502_v12 = vpop.f32.mrf.mxu1 }
 0x8c2   :  { %v2744_v16 = vpop.f32.mrf.mxu2 }
 0x8c3   :  { %v6136_v21 = vadd.f32 %v2744_v16, %v2487_v8  ;;  %2549 = vmatmul.f32.gmra.mxu1 %v2097_v51  ;;  %v2108_v16 = vld [vmem:[%s7741_s4 + $0x288] sm:$0xff] }
 0x8c7   :  { %3844 = vmatmul.msk.f32.gmra.mxu2 %vm2187_vm0, %v2090_v10  ;;  %v2113_v10 = vld [vmem:[%s7741_s4 + $0x2b0] sm:$0xff] }
 0x8c8   :  { %v2505_v4 = vpop.f32.mrf.mxu1 }
 0x8ca   :  { %v2747_v20 = vpop.f32.mrf.mxu2 }
 0x8cb   :  { %v6145_v59 = vadd.f32 %v2747_v20, %v2490_v39  ;;  %2552 = vmatmul.f32.gmra.mxu1 %v2099_v44 }
 0x8cf   :  { %3845 = vmatmul.msk.f32.gmra.mxu2 %vm2187_vm0, %v2092_v35  ;;  %v2110_v35 = vld [vmem:[%s7741_s4 + $0x298] sm:$0xff] }
 0x8d0   :  { %v2508_v26 = vpop.f32.mrf.mxu1 }
 0x8d2   :  { %v2750_v27 = vpop.f32.mrf.mxu2 }
 0x8d3   :  { %v6154_v5 = vadd.f32 %v2750_v27, %v2493_v42  ;;  %2555 = vmatmul.f32.gmra.mxu1 %v2101_v19  ;;  %v2115_v27 = vld [vmem:[%s7741_s4 + $0x2c0] sm:$0xff]  ;;  %v2117_v19 = vld [vmem:[%s7741_s4 + $0x2d0] sm:$0xff] }
 0x8d5   :  { %7903 = vst [vmem:[#allocation5_spill] sm:$0xff] %v6154_v5 }
 0x8d7   :  { %3846 = vmatmul.msk.f32.gmra.mxu2 %vm2187_vm0, %v2094_v55 }
 0x8d8   :  { %v2511_v29 = vpop.f32.mrf.mxu1 }
 0x8da   :  { %v2753_v14 = vpop.f32.mrf.mxu2 }
 0x8db   :  { %v6163_v23 = vadd.f32 %v2753_v14, %v2496_v31  ;;  %2558 = vmatmul.f32.gmra.mxu1 %v2103_v0  ;;  %v2112_v14 = vld [vmem:[%s7741_s4 + $0x2a8] sm:$0xff]  ;;  %v2114_v0 = vld [vmem:[%s7741_s4 + $0x2b8] sm:$0xff]  ;;  %v3058_v31 = vld [vmem:[%s7743_s5 + $0x60] sm:$0xff] }
 0x8dd   :  { %7904 = vst [vmem:[#allocation17_spill] sm:$0xff] %v6163_v23 }
 0x8df   :  { %3847 = vmatmul.msk.f32.gmra.mxu2 %vm2187_vm0, %v2096_v58 }
 0x8e0   :  { %v2514_v30 = vpop.f32.mrf.mxu1 }
 0x8e2   :  { %v2756_v36 = vpop.f32.mrf.mxu2 }
 0x8e3   :  { %v6172_v32 = vadd.f32 %v2756_v36, %v2499_v34  ;;  %2561 = vmatmul.f32.gmra.mxu1 %v2105_v25 }
 0x8e5   :  { %7905 = vst [vmem:[#allocation29_spill] sm:$0xff] %v6172_v32 }
 0x8e7   :  { %3848 = vmatmul.msk.f32.gmra.mxu2 %vm2187_vm0, %v2098_v28 }
 0x8e8   :  { %v2517_v43 = vpop.f32.mrf.mxu1 }
 0x8ea   :  { %v2759_v11 = vpop.f32.mrf.mxu2 }
 0x8eb   :  { %v6181_v2 = vadd.f32 %v2759_v11, %v2502_v12  ;;  %2564 = vmatmul.f32.gmra.mxu1 %v2107_v41  ;;  %v2119_v11 = vld [vmem:[%s7741_s4 + $0x2e0] sm:$0xff]  ;;  %v2121_v41 = vld [vmem:[%s7741_s4 + $0x2f0] sm:$0xff] }
 0x8ed   :  { %7906 = vst [vmem:[#allocation30_spill] sm:$0xff] %v6181_v2 }
 0x8ef   :  { %3849 = vmatmul.msk.f32.gmra.mxu2 %vm2187_vm0, %v2100_v50 }
 0x8f0   :  { %v2520_v54 = vpop.f32.mrf.mxu1 }
 0x8f2   :  { %v2762_v48 = vpop.f32.mrf.mxu2 }
 0x8f3   :  { %v6190_v1 = vadd.f32 %v2762_v48, %v2505_v4  ;;  %2567 = vmatmul.f32.gmra.mxu1 %v2109_v49  ;;  %v2116_v48 = vld [vmem:[%s7741_s4 + $0x2c8] sm:$0xff]  ;;  %v2118_v49 = vld [vmem:[%s7741_s4 + $0x2d8] sm:$0xff] }
 0x8f7   :  { %3850 = vmatmul.msk.f32.gmra.mxu2 %vm2187_vm0, %v2102_v63 }
 0x8f8   :  { %v2523_v42 = vpop.f32.mrf.mxu1 }
 0x8fa   :  { %v2765_v45 = vpop.f32.mrf.mxu2 }
 0x8fb   :  { %v6201_v39 = vadd.f32 %v2765_v45, %v2508_v26  ;;  %2570 = vmatmul.f32.gmra.mxu1 %v2111_v46 }
 0x8ff   :  { %3851 = vmatmul.msk.f32.gmra.mxu2 %vm2187_vm0, %v2104_v6 }
 0x900   :  { %v2526_v7 = vpop.f32.mrf.mxu1 }
 0x902   :  { %v2768_v13 = vpop.f32.mrf.mxu2 }
 0x903   :  { %v6212_v3 = vadd.f32 %v2768_v13, %v2511_v29  ;;  %2573 = vmatmul.f32.gmra.mxu1 %v2113_v10  ;;  %v2123_v13 = vld [vmem:[%s7741_s4 + $0x300] sm:$0xff]  ;;  %v2125_v10 = vld [vmem:[%s7741_s4 + $0x310] sm:$0xff] }
 0x907   :  { %3852 = vmatmul.msk.f32.gmra.mxu2 %vm2187_vm0, %v2106_v52 }
 0x908   :  { %v2529_v12 = vpop.f32.mrf.mxu1 }
 0x90a   :  { %v2771_v38 = vpop.f32.mrf.mxu2 }
 0x90b   :  { %v6223_v34 = vadd.f32 %v2771_v38, %v2514_v30  ;;  %2576 = vmatmul.f32.gmra.mxu1 %v2115_v27  ;;  %v2120_v38 = vld [vmem:[%s7741_s4 + $0x2e8] sm:$0xff]  ;;  %v2122_v27 = vld [vmem:[%s7741_s4 + $0x2f8] sm:$0xff] }
 0x90f   :  { %3853 = vmatmul.msk.f32.gmra.mxu2 %vm2187_vm0, %v2108_v16 }
 0x910   :  { %v2532_v55 = vpop.f32.mrf.mxu1 }
 0x912   :  { %v2774_v20 = vpop.f32.mrf.mxu2 }
 0x913   :  { %v6234_v51 = vadd.f32 %v2774_v20, %v2517_v43  ;;  %2579 = vmatmul.f32.gmra.mxu1 %v2117_v19 }
 0x917   :  { %3854 = vmatmul.msk.f32.gmra.mxu2 %vm2187_vm0, %v2110_v35 }
 0x918   :  { %v2535_v29 = vpop.f32.mrf.mxu1 }
 0x91a   :  { %v2777_v44 = vpop.f32.mrf.mxu2 }
 0x91b   :  { %v6245_v26 = vadd.f32 %v2777_v44, %v2520_v54  ;;  %2582 = vmatmul.f32.gmra.mxu1 %v2119_v11  ;;  %v2127_v44 = vld [vmem:[%s7741_s4 + $0x320] sm:$0xff]  ;;  %v2129_v11 = vld [vmem:[%s7741_s4 + $0x330] sm:$0xff] }
 0x91f   :  { %3855 = vmatmul.msk.f32.gmra.mxu2 %vm2187_vm0, %v2112_v14 }
 0x920   :  { %v2538_v50 = vpop.f32.mrf.mxu1 }
 0x922   :  { %v2780_v36 = vpop.f32.mrf.mxu2 }
 0x923   :  { %v6256_v28 = vadd.f32 %v2780_v36, %v2523_v42  ;;  %2585 = vmatmul.f32.gmra.mxu1 %v2121_v41 }
 0x927   :  { %3856 = vmatmul.msk.f32.gmra.mxu2 %vm2187_vm0, %v2114_v0 }
 0x928   :  { %v2541_v54 = vpop.f32.mrf.mxu1 }
 0x92a   :  { %v2783_v25 = vpop.f32.mrf.mxu2 }
 0x92b   :  { %v6267_v43 = vadd.f32 %v2783_v25, %v2526_v7  ;;  %2588 = vmatmul.f32.gmra.mxu1 %v2123_v13 }
 0x92f   :  { %3857 = vmatmul.msk.f32.gmra.mxu2 %vm2187_vm0, %v2116_v48 }
 0x930   :  { %v2544_v52 = vpop.f32.mrf.mxu1 }
 0x932   :  { %v2786_v45 = vpop.f32.mrf.mxu2 }
 0x933   :  { %v6278_v6 = vadd.f32 %v2786_v45, %v2529_v12  ;;  %2591 = vmatmul.f32.gmra.mxu1 %v2125_v10  ;;  %v2142_v10 = vld [vmem:[%s7741_s4 + $0x398] sm:$0xff] }
 0x937   :  { %3858 = vmatmul.msk.f32.gmra.mxu2 %vm2187_vm0, %v2118_v49  ;;  %v2131_v49 = vld [vmem:[%s7741_s4 + $0x340] sm:$0xff] }
 0x938   :  { %v2547_v12 = vpop.f32.mrf.mxu1 }
 0x93a   :  { %v2789_v46 = vpop.f32.mrf.mxu2 }
 0x93b   :  { %v6289_v7 = vadd.f32 %v2789_v46, %v2532_v55  ;;  %2594 = vmatmul.f32.gmra.mxu1 %v2127_v44 }
 0x93f   :  { %3859 = vmatmul.msk.f32.gmra.mxu2 %vm2187_vm0, %v2120_v38  ;;  %v2128_v38 = vld [vmem:[%s7741_s4 + $0x328] sm:$0xff] }
 0x940   :  { %v2550_v14 = vpop.f32.mrf.mxu1 }
 0x942   :  { %v2792_v20 = vpop.f32.mrf.mxu2 }
 0x943   :  { %v6300_v35 = vadd.f32 %v2792_v20, %v2535_v29  ;;  %v2124_v29 = vld [vmem:[%s7741_s4 + $0x308] sm:$0xff]  ;;  %2597 = vmatmul.f32.gmra.mxu1 %v2129_v11  ;;  %v2133_v20 = vld [vmem:[%s7741_s4 + $0x350] sm:$0xff]  ;;  %v2135_v11 = vld [vmem:[%s7741_s4 + $0x360] sm:$0xff] }
 0x947   :  { %3860 = vmatmul.msk.f32.gmra.mxu2 %vm2187_vm0, %v2122_v27 }
 0x948   :  { %v2553_v41 = vpop.f32.mrf.mxu1 }
 0x94a   :  { %v2795_v19 = vpop.f32.mrf.mxu2 }
 0x94b   :  { %v6311_v36 = vadd.f32 %v2795_v19, %v2538_v50  ;;  %v2126_v50 = vld [vmem:[%s7741_s4 + $0x318] sm:$0xff]  ;;  %2600 = vmatmul.f32.gmra.mxu1 %v2131_v49  ;;  %v2132_v49 = vld [vmem:[%s7741_s4 + $0x348] sm:$0xff] }
 0x94c   :  { %v2130_v19 = vld [vmem:[%s7741_s4 + $0x338] sm:$0xff] }
 0x94f   :  { %3861 = vmatmul.msk.f32.gmra.mxu2 %vm2187_vm0, %v2124_v29  ;;  %v2140_v29 = vld [vmem:[%s7741_s4 + $0x388] sm:$0xff] }
 0x952   :  { %v2798_v25 = vpop.f32.mrf.mxu2 }
 0x953   :  { %v6322_v48 = vadd.f32 %v2798_v25, %v2541_v54  ;;  %v2556_v54 = vpop.f32.mrf.mxu1  ;;  %2603 = vmatmul.f32.gmra.mxu1 %v2133_v20 }
 0x957   :  { %3862 = vmatmul.msk.f32.gmra.mxu2 %vm2187_vm0, %v2126_v50 }
 0x95a   :  { %v2801_v13 = vpop.f32.mrf.mxu2 }
 0x95b   :  { %v6333_v46 = vadd.f32 %v2801_v13, %v2544_v52  ;;  %v2559_v52 = vpop.f32.mrf.mxu1  ;;  %2606 = vmatmul.f32.gmra.mxu1 %v2135_v11  ;;  %v2134_v11 = vld [vmem:[%s7741_s4 + $0x358] sm:$0xff]  ;;  %v2136_v13 = vld [vmem:[%s7741_s4 + $0x368] sm:$0xff] }
 0x95f   :  { %3863 = vmatmul.msk.f32.gmra.mxu2 %vm2187_vm0, %v2128_v38  ;;  %v2137_v38 = vld [vmem:[%s7741_s4 + $0x370] sm:$0xff] }
 0x962   :  { %v2804_v27 = vpop.f32.mrf.mxu2 }
 0x963   :  { %v6344_v44 = vadd.f32 %v2804_v27, %v2547_v12  ;;  %v2562_v12 = vpop.f32.mrf.mxu1  ;;  %2609 = vmatmul.f32.gmra.mxu1 %v2137_v38 }
 0x967   :  { %3864 = vmatmul.msk.f32.gmra.mxu2 %vm2187_vm0, %v2130_v19  ;;  %v2139_v19 = vld [vmem:[%s7741_s4 + $0x380] sm:$0xff] }
 0x96a   :  { %v2807_v25 = vpop.f32.mrf.mxu2 }
 0x96b   :  { %v6355_v50 = vadd.f32 %v2807_v25, %v2550_v14  ;;  %v2565_v14 = vpop.f32.mrf.mxu1  ;;  %2612 = vmatmul.f32.gmra.mxu1 %v2139_v19  ;;  %v2138_v25 = vld [vmem:[%s7741_s4 + $0x378] sm:$0xff] }
 0x96f   :  { %3865 = vmatmul.msk.f32.gmra.mxu2 %vm2187_vm0, %v2132_v49 }
 0x972   :  { %v2810_v20 = vpop.f32.mrf.mxu2 }
 0x973   :  { %v6366_v27 = vadd.f32 %v2810_v20, %v2553_v41  ;;  %v2568_v41 = vpop.f32.mrf.mxu1  ;;  %v2141_v20 = vld [vmem:[%s7741_s4 + $0x390] sm:$0xff] }
 0x974   :  { %2615 = vmatmul.f32.gmra.mxu1 %v2141_v20 }
 0x975   :  { %7907 = vst [vmem:[#allocation19_spill] sm:$0xff] %v6366_v27 }
 0x977   :  { %3866 = vmatmul.msk.f32.gmra.mxu2 %vm2187_vm0, %v2134_v11 }
 0x97a   :  { %v2813_v38 = vpop.f32.mrf.mxu2 }
 0x97b   :  { %v6377_v49 = vadd.f32 %v2813_v38, %v2556_v54  ;;  %v2571_v54 = vpop.f32.mrf.mxu1  ;;  %v2143_v38 = vld [vmem:[%s7741_s4 + $0x3a0] sm:$0xff] }
 0x97c   :  { %2618 = vmatmul.f32.gmra.mxu1 %v2143_v38 }
 0x97d   :  { %7908 = vst [vmem:[#allocation8_spill] sm:$0xff] %v6377_v49 }
 0x97f   :  { %3867 = vmatmul.msk.f32.gmra.mxu2 %vm2187_vm0, %v2136_v13 }
 0x982   :  { %v2816_v19 = vpop.f32.mrf.mxu2 }
 0x983   :  { %v6388_v11 = vadd.f32 %v2816_v19, %v2559_v52  ;;  %v2574_v52 = vpop.f32.mrf.mxu1  ;;  %v2145_v19 = vld [vmem:[%s7741_s4 + $0x3b0] sm:$0xff] }
 0x984   :  { %2621 = vmatmul.f32.gmra.mxu1 %v2145_v19 }
 0x985   :  { %7909 = vst [vmem:[#allocation31_spill] sm:$0xff] %v6388_v11 }
 0x987   :  { %3868 = vmatmul.msk.f32.gmra.mxu2 %vm2187_vm0, %v2138_v25 }
 0x98a   :  { %v2819_v20 = vpop.f32.mrf.mxu2 }
 0x98b   :  { %v6399_v13 = vadd.f32 %v2819_v20, %v2562_v12  ;;  %v2577_v12 = vpop.f32.mrf.mxu1  ;;  %v2147_v20 = vld [vmem:[%s7741_s4 + $0x3c0] sm:$0xff] }
 0x98c   :  { %2624 = vmatmul.f32.gmra.mxu1 %v2147_v20 }
 0x98d   :  { %7910 = vst [vmem:[#allocation20_spill] sm:$0xff] %v6399_v13 }
 0x98f   :  { %3869 = vmatmul.msk.f32.gmra.mxu2 %vm2187_vm0, %v2140_v29  ;;  %v2149_v29 = vld [vmem:[%s7741_s4 + $0x3d0] sm:$0xff] }
 0x992   :  { %v2822_v38 = vpop.f32.mrf.mxu2 }
 0x993   :  { %v6410_v25 = vadd.f32 %v2822_v38, %v2565_v14  ;;  %v2580_v19 = vpop.f32.mrf.mxu1  ;;  %v2144_v14 = vld [vmem:[%s7741_s4 + $0x3a8] sm:$0xff] }
 0x994   :  { %2627 = vmatmul.f32.gmra.mxu1 %v2149_v29 }
 0x997   :  { %3870 = vmatmul.msk.f32.gmra.mxu2 %vm2187_vm0, %v2142_v10  ;;  %v2146_v10 = vld [vmem:[%s7741_s4 + $0x3b8] sm:$0xff] }
 0x99a   :  { %v2825_v0 = vpop.f32.mrf.mxu2 }
 0x99b   :  { %v6419_v45 = vadd.f32 %v2825_v0, %v2568_v41  ;;  %v2583_v20 = vpop.f32.mrf.mxu1  ;;  %v2151_v0 = vld [vmem:[%s7741_s4 + $0x3e0] sm:$0xff] }
 0x99c   :  { %2630 = vmatmul.f32.gmra.mxu1 %v2151_v0 }
 0x99f   :  { %3871 = vmatmul.msk.f32.gmra.mxu2 %vm2187_vm0, %v2144_v14  ;;  %v2148_v14 = vld [vmem:[%s7741_s4 + $0x3c8] sm:$0xff] }
 0x9a2   :  { %v2828_v38 = vpop.f32.mrf.mxu2 }
 0x9a3   :  { %v6428_v55 = vadd.f32 %v2828_v38, %v2571_v54  ;;  %v2586_v29 = vpop.f32.mrf.mxu1  ;;  %v2153_v54 = vld [vmem:[%s7741_s4 + $0x3f0] sm:$0xff] }
 0x9a4   :  { %2633 = vmatmul.f32.gmra.mxu1 %v2153_v54 }
 0x9a7   :  { %3872 = vmatmul.msk.f32.gmra.mxu2 %vm2187_vm0, %v2146_v10  ;;  %v2150_v10 = vld [vmem:[%s7741_s4 + $0x3d8] sm:$0xff] }
 0x9aa   :  { %v2831_v41 = vpop.f32.mrf.mxu2 }
 0x9ab   :  { %v6437_v16 = vadd.f32 %v2831_v41, %v2574_v52  ;;  %v2589_v0 = vpop.f32.mrf.mxu1  ;;  %v2155_v52 = vld [vmem:[%s7741_s4 + $0x400] sm:$0xff] }
 0x9ac   :  { %2636 = vmatmul.f32.gmra.mxu1 %v2155_v52 }
 0x9af   :  { %3873 = vmatmul.msk.f32.gmra.mxu2 %vm2187_vm0, %v2148_v14  ;;  %v2152_v14 = vld [vmem:[%s7741_s4 + $0x3e8] sm:$0xff] }
 0x9b2   :  { %v2834_v38 = vpop.f32.mrf.mxu2 }
 0x9b3   :  { %v6446_v42 = vadd.f32 %v2834_v38, %v2577_v12  ;;  %v2592_v54 = vpop.f32.mrf.mxu1  ;;  %v2157_v12 = vld [vmem:[%s7741_s4 + $0x410] sm:$0xff] }
 0x9b4   :  { %2639 = vmatmul.f32.gmra.mxu1 %v2157_v12 }
 0x9b7   :  { %3874 = vmatmul.msk.f32.gmra.mxu2 %vm2187_vm0, %v2150_v10  ;;  %v2154_v10 = vld [vmem:[%s7741_s4 + $0x3f8] sm:$0xff] }
 0x9ba   :  { %v2837_v41 = vpop.f32.mrf.mxu2 }
 0x9bb   :  { %v6455_v63 = vadd.f32 %v2837_v41, %v2580_v19  ;;  %v2595_v52 = vpop.f32.mrf.mxu1  ;;  %v2159_v19 = vld [vmem:[%s7741_s4 + $0x420] sm:$0xff] }
 0x9bc   :  { %2642 = vmatmul.f32.gmra.mxu1 %v2159_v19 }
 0x9bf   :  { %3875 = vmatmul.msk.f32.gmra.mxu2 %vm2187_vm0, %v2152_v14  ;;  %v2156_v14 = vld [vmem:[%s7741_s4 + $0x408] sm:$0xff] }
 0x9c2   :  { %v2840_v38 = vpop.f32.mrf.mxu2 }
 0x9c3   :  { %v6464_v30 = vadd.f32 %v2840_v38, %v2583_v20  ;;  %v2598_v12 = vpop.f32.mrf.mxu1  ;;  %v2161_v20 = vld [vmem:[%s7741_s4 + $0x430] sm:$0xff] }
 0x9c4   :  { %2645 = vmatmul.f32.gmra.mxu1 %v2161_v20 }
 0x9c7   :  { %3876 = vmatmul.msk.f32.gmra.mxu2 %vm2187_vm0, %v2154_v10  ;;  %v2158_v10 = vld [vmem:[%s7741_s4 + $0x418] sm:$0xff] }
 0x9ca   :  { %v2843_v41 = vpop.f32.mrf.mxu2 }
 0x9cb   :  { %v6473_v58 = vadd.f32 %v2843_v41, %v2586_v29  ;;  %v2601_v19 = vpop.f32.mrf.mxu1  ;;  %v2163_v29 = vld [vmem:[%s7741_s4 + $0x440] sm:$0xff] }
 0x9cc   :  { %2648 = vmatmul.f32.gmra.mxu1 %v2163_v29 }
 0x9cf   :  { %3877 = vmatmul.msk.f32.gmra.mxu2 %vm2187_vm0, %v2156_v14  ;;  %v2160_v14 = vld [vmem:[%s7741_s4 + $0x428] sm:$0xff] }
 0x9d2   :  { %v2846_v38 = vpop.f32.mrf.mxu2 }
 0x9d3   :  { %v6482_v4 = vadd.f32 %v2846_v38, %v2589_v0  ;;  %v2604_v20 = vpop.f32.mrf.mxu1  ;;  %v2165_v0 = vld [vmem:[%s7741_s4 + $0x450] sm:$0xff]  ;;  %v3061_v38 = vld [vmem:[%s7743_s5 + $0x78] sm:$0xff] }
 0x9d4   :  { %2651 = vmatmul.f32.gmra.mxu1 %v2165_v0  ;;  %3370 = vmatpush.msra.mxu3 %v3061_v38  ;;  %v3059_v0 = vld [vmem:[%s7743_s5 + $0x68] sm:$0xff]  ;;  %v2162_v38 = vld [vmem:[%s7741_s4 + $0x438] sm:$0xff] }
 0x9d7   :  { %3878 = vmatmul.msk.f32.gmra.mxu2 %vm2187_vm0, %v2158_v10 }
 0x9da   :  { %v2849_v41 = vpop.f32.mrf.mxu2 }
 0x9db   :  { %v6491_v47 = vadd.f32 %v2849_v41, %v2592_v54  ;;  %v3060_v54 = vld [vmem:[%s7743_s5 + $0x70] sm:$0xff]  ;;  %v2607_v41 = vpop.f32.mrf.mxu1 }
 0x9dc   :  { %3371 = vmatpush.msra.mxu3 %v3060_v54  ;;  %v3056_v54 = vld [vmem:[%s7743_s5 + $0x50] sm:$0xff] }
 0x9de   :  { %3372 = vmatpush.msra.mxu3 %v3059_v0  ;;  %v2169_v0 = vld [vmem:[%s7741_s4 + $0x470] sm:$0xff] }
 0x9df   :  { %3879 = vmatmul.msk.f32.gmra.mxu2 %vm2187_vm0, %v2160_v14  ;;  %v2167_v14 = vld [vmem:[%s7741_s4 + $0x460] sm:$0xff] }
 0x9e0   :  { %2654 = vmatmul.f32.gmra.mxu1 %v2167_v14  ;;  %3373 = vmatpush.msra.mxu3 %v3058_v31  ;;  %v3055_v31 = vld [vmem:[%s7743_s5 + $0x48] sm:$0xff]  ;;  %v3054_v14 = vld [vmem:[%s7743_s5 + $0x40] sm:$0xff] }
 0x9e2   :  { %v2852_v29 = vpop.f32.mrf.mxu2 }
 0x9e3   :  { %v6506_v10 = vadd.f32 %v2852_v29, %v2595_v52  ;;  %v3057_v52 = vld [vmem:[%s7743_s5 + $0x58] sm:$0xff]  ;;  %v2610_v8 = vpop.f32.mrf.mxu1 }
 0x9e4   :  { %3374 = vmatpush.msra.mxu3 %v3057_v52  ;;  %v3052_v52 = vld [vmem:[%s7743_s5 + $0x30] sm:$0xff] }
 0x9e6   :  { %3375 = vmatpush.msra.mxu3 %v3056_v54 }
 0x9e7   :  { %3880 = vmatmul.msk.f32.gmra.mxu2 %vm2187_vm0, %v2162_v38  ;;  %v2164_v38 = vld [vmem:[%s7741_s4 + $0x448] sm:$0xff] }
 0x9e8   :  { %3376 = vmatpush.msra.mxu3 %v3055_v31  ;;  %2657 = vmatmul.f32.gmra.mxu1 %v2169_v0  ;;  %v3051_v31 = vld [vmem:[%s7743_s5 + $0x28] sm:$0xff]  ;;  %v2171_v0 = vld [vmem:[%s7741_s4 + $0x480] sm:$0xff] }
 0x9ea   :  { %v2855_v29 = vpop.f32.mrf.mxu2  ;;  %3377 = vmatpush.msra.mxu3 %v3054_v14  ;;  %v3050_v14 = vld [vmem:[%s7743_s5 + $0x20] sm:$0xff] }
 0x9eb   :  { %v6527_v33 = vadd.f32 %v2855_v29, %v2598_v12  ;;  %v3053_v12 = vld [vmem:[%s7743_s5 + $0x38] sm:$0xff]  ;;  %v2613_v13 = vpop.f32.mrf.mxu1 }
 0x9ec   :  { %3378 = vmatpush.msra.mxu3 %v3053_v12  ;;  %v3048_v12 = vld [vmem:[%s7743_s5 + $0x10] sm:$0xff] }
 0x9ee   :  { %3379 = vmatpush.msra.mxu3 %v3052_v52 }
 0x9ef   :  { %3881 = vmatmul.msk.f32.gmra.mxu2 %vm2187_vm0, %v2164_v38  ;;  %v2166_v38 = vld [vmem:[%s7741_s4 + $0x458] sm:$0xff] }
 0x9f0   :  { %3380 = vmatpush.msra.mxu3 %v3051_v31  ;;  %2660 = vmatmul.f32.gmra.mxu1 %v2171_v0  ;;  %v3047_v31 = vld [vmem:[%s7743_s5 + $0x8] sm:$0xff]  ;;  %v2173_v0 = vld [vmem:[%s7741_s4 + $0x490] sm:$0xff] }
 0x9f2   :  { %v2858_v54 = vpop.f32.mrf.mxu2  ;;  %3381 = vmatpush.msra.mxu3 %v3050_v14  ;;  %v3046_v14 = vld [vmem:[%s7743_s5] sm:$0xff] }
 0x9f3   :  { %v6548_v29 = vadd.f32 %v2858_v54, %v2601_v19  ;;  %v3049_v19 = vld [vmem:[%s7743_s5 + $0x18] sm:$0xff]  ;;  %v2616_v2 = vpop.f32.mrf.mxu1 }
 0x9f4   :  { %3382 = vmatpush.msra.mxu3 %v3049_v19  ;;  %v3076_v19 = vld [vmem:[%s7743_s5 + $0xf0] sm:$0xff] }
 0x9f6   :  { %3383 = vmatpush.msra.mxu3 %v3048_v12 }
 0x9f7   :  { %3882 = vmatmul.msk.f32.gmra.mxu2 %vm2187_vm0, %v2166_v38  ;;  %v2168_v38 = vld [vmem:[%s7741_s4 + $0x468] sm:$0xff] }
 0x9f8   :  { %3384 = vmatpush.msra.mxu3 %v3047_v31  ;;  %2663 = vmatmul.f32.gmra.mxu1 %v2173_v0  ;;  %v3075_v31 = vld [vmem:[%s7743_s5 + $0xe8] sm:$0xff]  ;;  %v3074_v0 = vld [vmem:[%s7743_s5 + $0xe0] sm:$0xff] }
 0x9fa   :  { %v2861_v52 = vpop.f32.mrf.mxu2  ;;  %3385 = vmatpush.msra.mxu3 %v3046_v14  ;;  %v2175_v14 = vld [vmem:[%s7741_s4 + $0x4a0] sm:$0xff] }
 0x9fb   :  { %v6569_v54 = vadd.f32 %v2861_v52, %v2604_v20  ;;  %v3077_v20 = vld [vmem:[%s7743_s5 + $0xf8] sm:$0xff]  ;;  %v2619_v11 = vpop.f32.mrf.mxu1 }
 0x9fc   :  { %3390 = vmatpush.msrb.mxu3 %v3077_v20  ;;  %v3072_v20 = vld [vmem:[%s7743_s5 + $0xd0] sm:$0xff] }
 0x9fe   :  { %3391 = vmatpush.msrb.mxu3 %v3076_v19 }
 0x9ff   :  { %3883 = vmatmul.msk.f32.gmra.mxu2 %vm2187_vm0, %v2168_v38  ;;  %v2170_v38 = vld [vmem:[%s7741_s4 + $0x478] sm:$0xff] }
 0xa00   :  { %3392 = vmatpush.msrb.mxu3 %v3075_v31  ;;  %2666 = vmatmul.f32.gmra.mxu1 %v2175_v14  ;;  %v3071_v31 = vld [vmem:[%s7743_s5 + $0xc8] sm:$0xff]  ;;  %v2177_v14 = vld [vmem:[%s7741_s4 + $0x4b0] sm:$0xff] }
 0xa02   :  { %v2864_v12 = vpop.f32.mrf.mxu2  ;;  %3393 = vmatpush.msrb.mxu3 %v3074_v0  ;;  %v3070_v0 = vld [vmem:[%s7743_s5 + $0xc0] sm:$0xff] }
 0xa03   :  { %v6590_v52 = vadd.f32 %v2864_v12, %v2607_v41  ;;  %v3073_v41 = vld [vmem:[%s7743_s5 + $0xd8] sm:$0xff]  ;;  %v2622_v32 = vpop.f32.mrf.mxu1 }
 0xa04   :  { %3394 = vmatpush.msrb.mxu3 %v3073_v41  ;;  %v3068_v41 = vld [vmem:[%s7743_s5 + $0xb0] sm:$0xff] }
 0xa06   :  { %3395 = vmatpush.msrb.mxu3 %v3072_v20 }
 0xa07   :  { %3884 = vmatmul.msk.f32.gmra.mxu2 %vm2187_vm0, %v2170_v38  ;;  %v2172_v38 = vld [vmem:[%s7741_s4 + $0x488] sm:$0xff] }
 0xa08   :  { %3396 = vmatpush.msrb.mxu3 %v3071_v31  ;;  %2669 = vmatmul.f32.gmra.mxu1 %v2177_v14  ;;  %v3067_v31 = vld [vmem:[%s7743_s5 + $0xa8] sm:$0xff]  ;;  %v3066_v14 = vld [vmem:[%s7743_s5 + $0xa0] sm:$0xff] }
 0xa0a   :  { %v2867_v19 = vpop.f32.mrf.mxu2  ;;  %3397 = vmatpush.msrb.mxu3 %v3070_v0  ;;  %v2174_v0 = vld [vmem:[%s7741_s4 + $0x498] sm:$0xff] }
 0xa0b   :  { %v6611_v12 = vadd.f32 %v2867_v19, %v2610_v8  ;;  %v3069_v8 = vld [vmem:[%s7743_s5 + $0xb8] sm:$0xff]  ;;  %v2625_v49 = vpop.f32.mrf.mxu1 }
 0xa0c   :  { %3398 = vmatpush.msrb.mxu3 %v3069_v8  ;;  %v3064_v8 = vld [vmem:[%s7743_s5 + $0x90] sm:$0xff] }
 0xa0e   :  { %3399 = vmatpush.msrb.mxu3 %v3068_v41 }
 0xa0f   :  { %3885 = vmatmul.msk.f32.gmra.mxu2 %vm2187_vm0, %v2172_v38  ;;  %v3065_v38 = vld [vmem:[%s7743_s5 + $0x98] sm:$0xff] }
 0xa10   :  { %3400 = vmatpush.msrb.mxu3 %v3067_v31 }
 0xa12   :  { %v2870_v20 = vpop.f32.mrf.mxu2  ;;  %3401 = vmatpush.msrb.mxu3 %v3066_v14  ;;  %v3063_v14 = vld [vmem:[%s7743_s5 + $0x88] sm:$0xff] }
 0xa13   :  { %v6632_v19 = vadd.f32 %v2870_v20, %v2613_v13  ;;  %v2179_v13 = vld [vmem:[%s7741_s4 + $0x4c0] sm:$0xff]  ;;  %v2628_v31 = vpop.f32.mrf.mxu1 }
 0xa14   :  { %2672 = vmatmul.f32.gmra.mxu1 %v2179_v13  ;;  %3402 = vmatpush.msrb.mxu3 %v3065_v38  ;;  %v3062_v13 = vld [vmem:[%s7743_s5 + $0x80] sm:$0xff]  ;;  %v3189_v38 = vld [vmem:[%s7743_s5 + $0x478] sm:$0xff] }
 0xa15   :  { %3530 = vmatpush.msra.mxu0 %v3189_v38  ;;  %v2183_v38 = vld [vmem:[%s7741_s4 + $0x4e0] sm:$0xff] }
 0xa16   :  { %3403 = vmatpush.msrb.mxu3 %v3064_v8 }
 0xa17   :  { %3886 = vmatmul.msk.f32.gmra.mxu2 %vm2187_vm0, %v2174_v0  ;;  %v2176_v0 = vld [vmem:[%s7741_s4 + $0x4a8] sm:$0xff] }
 0xa18   :  { %3404 = vmatpush.msrb.mxu3 %v3063_v14 }
 0xa1a   :  { %v2873_v41 = vpop.f32.mrf.mxu2  ;;  %3405 = vmatpush.msrb.mxu3 %v3062_v13 }
 0xa1b   :  { %v6653_v20 = vadd.f32 %v2873_v41, %v2616_v2  ;;  %v2181_v2 = vld [vmem:[%s7741_s4 + $0x4d0] sm:$0xff]  ;;  %v6676_v13 = vpop.f32.mrf.mxu1 }
 0xa1c   :  { %2675 = vmatmul.f32.gmra.mxu1 %v2181_v2  ;;  %v3188_v41 = vld [vmem:[%s7743_s5 + $0x470] sm:$0xff]  ;;  %v3187_v2 = vld [vmem:[%s7743_s5 + $0x468] sm:$0xff] }
 0xa1d   :  { %7911 = vst [vmem:[#allocation9_spill] sm:$0xff] %v6653_v20  ;;  %3531 = vmatpush.msra.mxu0 %v3188_v41  ;;  %v2182_v20 = vld [vmem:[%s7741_s4 + $0x4d8] sm:$0xff] }
 0xa1f   :  { %3887 = vmatmul.msk.f32.gmra.mxu2 %vm2187_vm0, %v2176_v0  ;;  %v2178_v0 = vld [vmem:[%s7741_s4 + $0x4b8] sm:$0xff]  ;;  %3532 = vmatpush.msra.mxu0 %v3187_v2  ;;  %v3184_v2 = vld [vmem:[%s7743_s5 + $0x450] sm:$0xff] }
 0xa22   :  { %v2876_v8 = vpop.f32.mrf.mxu2 }
 0xa23   :  { %v6674_v14 = vadd.f32 %v2876_v8, %v2619_v11  ;;  %v3186_v11 = vld [vmem:[%s7743_s5 + $0x460] sm:$0xff]  ;;  %v3185_v8 = vld [vmem:[%s7743_s5 + $0x458] sm:$0xff]  ;;  %v6699_v23 = vpop.f32.mrf.mxu1 }
 0xa24   :  { %2678 = vmatmul.f32.gmra.mxu1 %v2183_v38  ;;  %3533 = vmatpush.msra.mxu0 %v3186_v11  ;;  %v3183_v38 = vld [vmem:[%s7743_s5 + $0x448] sm:$0xff]  ;;  %v2185_v11 = vld [vmem:[%s7741_s4 + $0x4f0] sm:$0xff] }
 0xa25   :  { %7912 = vst [vmem:[#allocation32_spill] sm:$0xff] %v6674_v14 }
 0xa26   :  { %3534 = vmatpush.msra.mxu0 %v3185_v8  ;;  %v3181_v8 = vld [vmem:[%s7743_s5 + $0x438] sm:$0xff] }
 0xa27   :  { %3888 = vmatmul.msk.f32.gmra.mxu2 %vm2187_vm0, %v2178_v0  ;;  %v2180_v0 = vld [vmem:[%s7741_s4 + $0x4c8] sm:$0xff] }
 0xa28   :  { %3535 = vmatpush.msra.mxu0 %v3184_v2  ;;  %v3180_v2 = vld [vmem:[%s7743_s5 + $0x430] sm:$0xff] }
 0xa2a   :  { %v2879_v41 = vpop.f32.mrf.mxu2  ;;  %3536 = vmatpush.msra.mxu0 %v3183_v38 }
 0xa2b   :  { %v6697_v14 = vadd.f32 %v2879_v41, %v2622_v32  ;;  %v3182_v32 = vld [vmem:[%s7743_s5 + $0x440] sm:$0xff] }
 0xa2c   :  { %2681 = vmatmul.f32.gmra.mxu1 %v2185_v11  ;;  %3537 = vmatpush.msra.mxu0 %v3182_v32  ;;  %v6732_v32 = vld [vmem:[%s7742_s3] ss:$0 sm:$0xff] }
 0xa2d   :  { %7913 = vst [vmem:[#allocation21_spill] sm:$0xff] %v6697_v14  ;;  %v6720_v14 = vpop.f32.mrf.mxu1 }
 0xa2e   :  { %3538 = vmatpush.msra.mxu0 %v3181_v8  ;;  %v7914_v8 = vmax.f32 %v6010_v60, %v6190_v1  ;;  %v3093_v60 = vld [vmem:[%s7743_s5 + $0x178] sm:$0xff]  ;;  %v2184_v1 = vld [vmem:[%s7741_s4 + $0x4e8] sm:$0xff] }
 0xa2f   :  { %3889 = vmatmul.msk.f32.gmra.mxu2 %vm2187_vm0, %v2180_v0  ;;  %v3179_v0 = vld [vmem:[%s7743_s5 + $0x428] sm:$0xff] }
 0xa30   :  { %3539 = vmatpush.msra.mxu0 %v3180_v2 }
 0xa32   :  { %v2882_v41 = vpop.f32.mrf.mxu2  ;;  %3540 = vmatpush.msra.mxu0 %v3179_v0  ;;  %v3176_v0 = vld [vmem:[%s7743_s5 + $0x410] sm:$0xff] }
 0xa33   :  { %v2883_v38 = vadd.f32 %v2882_v41, %v2625_v49  ;;  %v3178_v49 = vld [vmem:[%s7743_s5 + $0x420] sm:$0xff] }
 0xa34   :  { %3541 = vmatpush.msra.mxu0 %v3178_v49 }
 0xa35   :  { %v2962_v11 = vmax.f32 %v6410_v25, %v2883_v38  ;;  %v3177_v25 = vld [vmem:[%s7743_s5 + $0x418] sm:$0xff] }
 0xa36   :  { %3542 = vmatpush.msra.mxu0 %v3177_v25 }
 0xa37   :  { %v2982_v41 = vmax.f32 %v7914_v8, %v2962_v11  ;;  %3890 = vmatmul.msk.f32.gmra.mxu2 %vm2187_vm0, %v2182_v20  ;;  %v6754_v20 = vpop.f32.mrf.mxu1  ;;  %v3175_v11 = vld [vmem:[%s7743_s5 + $0x408] sm:$0xff]  ;;  %v3174_v8 = vld [vmem:[%s7743_s5 + $0x400] sm:$0xff] }
 0xa38   :  { %3543 = vmatpush.msra.mxu0 %v3176_v0 }
 0xa39   :  { %v3006_v2 = vadd.f32 %v6732_v32, %v2982_v41  ;;  %v7915_v41 = vmax.f32 %v6019_v15, %v6201_v39  ;;  %v3220_v15 = vld [vmem:[%s7743_s5 + $0x570] sm:$0xff] }
 0xa3a   :  { %v2885_v38 = vpop.f32.mrf.mxu2  ;;  %3544 = vmatpush.msra.mxu0 %v3175_v11  ;;  %v2186_v11 = vld [vmem:[%s7741_s4 + $0x4f8] sm:$0xff] }
 0xa3b   :  { %v3026_v27 = vmax.f32 %v3006_v2, 0.0  ;;  %v2886_v5 = vadd.f32 %v2885_v38, %v2628_v31  ;;  %v3092_v31 = vld [vmem:[%s7743_s5 + $0x170] sm:$0xff]  ;;  %v3090_v2 = vld [vmem:[%s7743_s5 + $0x160] sm:$0xff] }
 0xa3c   :  { %3545 = vmatpush.msra.mxu0 %v3174_v8 }
 0xa3d   :  { %v2963_v49 = vmax.f32 %v6419_v45, %v2886_v5  ;;  %3386 = vmatmul.f32.vlgmr.msra.gmra.mxu3 %v3026_v27  ;;  %v3091_v5 = vld [vmem:[%s7743_s5 + $0x168] sm:$0xff]  ;;  %v3221_v45 = vld [vmem:[%s7743_s5 + $0x578] sm:$0xff] }
 0xa3e   :  { %3410 = vmatpush.msra.mxu3 %v3093_v60  ;;  %3570 = vmatpush.msrb.mxu0 %v3221_v45  ;;  %v3089_v60 = vld [vmem:[%s7743_s5 + $0x158] sm:$0xff]  ;;  %v3086_v45 = vld [vmem:[%s7743_s5 + $0x140] sm:$0xff] }
 0xa3f   :  { %v2983_v25 = vmax.f32 %v7915_v41, %v2963_v49  ;;  %3891 = vmatmul.msk.f32.gmra.mxu2 %vm2187_vm0, %v2184_v1  ;;  %v3219_v1 = vld [vmem:[%s7743_s5 + $0x568] sm:$0xff]  ;;  %v6800_v8 = vpop.f32.mrf.mxu1  ;;  %v7916_v41 = vmax.f32 %v6028_v24, %v6212_v3  ;;  %v3216_v24 = vld [vmem:[%s7743_s5 + $0x550] sm:$0xff] }
 0xa40   :  { %3411 = vmatpush.msra.mxu3 %v3092_v31  ;;  %3571 = vmatpush.msrb.mxu0 %v3220_v15  ;;  %v3218_v31 = vld [vmem:[%s7743_s5 + $0x560] sm:$0xff]  ;;  %v3215_v15 = vld [vmem:[%s7743_s5 + $0x548] sm:$0xff] }
 0xa41   :  { %v3007_v27 = vadd.f32 %v6732_v32, %v2983_v25 }
 0xa42   :  { %3412 = vmatpush.msra.mxu3 %v3091_v5  ;;  %v2888_v39 = vpop.f32.mrf.mxu2  ;;  %3572 = vmatpush.msrb.mxu0 %v3219_v1  ;;  %v3217_v5 = vld [vmem:[%s7743_s5 + $0x558] sm:$0xff]  ;;  %v3083_v1 = vld [vmem:[%s7743_s5 + $0x128] sm:$0xff] }
 0xa43   :  { %v3027_v38 = vmax.f32 %v3007_v27, 0.0  ;;  %v2889_v0 = vadd.f32 %v2888_v39, %v6676_v13  ;;  %v3088_v13 = vld [vmem:[%s7743_s5 + $0x150] sm:$0xff] }
 0xa44   :  { %3413 = vmatpush.msra.mxu3 %v3090_v2  ;;  %3573 = vmatpush.msrb.mxu0 %v3218_v31  ;;  %v3085_v2 = vld [vmem:[%s7743_s5 + $0x138] sm:$0xff] }
 0xa45   :  { %v2964_v49 = vmax.f32 %v6428_v55, %v2889_v0  ;;  %3406 = vmatmul.f32.vlgmr.msrb.gmra.mxu3 %v3027_v38  ;;  %v3087_v55 = vld [vmem:[%s7743_s5 + $0x148] sm:$0xff]  ;;  %v3084_v38 = vld [vmem:[%s7743_s5 + $0x130] sm:$0xff]  ;;  %v7917_v0 = vmax.f32 %v6037_v9, %v6223_v34  ;;  %v3081_v31 = vld [vmem:[%s7743_s5 + $0x118] sm:$0xff] }
 0xa46   :  { %3414 = vmatpush.msra.mxu3 %v3089_v60  ;;  %3574 = vmatpush.msrb.mxu0 %v3217_v5  ;;  %v3212_v9 = vld [vmem:[%s7743_s5 + $0x530] sm:$0xff] }
 0xa47   :  { %v2984_v25 = vmax.f32 %v7916_v41, %v2964_v49  ;;  %3892 = vmatmul.msk.f32.gmra.mxu2 %vm2187_vm0, %v2186_v11  ;;  %v2646_v11 = vpop.f32.mrf.mxu1  ;;  %v3082_v49 = vld [vmem:[%s7743_s5 + $0x120] sm:$0xff]  ;;  %v3211_v41 = vld [vmem:[%s7743_s5 + $0x528] sm:$0xff]  ;;  %v3080_v5 = vld [vmem:[%s7743_s5 + $0x110] sm:$0xff] }
 0xa48   :  { %3415 = vmatpush.msra.mxu3 %v3088_v13  ;;  %3575 = vmatpush.msrb.mxu0 %v3216_v24  ;;  %v7918_v24 = vmax.f32 %v6046_v56, %v6234_v51  ;;  %v3208_v56 = vld [vmem:[%s7743_s5 + $0x510] sm:$0xff] }
 0xa4a   :  { %3416 = vmatpush.msra.mxu3 %v3087_v55  ;;  %v2891_v3 = vpop.f32.mrf.mxu2  ;;  %3576 = vmatpush.msrb.mxu0 %v3215_v15 }
 0xa4b   :  { %v2892_v27 = vadd.f32 %v2891_v3, %v6699_v23  ;;  %v3214_v23 = vld [vmem:[%s7743_s5 + $0x540] sm:$0xff] }
 0xa4c   :  { %3417 = vmatpush.msra.mxu3 %v3086_v45  ;;  %3577 = vmatpush.msrb.mxu0 %v3214_v23  ;;  %v3008_v45 = vadd.f32 %v6732_v32, %v2984_v25  ;;  %v3207_v23 = vld [vmem:[%s7743_s5 + $0x508] sm:$0xff] }
 0xa4d   :  { %v2965_v39 = vmax.f32 %v6437_v16, %v2892_v27  ;;  %v3213_v16 = vld [vmem:[%s7743_s5 + $0x538] sm:$0xff] }
 0xa4e   :  { %3418 = vmatpush.msra.mxu3 %v3085_v2  ;;  %3578 = vmatpush.msrb.mxu0 %v3213_v16  ;;  %v3209_v27 = vld [vmem:[%s7743_s5 + $0x518] sm:$0xff]  ;;  %v3078_v2 = vld [vmem:[%s7743_s5 + $0x100] sm:$0xff]  ;;  %v3028_v15 = vmax.f32 %v3008_v45, 0.0  ;;  %v7919_v16 = vmax.f32 %v6055_v18, %v6245_v26 }
 0xa4f   :  { %v6835_v60 = vmax.f32 %v7917_v0, %v2965_v39  ;;  %v2649_v25 = vpop.f32.mrf.mxu1  ;;  %v3105_v18 = vld [vmem:[%s7743_s5 + $0x1d8] sm:$0xff] }
 0xa50   :  { %3419 = vmatpush.msra.mxu3 %v3084_v38  ;;  %3579 = vmatpush.msrb.mxu0 %v3212_v9  ;;  %v3109_v38 = vld [vmem:[%s7743_s5 + $0x1f8] sm:$0xff]  ;;  %v3106_v9 = vld [vmem:[%s7743_s5 + $0x1e0] sm:$0xff] }
 0xa52   :  { %3420 = vmatpush.msra.mxu3 %v3083_v1  ;;  %v2894_v34 = vpop.f32.mrf.mxu2  ;;  %3580 = vmatpush.msrb.mxu0 %v3211_v41  ;;  %v3108_v1 = vld [vmem:[%s7743_s5 + $0x1f0] sm:$0xff] }
 0xa53   :  { %v2895_v13 = vadd.f32 %v2894_v34, %v6720_v14  ;;  %v3210_v14 = vld [vmem:[%s7743_s5 + $0x520] sm:$0xff]  ;;  %v3104_v41 = vld [vmem:[%s7743_s5 + $0x1d0] sm:$0xff] }
 0xa54   :  { %3421 = vmatpush.msra.mxu3 %v3082_v49  ;;  %3581 = vmatpush.msrb.mxu0 %v3210_v14  ;;  %v3102_v14 = vld [vmem:[%s7743_s5 + $0x1c0] sm:$0xff] }
 0xa55   :  { %v2966_v55 = vmax.f32 %v6446_v42, %v2895_v13  ;;  %v3079_v42 = vld [vmem:[%s7743_s5 + $0x108] sm:$0xff] }
 0xa56   :  { %3422 = vmatpush.msra.mxu3 %v3081_v31  ;;  %3582 = vmatpush.msrb.mxu0 %v3209_v27  ;;  %v7921_v27 = vmax.f32 %v6073_v61, %v6267_v43  ;;  %v3096_v43 = vld [vmem:[%s7743_s5 + $0x190] sm:$0xff] }
 0xa57   :  { %v6867_v3 = vmax.f32 %v7918_v24, %v2966_v55  ;;  %v2652_v26 = vpop.f32.mrf.mxu1  ;;  %v7920_v55 = vmax.f32 %v6064_v37, %v6256_v28  ;;  %v3101_v24 = vld [vmem:[%s7743_s5 + $0x1b8] sm:$0xff]  ;;  %v3100_v28 = vld [vmem:[%s7743_s5 + $0x1b0] sm:$0xff] }
 0xa58   :  { %3423 = vmatpush.msra.mxu3 %v3080_v5  ;;  %3583 = vmatpush.msrb.mxu0 %v3208_v56 }
 0xa5a   :  { %3424 = vmatpush.msra.mxu3 %v3079_v42  ;;  %v2897_v51 = vpop.f32.mrf.mxu2  ;;  %3584 = vmatpush.msrb.mxu0 %v3207_v23 }
 0xa5b   :  { %v2898_v39 = vadd.f32 %v2897_v51, %v6754_v20  ;;  %v3206_v20 = vld [vmem:[%s7743_s5 + $0x500] sm:$0xff] }
 0xa5c   :  { %3425 = vmatpush.msra.mxu3 %v3078_v2  ;;  %3585 = vmatpush.msrb.mxu0 %v3206_v20 }
 0xa5d   :  { %v2967_v0 = vmax.f32 %v6455_v63, %v2898_v39  ;;  %3426 = vmatmul.f32.vlgmr.msra.gmra.mxu3 %v3028_v15  ;;  %v3107_v63 = vld [vmem:[%s7743_s5 + $0x1e8] sm:$0xff]  ;;  %v3097_v15 = vld [vmem:[%s7743_s5 + $0x198] sm:$0xff]  ;;  %v3009_v39 = vadd.f32 %v6732_v32, %v6835_v60 }
 0xa5e   :  { %3430 = vmatpush.msrb.mxu3 %v3109_v38  ;;  %v7922_v38 = vmax.f32 %v6082_v22, %v6278_v6  ;;  %v3125_v22 = vld [vmem:[%s7743_s5 + $0x278] sm:$0xff] }
 0xa5f   :  { %v6898_v49 = vmax.f32 %v7919_v16, %v2967_v0  ;;  %v2655_v42 = vpop.f32.mrf.mxu1  ;;  %v3029_v16 = vmax.f32 %v3009_v39, 0.0  ;;  %v3253_v6 = vld [vmem:[%s7743_s5 + $0x678] sm:$0xff] }
 0xa60   :  { %3431 = vmatpush.msrb.mxu3 %v3108_v1  ;;  %v3094_v1 = vld [vmem:[%s7743_s5 + $0x180] sm:$0xff] }
 0xa62   :  { %3432 = vmatpush.msrb.mxu3 %v3107_v63  ;;  %v2900_v34 = vpop.f32.mrf.mxu2 }
 0xa63   :  { %v2901_v13 = vadd.f32 %v2900_v34, %v6800_v8  ;;  %v3103_v8 = vld [vmem:[%s7743_s5 + $0x1c8] sm:$0xff]  ;;  %v3124_v34 = vld [vmem:[%s7743_s5 + $0x270] sm:$0xff] }
 0xa64   :  { %3433 = vmatpush.msrb.mxu3 %v3106_v9 }
 0xa65   :  { %v2968_v31 = vmax.f32 %v6464_v30, %v2901_v13  ;;  %v3252_v13 = vld [vmem:[%s7743_s5 + $0x670] sm:$0xff] }
 0xa66   :  { %3434 = vmatpush.msrb.mxu3 %v3105_v18  ;;  %v7923_v18 = vmax.f32 %v6091_v40, %v6289_v7  ;;  %v3250_v40 = vld [vmem:[%s7743_s5 + $0x660] sm:$0xff] }
 0xa67   :  { %v6917_v5 = vmax.f32 %v7920_v55, %v2968_v31  ;;  %v2658_v0 = vpop.f32.mrf.mxu1  ;;  %v3251_v31 = vld [vmem:[%s7743_s5 + $0x668] sm:$0xff] }
 0xa68   :  { %3435 = vmatpush.msrb.mxu3 %v3104_v41  ;;  %v3122_v41 = vld [vmem:[%s7743_s5 + $0x260] sm:$0xff] }
 0xa6a   :  { %3436 = vmatpush.msrb.mxu3 %v3103_v8  ;;  %v2903_v30 = vpop.f32.mrf.mxu2 }
 0xa6b   :  { %v2904_v45 = vadd.f32 %v2903_v30, %v2646_v11  ;;  %v3099_v11 = vld [vmem:[%s7743_s5 + $0x1a8] sm:$0xff]  ;;  %v3249_v30 = vld [vmem:[%s7743_s5 + $0x658] sm:$0xff] }
 0xa6c   :  { %3437 = vmatpush.msrb.mxu3 %v3102_v14  ;;  %v3121_v14 = vld [vmem:[%s7743_s5 + $0x258] sm:$0xff] }
 0xa6d   :  { %v2969_v37 = vmax.f32 %v6473_v58, %v2904_v45  ;;  %v3098_v58 = vld [vmem:[%s7743_s5 + $0x1a0] sm:$0xff] }
 0xa6e   :  { %3438 = vmatpush.msrb.mxu3 %v3101_v24  ;;  %v3120_v24 = vld [vmem:[%s7743_s5 + $0x250] sm:$0xff] }
 0xa6f   :  { %v6935_v2 = vmax.f32 %v7921_v27, %v2969_v37  ;;  %v2661_v55 = vpop.f32.mrf.mxu1  ;;  %v3248_v37 = vld [vmem:[%s7743_s5 + $0x650] sm:$0xff]  ;;  %v3119_v27 = vld [vmem:[%s7743_s5 + $0x248] sm:$0xff] }
 0xa70   :  { %3439 = vmatpush.msrb.mxu3 %v3100_v28  ;;  %v7924_v28 = vmax.f32 %v6100_v62, %v6300_v35  ;;  %v3246_v62 = vld [vmem:[%s7743_s5 + $0x640] sm:$0xff] }
 0xa72   :  { %3440 = vmatpush.msrb.mxu3 %v3099_v11  ;;  %v2906_v56 = vpop.f32.mrf.mxu2 }
 0xa73   :  { %v2907_v51 = vadd.f32 %v2906_v56, %v2649_v25  ;;  %v3095_v25 = vld [vmem:[%s7743_s5 + $0x188] sm:$0xff] }
 0xa74   :  { %3441 = vmatpush.msrb.mxu3 %v3098_v58  ;;  %v3118_v58 = vld [vmem:[%s7743_s5 + $0x240] sm:$0xff] }
 0xa75   :  { %v2970_v61 = vmax.f32 %v6482_v4, %v2907_v51 }
 0xa76   :  { %3442 = vmatpush.msrb.mxu3 %v3097_v15  ;;  %v3117_v15 = vld [vmem:[%s7743_s5 + $0x238] sm:$0xff] }
 0xa77   :  { %v2990_v23 = vmax.f32 %v7922_v38, %v2970_v61  ;;  %v3245_v61 = vld [vmem:[%s7743_s5 + $0x638] sm:$0xff]  ;;  %v3116_v38 = vld [vmem:[%s7743_s5 + $0x230] sm:$0xff] }
 0xa78   :  { %3443 = vmatpush.msrb.mxu3 %v3096_v43  ;;  %v2664_v43 = vpop.f32.mrf.mxu1 }
 0xa79   :  { %v3014_v4 = vadd.f32 %v6732_v32, %v2990_v23  ;;  %v3244_v23 = vld [vmem:[%s7743_s5 + $0x630] sm:$0xff] }
 0xa7a   :  { %3444 = vmatpush.msrb.mxu3 %v3095_v25  ;;  %v2909_v20 = vpop.f32.mrf.mxu2  ;;  %v7925_v25 = vmax.f32 %v6109_v17, %v6311_v36  ;;  %v3242_v17 = vld [vmem:[%s7743_s5 + $0x620] sm:$0xff] }
 0xa7b   :  { %v3034_v60 = vmax.f32 %v3014_v4, 0.0  ;;  %v2910_v63 = vadd.f32 %v2909_v20, %v2652_v26  ;;  %v3243_v4 = vld [vmem:[%s7743_s5 + $0x628] sm:$0xff] }
 0xa7c   :  { %3445 = vmatpush.msrb.mxu3 %v3094_v1  ;;  %v3114_v1 = vld [vmem:[%s7743_s5 + $0x220] sm:$0xff] }
 0xa7d   :  { %v2971_v9 = vmax.f32 %v6491_v47, %v2910_v63  ;;  %3446 = vmatmul.f32.vlgmr.msrb.gmra.mxu3 %v3029_v16  ;;  %3546 = vmatmul.f32.vlgmr.msra.gmra.mxu0 %v3034_v60  ;;  %v3123_v47 = vld [vmem:[%s7743_s5 + $0x268] sm:$0xff]  ;;  %v3113_v16 = vld [vmem:[%s7743_s5 + $0x218] sm:$0xff] }
 0xa7e   :  { %3450 = vmatpush.msra.mxu3 %v3125_v22  ;;  %3610 = vmatpush.msra.mxu0 %v3253_v6  ;;  %v3241_v60 = vld [vmem:[%s7743_s5 + $0x618] sm:$0xff]  ;;  %v3112_v22 = vld [vmem:[%s7743_s5 + $0x210] sm:$0xff] }
 0xa7f   :  { %v6978_v26 = vmax.f32 %v7923_v18, %v2971_v9  ;;  %v3240_v6 = vld [vmem:[%s7743_s5 + $0x610] sm:$0xff] }
 0xa80   :  { %3451 = vmatpush.msra.mxu3 %v3124_v34  ;;  %3611 = vmatpush.msra.mxu0 %v3252_v13  ;;  %v2667_v9 = vpop.f32.mrf.mxu1  ;;  %v3010_v34 = vadd.f32 %v6732_v32, %v6867_v3  ;;  %v7926_v13 = vmax.f32 %v6118_v57, %v6322_v48  ;;  %v3110_v3 = vld [vmem:[%s7743_s5 + $0x200] sm:$0xff] }
 0xa81   :  { %v3238_v57 = vld [vmem:[%s7743_s5 + $0x600] sm:$0xff] }
 0xa82   :  { %3452 = vmatpush.msra.mxu3 %v3123_v47  ;;  %3612 = vmatpush.msra.mxu0 %v3251_v31  ;;  %v2912_v7 = vpop.f32.mrf.mxu2  ;;  %v3239_v47 = vld [vmem:[%s7743_s5 + $0x608] sm:$0xff] }
 0xa83   :  { %v2913_v8 = vadd.f32 %v2912_v7, %v2655_v42 }
 0xa84   :  { %3453 = vmatpush.msra.mxu3 %v3122_v41  ;;  %3613 = vmatpush.msra.mxu0 %v3250_v40  ;;  %v3285_v41 = vld [vmem:[%s7743_s5 + $0x778] sm:$0xff]  ;;  %v3030_v40 = vmax.f32 %v3010_v34, 0.0 }
 0xa85   :  { %v2972_v45 = vmax.f32 %v6506_v10, %v2913_v8  ;;  %v3247_v10 = vld [vmem:[%s7743_s5 + $0x648] sm:$0xff]  ;;  %v3141_v8 = vld [vmem:[%s7743_s5 + $0x2f8] sm:$0xff] }
 0xa86   :  { %3454 = vmatpush.msra.mxu3 %v3121_v14  ;;  %3614 = vmatpush.msra.mxu0 %v3249_v30  ;;  %v3284_v14 = vld [vmem:[%s7743_s5 + $0x770] sm:$0xff] }
 0xa87   :  { %v2992_v42 = vmax.f32 %v7924_v28, %v2972_v45  ;;  %v3140_v45 = vld [vmem:[%s7743_s5 + $0x2f0] sm:$0xff] }
 0xa88   :  { %3455 = vmatpush.msra.mxu3 %v3120_v24  ;;  %3615 = vmatpush.msra.mxu0 %v3248_v37  ;;  %v3283_v24 = vld [vmem:[%s7743_s5 + $0x768] sm:$0xff]  ;;  %v7927_v37 = vmax.f32 %v6127_v53, %v6333_v46  ;;  %v3281_v46 = vld [vmem:[%s7743_s5 + $0x758] sm:$0xff] }
 0xa89   :  { %v3016_v11 = vadd.f32 %v6732_v32, %v2992_v42  ;;  %v3282_v42 = vld [vmem:[%s7743_s5 + $0x760] sm:$0xff] }
 0xa8a   :  { %3456 = vmatpush.msra.mxu3 %v3119_v27  ;;  %3616 = vmatpush.msra.mxu0 %v3247_v10  ;;  %v2915_v35 = vpop.f32.mrf.mxu2  ;;  %v2670_v27 = vpop.f32.mrf.mxu1  ;;  %v3138_v10 = vld [vmem:[%s7743_s5 + $0x2e0] sm:$0xff] }
 0xa8b   :  { %v3036_v56 = vmax.f32 %v3016_v11, 0.0  ;;  %v2916_v51 = vadd.f32 %v2915_v35, %v2658_v0 }
 0xa8c   :  { %3457 = vmatpush.msra.mxu3 %v3118_v58  ;;  %3617 = vmatpush.msra.mxu0 %v3246_v62  ;;  %v3137_v58 = vld [vmem:[%s7743_s5 + $0x2d8] sm:$0xff]  ;;  %v3280_v62 = vld [vmem:[%s7743_s5 + $0x750] sm:$0xff] }
 0xa8d   :  { %v2973_v39 = vmax.f32 %v6527_v33, %v2916_v51  ;;  %3586 = vmatmul.f32.vlgmr.msrb.gmra.mxu0 %v3036_v56  ;;  %v3115_v33 = vld [vmem:[%s7743_s5 + $0x228] sm:$0xff]  ;;  %v3136_v56 = vld [vmem:[%s7743_s5 + $0x2d0] sm:$0xff] }
 0xa8e   :  { %3458 = vmatpush.msra.mxu3 %v3117_v15  ;;  %3618 = vmatpush.msra.mxu0 %v3245_v61  ;;  %v3279_v51 = vld [vmem:[%s7743_s5 + $0x748] sm:$0xff]  ;;  %v7928_v15 = vmax.f32 %v6136_v21, %v6344_v44  ;;  %v3277_v21 = vld [vmem:[%s7743_s5 + $0x738] sm:$0xff] }
 0xa8f   :  { %v7037_v0 = vmax.f32 %v7925_v25, %v2973_v39  ;;  %v3134_v39 = vld [vmem:[%s7743_s5 + $0x2c0] sm:$0xff]  ;;  %v3133_v25 = vld [vmem:[%s7743_s5 + $0x2b8] sm:$0xff] }
 0xa90   :  { %3459 = vmatpush.msra.mxu3 %v3116_v38  ;;  %3619 = vmatpush.msra.mxu0 %v3244_v23 }
 0xa92   :  { %3460 = vmatpush.msra.mxu3 %v3115_v33  ;;  %3620 = vmatpush.msra.mxu0 %v3243_v4  ;;  %v2918_v36 = vpop.f32.mrf.mxu2  ;;  %v2673_v44 = vpop.f32.mrf.mxu1  ;;  %v3276_v33 = vld [vmem:[%s7743_s5 + $0x730] sm:$0xff] }
 0xa93   :  { %v2919_v20 = vadd.f32 %v2918_v36, %v2661_v55  ;;  %v7929_v36 = vmax.f32 %v6145_v59, %v6355_v50  ;;  %v3273_v59 = vld [vmem:[%s7743_s5 + $0x718] sm:$0xff] }
 0xa94   :  { %3461 = vmatpush.msra.mxu3 %v3114_v1  ;;  %3621 = vmatpush.msra.mxu0 %v3242_v17  ;;  %v3132_v1 = vld [vmem:[%s7743_s5 + $0x2b0] sm:$0xff]  ;;  %v3275_v17 = vld [vmem:[%s7743_s5 + $0x728] sm:$0xff] }
 0xa95   :  { %v2974_v63 = vmax.f32 %v6548_v29, %v2919_v20  ;;  %v3111_v29 = vld [vmem:[%s7743_s5 + $0x208] sm:$0xff] }
 0xa96   :  { %3462 = vmatpush.msra.mxu3 %v3113_v16  ;;  %3622 = vmatpush.msra.mxu0 %v3241_v60  ;;  %v3131_v16 = vld [vmem:[%s7743_s5 + $0x2a8] sm:$0xff]  ;;  %v3130_v60 = vld [vmem:[%s7743_s5 + $0x2a0] sm:$0xff] }
 0xa97   :  { %v2994_v18 = vmax.f32 %v7926_v13, %v2974_v63  ;;  %v3128_v13 = vld [vmem:[%s7743_s5 + $0x290] sm:$0xff] }
 0xa98   :  { %3463 = vmatpush.msra.mxu3 %v3112_v22  ;;  %3623 = vmatpush.msra.mxu0 %v3240_v6  ;;  %v3129_v22 = vld [vmem:[%s7743_s5 + $0x298] sm:$0xff]  ;;  %v3272_v6 = vld [vmem:[%s7743_s5 + $0x710] sm:$0xff] }
 0xa99   :  { %v3018_v31 = vadd.f32 %v6732_v32, %v2994_v18 }
 0xa9a   :  { %3464 = vmatpush.msra.mxu3 %v3111_v29  ;;  %3624 = vmatpush.msra.mxu0 %v3239_v47  ;;  %v2921_v48 = vpop.f32.mrf.mxu2  ;;  %v3271_v29 = vld [vmem:[%s7743_s5 + $0x708] sm:$0xff]  ;;  %v3011_v47 = vadd.f32 %v6732_v32, %v6898_v49 }
 0xa9b   :  { %v3038_v7 = vmax.f32 %v3018_v31, 0.0  ;;  %v2922_v55 = vadd.f32 %v2921_v48, %v2664_v43  ;;  %v3135_v43 = vld [vmem:[%s7743_s5 + $0x2c8] sm:$0xff]  ;;  %v7930_v31 = vld [vmem:[#allocation5_spill] sm:$0xff] }
 0xa9c   :  { %3465 = vmatpush.msra.mxu3 %v3110_v3  ;;  %3625 = vmatpush.msra.mxu0 %v3238_v57  ;;  %v7931_v3 = vld [vmem:[#allocation19_spill] sm:$0xff] }
 0xa9d   :  { %v2975_v30 = vmax.f32 %v6569_v54, %v2922_v55  ;;  %3466 = vmatmul.f32.vlgmr.msra.gmra.mxu3 %v3030_v40  ;;  %3626 = vmatmul.f32.vlgmr.msra.gmra.mxu0 %v3038_v7  ;;  %v3139_v54 = vld [vmem:[%s7743_s5 + $0x2e8] sm:$0xff]  ;;  %v7932_v57 = vmax.f32 %v7930_v31, %v7931_v3  ;;  %v3126_v40 = vld [vmem:[%s7743_s5 + $0x280] sm:$0xff]  ;;  %v3317_v55 = vld [vmem:[%s7743_s5 + $0x878] sm:$0xff] }
 0xa9e   :  { %3650 = vmatpush.msrb.mxu0 %v3285_v41  ;;  %3470 = vmatpush.msrb.mxu3 %v3141_v8  ;;  %v3270_v41 = vld [vmem:[%s7743_s5 + $0x700] sm:$0xff]  ;;  %v3031_v8 = vmax.f32 %v3011_v47, 0.0  ;;  %v3147_v47 = vld [vmem:[%s7743_s5 + $0x328] sm:$0xff] }
 0xa9f   :  { %v7101_v28 = vmax.f32 %v7927_v37, %v2975_v30  ;;  %v3306_v31 = vld [vmem:[%s7743_s5 + $0x820] sm:$0xff] }
 0xaa0   :  { %3651 = vmatpush.msrb.mxu0 %v3284_v14  ;;  %3471 = vmatpush.msrb.mxu3 %v3140_v45  ;;  %v3157_v14 = vld [vmem:[%s7743_s5 + $0x378] sm:$0xff]  ;;  %v3316_v45 = vld [vmem:[%s7743_s5 + $0x870] sm:$0xff]  ;;  %v3146_v3 = vld [vmem:[%s7743_s5 + $0x320] sm:$0xff] }
 0xaa2   :  { %3652 = vmatpush.msrb.mxu0 %v3283_v24  ;;  %3472 = vmatpush.msrb.mxu3 %v3139_v54  ;;  %v2924_v53 = vpop.f32.mrf.mxu2  ;;  %v7933_v24 = vld [vmem:[#allocation9_spill] sm:$0xff]  ;;  %v3156_v54 = vld [vmem:[%s7743_s5 + $0x370] sm:$0xff] }
 0xaa3   :  { %v2925_v11 = vadd.f32 %v2924_v53, %v2667_v9  ;;  %v2676_v9 = vpop.f32.mrf.mxu1  ;;  %v7935_v53 = vld [vmem:[#allocation8_spill] sm:$0xff] }
 0xaa4   :  { %3653 = vmatpush.msrb.mxu0 %v3282_v42  ;;  %3473 = vmatpush.msrb.mxu3 %v3138_v10  ;;  %v3315_v42 = vld [vmem:[%s7743_s5 + $0x868] sm:$0xff]  ;;  %v7934_v10 = vld [vmem:[#allocation17_spill] sm:$0xff] }
 0xaa5   :  { %v2976_v35 = vmax.f32 %v6590_v52, %v2925_v11  ;;  %v3278_v52 = vld [vmem:[%s7743_s5 + $0x740] sm:$0xff] }
 0xaa6   :  { %3654 = vmatpush.msrb.mxu0 %v3281_v46  ;;  %3474 = vmatpush.msrb.mxu3 %v3137_v58  ;;  %v7936_v46 = vmax.f32 %v7934_v10, %v7935_v53  ;;  %v3155_v58 = vld [vmem:[%s7743_s5 + $0x368] sm:$0xff]  ;;  %v3346_v10 = vld [vmem:[%s7743_s5 + $0x960] sm:$0xff] }
 0xaa7   :  { %v2996_v61 = vmax.f32 %v7928_v15, %v2976_v35  ;;  %v3154_v35 = vld [vmem:[%s7743_s5 + $0x360] sm:$0xff]  ;;  %v3153_v15 = vld [vmem:[%s7743_s5 + $0x358] sm:$0xff] }
 0xaa8   :  { %3655 = vmatpush.msrb.mxu0 %v3280_v62  ;;  %3475 = vmatpush.msrb.mxu3 %v3136_v56  ;;  %v3314_v62 = vld [vmem:[%s7743_s5 + $0x860] sm:$0xff] }
 0xaa9   :  { %v3020_v18 = vadd.f32 %v6732_v32, %v2996_v61  ;;  %v3170_v53 = vld [vmem:[%s7743_s5 + $0x3e0] sm:$0xff] }
 0xaaa   :  { %3656 = vmatpush.msrb.mxu0 %v3279_v51  ;;  %3476 = vmatpush.msrb.mxu3 %v3135_v43  ;;  %v2927_v38 = vpop.f32.mrf.mxu2  ;;  %v3313_v51 = vld [vmem:[%s7743_s5 + $0x858] sm:$0xff]  ;;  %v3312_v43 = vld [vmem:[%s7743_s5 + $0x850] sm:$0xff] }
 0xaab   :  { %v2928_v23 = vadd.f32 %v2927_v38, %v2670_v27  ;;  %v3040_v49 = vmax.f32 %v3020_v18, 0.0  ;;  %v2679_v27 = vpop.f32.mrf.mxu1  ;;  %v3152_v38 = vld [vmem:[%s7743_s5 + $0x350] sm:$0xff] }
 0xaac   :  { %3657 = vmatpush.msrb.mxu0 %v3278_v52  ;;  %3477 = vmatpush.msrb.mxu3 %v3134_v39  ;;  %v7937_v52 = vld [vmem:[#allocation32_spill] sm:$0xff] }
 0xaad   :  { %v2977_v4 = vmax.f32 %v6611_v12, %v2928_v23  ;;  %v3274_v12 = vld [vmem:[%s7743_s5 + $0x720] sm:$0xff]  ;;  %v7939_v23 = vld [vmem:[#allocation31_spill] sm:$0xff] }
 0xaae   :  { %3658 = vmatpush.msrb.mxu0 %v3277_v21  ;;  %3478 = vmatpush.msrb.mxu3 %v3133_v25  ;;  %v3311_v21 = vld [vmem:[%s7743_s5 + $0x848] sm:$0xff] }
 0xaaf   :  { %v7159_v20 = vmax.f32 %v7929_v36, %v2977_v4  ;;  %v3151_v4 = vld [vmem:[%s7743_s5 + $0x348] sm:$0xff]  ;;  %v3150_v36 = vld [vmem:[%s7743_s5 + $0x340] sm:$0xff] }
 0xab0   :  { %3659 = vmatpush.msrb.mxu0 %v3276_v33  ;;  %3479 = vmatpush.msrb.mxu3 %v3132_v1  ;;  %v3310_v1 = vld [vmem:[%s7743_s5 + $0x840] sm:$0xff] }
 0xab2   :  { %3660 = vmatpush.msrb.mxu0 %v3275_v17  ;;  %3480 = vmatpush.msrb.mxu3 %v3131_v16  ;;  %v2930_v63 = vpop.f32.mrf.mxu2 }
 0xab3   :  { %v2931_v50 = vadd.f32 %v2930_v63, %v2673_v44  ;;  %v7938_v44 = vld [vmem:[#allocation29_spill] sm:$0xff]  ;;  %v2682_v17 = vpop.f32.mrf.mxu1 }
 0xab4   :  { %3661 = vmatpush.msrb.mxu0 %v3274_v12  ;;  %3481 = vmatpush.msrb.mxu3 %v3130_v60  ;;  %v7940_v25 = vmax.f32 %v7938_v44, %v7939_v23  ;;  %v3309_v12 = vld [vmem:[%s7743_s5 + $0x838] sm:$0xff]  ;;  %v3163_v44 = vld [vmem:[%s7743_s5 + $0x3a8] sm:$0xff]  ;;  %v3338_v23 = vld [vmem:[%s7743_s5 + $0x920] sm:$0xff] }
 0xab5   :  { %v2978_v34 = vmax.f32 %v6632_v19, %v2931_v50  ;;  %v3127_v19 = vld [vmem:[%s7743_s5 + $0x288] sm:$0xff]  ;;  %v3149_v60 = vld [vmem:[%s7743_s5 + $0x338] sm:$0xff] }
 0xab6   :  { %3662 = vmatpush.msrb.mxu0 %v3273_v59  ;;  %3482 = vmatpush.msrb.mxu3 %v3129_v22  ;;  %v3308_v59 = vld [vmem:[%s7743_s5 + $0x830] sm:$0xff]  ;;  %v7941_v50 = vld [vmem:[#allocation21_spill] sm:$0xff] }
 0xab7   :  { %v7192_v48 = vmax.f32 %v7932_v57, %v2978_v34  ;;  %v7942_v34 = vld [vmem:[#allocation30_spill] sm:$0xff]  ;;  %v3305_v57 = vld [vmem:[%s7743_s5 + $0x818] sm:$0xff] }
 0xab8   :  { %3663 = vmatpush.msrb.mxu0 %v3272_v6  ;;  %3483 = vmatpush.msrb.mxu3 %v3128_v13  ;;  %v3148_v6 = vld [vmem:[%s7743_s5 + $0x330] sm:$0xff] }
 0xab9   :  { %v7943_v13 = vld [vmem:[#allocation20_spill] sm:$0xff] }
 0xaba   :  { %3664 = vmatpush.msrb.mxu0 %v3271_v29  ;;  %3484 = vmatpush.msrb.mxu3 %v3127_v19  ;;  %v2933_v7 = vpop.f32.mrf.mxu2  ;;  %v7944_v18 = vmax.f32 %v7942_v34, %v7943_v13  ;;  %v3145_v19 = vld [vmem:[%s7743_s5 + $0x318] sm:$0xff]  ;;  %v3200_v13 = vld [vmem:[%s7743_s5 + $0x4d0] sm:$0xff] }
 0xabb   :  { %v2934_v30 = vadd.f32 %v2933_v7, %v2676_v9  ;;  %v3307_v9 = vld [vmem:[%s7743_s5 + $0x828] sm:$0xff]  ;;  %v3201_v34 = vld [vmem:[%s7743_s5 + $0x4d8] sm:$0xff] }
 0xabc   :  { %3665 = vmatpush.msrb.mxu0 %v3270_v41  ;;  %3485 = vmatpush.msrb.mxu3 %v3126_v40  ;;  %v3304_v41 = vld [vmem:[%s7743_s5 + $0x810] sm:$0xff]  ;;  %v3303_v7 = vld [vmem:[%s7743_s5 + $0x808] sm:$0xff] }
 0xabd   :  { %3666 = vmatmul.f32.vlgmr.msrb.gmra.mxu0 %v3040_v49  ;;  %3486 = vmatmul.f32.vlgmr.msrb.gmra.mxu3 %v3031_v8  ;;  %v2979_v37 = vmax.f32 %v7933_v24, %v2934_v30  ;;  %v3144_v40 = vld [vmem:[%s7743_s5 + $0x310] sm:$0xff]  ;;  %v3022_v49 = vadd.f32 %v6732_v32, %v7192_v48  ;;  %v3143_v8 = vld [vmem:[%s7743_s5 + $0x308] sm:$0xff]  ;;  %v3142_v48 = vld [vmem:[%s7743_s5 + $0x300] sm:$0xff] }
 0xabe   :  { %3690 = vmatpush.msra.mxu0 %v3317_v55  ;;  %3490 = vmatpush.msra.mxu3 %v3157_v14  ;;  %v3012_v55 = vadd.f32 %v6732_v32, %v6917_v5  ;;  %v3302_v14 = vld [vmem:[%s7743_s5 + $0x800] sm:$0xff]  ;;  %v3349_v5 = vld [vmem:[%s7743_s5 + $0x978] sm:$0xff] }
 0xabf   :  { %v7222_v11 = vmax.f32 %v7936_v46, %v2979_v37  ;;  %v3042_v30 = vmax.f32 %v3022_v49, 0.0  ;;  %v3173_v24 = vld [vmem:[%s7743_s5 + $0x3f8] sm:$0xff]  ;;  %v3348_v37 = vld [vmem:[%s7743_s5 + $0x970] sm:$0xff]  ;;  %v7466_v49 = vld [vmem:[%s7742_s3] ss:$0 sm:$0xff] }
 0xac0   :  { %3691 = vmatpush.msra.mxu0 %v3316_v45  ;;  %3491 = vmatpush.msra.mxu3 %v3156_v54  ;;  %v3032_v45 = vmax.f32 %v3012_v55, 0.0  ;;  %v3172_v54 = vld [vmem:[%s7743_s5 + $0x3f0] sm:$0xff]  ;;  %v3345_v46 = vld [vmem:[%s7743_s5 + $0x958] sm:$0xff]  ;;  %v3191_v55 = vld [vmem:[%s7743_s5 + $0x488] sm:$0xff] }
 0xac2   :  { %3692 = vmatpush.msra.mxu0 %v3315_v42  ;;  %3492 = vmatpush.msra.mxu3 %v3155_v58  ;;  %v2936_v56 = vpop.f32.mrf.mxu2  ;;  %v3347_v42 = vld [vmem:[%s7743_s5 + $0x968] sm:$0xff]  ;;  %v3169_v58 = vld [vmem:[%s7743_s5 + $0x3d8] sm:$0xff] }
 0xac3   :  { %v2937_v61 = vadd.f32 %v2936_v56, %v2679_v27  ;;  %v3171_v27 = vld [vmem:[%s7743_s5 + $0x3e8] sm:$0xff] }
 0xac4   :  { %3693 = vmatpush.msra.mxu0 %v3314_v62  ;;  %3493 = vmatpush.msra.mxu3 %v3154_v35  ;;  %v3344_v62 = vld [vmem:[%s7743_s5 + $0x950] sm:$0xff]  ;;  %v3343_v56 = vld [vmem:[%s7743_s5 + $0x948] sm:$0xff] }
 0xac5   :  { %v2980_v39 = vmax.f32 %v7937_v52, %v2937_v61  ;;  %v3168_v35 = vld [vmem:[%s7743_s5 + $0x3d0] sm:$0xff]  ;;  %v3166_v61 = vld [vmem:[%s7743_s5 + $0x3c0] sm:$0xff]  ;;  %v3165_v52 = vld [vmem:[%s7743_s5 + $0x3b8] sm:$0xff] }
 0xac6   :  { %3694 = vmatpush.msra.mxu0 %v3313_v51  ;;  %3494 = vmatpush.msra.mxu3 %v3153_v15  ;;  %v3167_v51 = vld [vmem:[%s7743_s5 + $0x3c8] sm:$0xff]  ;;  %v3342_v15 = vld [vmem:[%s7743_s5 + $0x940] sm:$0xff] }
 0xac7   :  { %v7252_v33 = vmax.f32 %v7940_v25, %v2980_v39  ;;  %v3340_v39 = vld [vmem:[%s7743_s5 + $0x930] sm:$0xff]  ;;  %v3162_v25 = vld [vmem:[%s7743_s5 + $0x3a0] sm:$0xff] }
 0xac8   :  { %3695 = vmatpush.msra.mxu0 %v3312_v43  ;;  %3495 = vmatpush.msra.mxu3 %v3152_v38  ;;  %v3341_v43 = vld [vmem:[%s7743_s5 + $0x938] sm:$0xff]  ;;  %v3164_v38 = vld [vmem:[%s7743_s5 + $0x3b0] sm:$0xff] }
 0xaca   :  { %3696 = vmatpush.msra.mxu0 %v3311_v21  ;;  %3496 = vmatpush.msra.mxu3 %v3151_v4  ;;  %v2939_v16 = vpop.f32.mrf.mxu2  ;;  %v3339_v21 = vld [vmem:[%s7743_s5 + $0x928] sm:$0xff]  ;;  %v3337_v4 = vld [vmem:[%s7743_s5 + $0x918] sm:$0xff] }
 0xacb   :  { %v2940_v63 = vadd.f32 %v2939_v16, %v2682_v17  ;;  %v3336_v17 = vld [vmem:[%s7743_s5 + $0x910] sm:$0xff]  ;;  %v3024_v16 = vadd.f32 %v6732_v32, %v7252_v33  ;;  %v3158_v33 = vld [vmem:[%s7743_s5 + $0x380] sm:$0xff] }
 0xacc   :  { %3697 = vmatpush.msra.mxu0 %v3310_v1  ;;  %3497 = vmatpush.msra.mxu3 %v3150_v36  ;;  %v3161_v1 = vld [vmem:[%s7743_s5 + $0x398] sm:$0xff]  ;;  %v3160_v36 = vld [vmem:[%s7743_s5 + $0x390] sm:$0xff] }
 0xacd   :  { %v2981_v22 = vmax.f32 %v7941_v50, %v2940_v63  ;;  %v3159_v63 = vld [vmem:[%s7743_s5 + $0x388] sm:$0xff]  ;;  %v3044_v50 = vmax.f32 %v3024_v16, 0.0 }
 0xace   :  { %3698 = vmatpush.msra.mxu0 %v3309_v12  ;;  %3498 = vmatpush.msra.mxu3 %v3149_v60  ;;  %v3335_v12 = vld [vmem:[%s7743_s5 + $0x908] sm:$0xff]  ;;  %v3013_v60 = vadd.f32 %v6732_v32, %v6935_v2  ;;  %v3205_v32 = vld [vmem:[%s7743_s5 + $0x4f8] sm:$0xff]  ;;  %v3204_v2 = vld [vmem:[%s7743_s5 + $0x4f0] sm:$0xff] }
 0xacf   :  { %v7282_v29 = vmax.f32 %v7944_v18, %v2981_v22  ;;  %v3199_v18 = vld [vmem:[%s7743_s5 + $0x4c8] sm:$0xff] }
 0xad0   :  { %3699 = vmatpush.msra.mxu0 %v3308_v59  ;;  %3499 = vmatpush.msra.mxu3 %v3148_v6  ;;  %v3334_v59 = vld [vmem:[%s7743_s5 + $0x900] sm:$0xff]  ;;  %v3033_v22 = vmax.f32 %v3013_v60, 0.0  ;;  %v3203_v6 = vld [vmem:[%s7743_s5 + $0x4e8] sm:$0xff] }
 0xad1   :  { %v3255_v16 = vld [vmem:[%s7743_s5 + $0x688] sm:$0xff] }
 0xad2   :  { %3700 = vmatpush.msra.mxu0 %v3307_v9  ;;  %3500 = vmatpush.msra.mxu3 %v3147_v47  ;;  %v3202_v9 = vld [vmem:[%s7743_s5 + $0x4e0] sm:$0xff] }
 0xad3   :  { %v3198_v47 = vld [vmem:[%s7743_s5 + $0x4c0] sm:$0xff] }
 0xad4   :  { %3701 = vmatpush.msra.mxu0 %v3306_v31  ;;  %3501 = vmatpush.msra.mxu3 %v3146_v3  ;;  %v3197_v31 = vld [vmem:[%s7743_s5 + $0x4b8] sm:$0xff]  ;;  %v3196_v3 = vld [vmem:[%s7743_s5 + $0x4b0] sm:$0xff] }
 0xad6   :  { %3702 = vmatpush.msra.mxu0 %v3305_v57  ;;  %3502 = vmatpush.msra.mxu3 %v3145_v19  ;;  %v3195_v57 = vld [vmem:[%s7743_s5 + $0x4a8] sm:$0xff]  ;;  %v3194_v19 = vld [vmem:[%s7743_s5 + $0x4a0] sm:$0xff] }
 0xad8   :  { %3703 = vmatpush.msra.mxu0 %v3304_v41  ;;  %3503 = vmatpush.msra.mxu3 %v3144_v40  ;;  %v3193_v41 = vld [vmem:[%s7743_s5 + $0x498] sm:$0xff]  ;;  %v3192_v40 = vld [vmem:[%s7743_s5 + $0x490] sm:$0xff] }
 0xada   :  { %3704 = vmatpush.msra.mxu0 %v3303_v7  ;;  %3504 = vmatpush.msra.mxu3 %v3143_v8  ;;  %v3015_v7 = vadd.f32 %v7466_v49, %v6978_v26  ;;  %v3190_v8 = vld [vmem:[%s7743_s5 + $0x480] sm:$0xff]  ;;  %v3236_v26 = vld [vmem:[%s7743_s5 + $0x5f0] sm:$0xff] }
 0xadc   :  { %3705 = vmatpush.msra.mxu0 %v3302_v14  ;;  %3505 = vmatpush.msra.mxu3 %v3142_v48  ;;  %v3035_v14 = vmax.f32 %v3015_v7, 0.0  ;;  %v3237_v48 = vld [vmem:[%s7743_s5 + $0x5f8] sm:$0xff]  ;;  %v3330_v7 = vld [vmem:[%s7743_s5 + $0x8e0] sm:$0xff] }
 0xadd   :  { %3706 = vmatmul.f32.vlgmr.msra.gmra.mxu0 %v3042_v30  ;;  %3506 = vmatmul.f32.vlgmr.msra.gmra.mxu3 %v3032_v45  ;;  %v3235_v30 = vld [vmem:[%s7743_s5 + $0x5e8] sm:$0xff]  ;;  %v3233_v45 = vld [vmem:[%s7743_s5 + $0x5d8] sm:$0xff] }
 0xade   :  { %3730 = vmatpush.msrb.mxu0 %v3349_v5  ;;  %3510 = vmatpush.msrb.mxu3 %v3173_v24  ;;  %v3234_v5 = vld [vmem:[%s7743_s5 + $0x5e0] sm:$0xff]  ;;  %v3232_v24 = vld [vmem:[%s7743_s5 + $0x5d0] sm:$0xff] }
 0xae0   :  { %3731 = vmatpush.msrb.mxu0 %v3348_v37  ;;  %3511 = vmatpush.msrb.mxu3 %v3172_v54  ;;  %v3231_v37 = vld [vmem:[%s7743_s5 + $0x5c8] sm:$0xff]  ;;  %v3230_v54 = vld [vmem:[%s7743_s5 + $0x5c0] sm:$0xff] }
 0xae2   :  { %3732 = vmatpush.msrb.mxu0 %v3347_v42  ;;  %3512 = vmatpush.msrb.mxu3 %v3171_v27  ;;  %v3229_v42 = vld [vmem:[%s7743_s5 + $0x5b8] sm:$0xff]  ;;  %v3228_v27 = vld [vmem:[%s7743_s5 + $0x5b0] sm:$0xff] }
 0xae4   :  { %3733 = vmatpush.msrb.mxu0 %v3346_v10  ;;  %3513 = vmatpush.msrb.mxu3 %v3170_v53  ;;  %v3227_v10 = vld [vmem:[%s7743_s5 + $0x5a8] sm:$0xff]  ;;  %v3226_v53 = vld [vmem:[%s7743_s5 + $0x5a0] sm:$0xff] }
 0xae6   :  { %3734 = vmatpush.msrb.mxu0 %v3345_v46  ;;  %3514 = vmatpush.msrb.mxu3 %v3169_v58  ;;  %v3225_v46 = vld [vmem:[%s7743_s5 + $0x598] sm:$0xff]  ;;  %v3224_v58 = vld [vmem:[%s7743_s5 + $0x590] sm:$0xff] }
 0xae8   :  { %3735 = vmatpush.msrb.mxu0 %v3344_v62  ;;  %3515 = vmatpush.msrb.mxu3 %v3168_v35  ;;  %v3017_v62 = vadd.f32 %v7466_v49, %v7037_v0  ;;  %v3223_v35 = vld [vmem:[%s7743_s5 + $0x588] sm:$0xff]  ;;  %v3268_v0 = vld [vmem:[%s7743_s5 + $0x6f0] sm:$0xff] }
 0xaea   :  { %3736 = vmatpush.msrb.mxu0 %v3343_v56  ;;  %3516 = vmatpush.msrb.mxu3 %v3167_v51  ;;  %v3222_v56 = vld [vmem:[%s7743_s5 + $0x580] sm:$0xff]  ;;  %v3037_v51 = vmax.f32 %v3017_v62, 0.0  ;;  %v3361_v62 = vld [vmem:[%s7743_s5 + $0x9d8] sm:$0xff] }
 0xaec   :  { %3737 = vmatpush.msrb.mxu0 %v3342_v15  ;;  %3517 = vmatpush.msrb.mxu3 %v3166_v61  ;;  %v3269_v15 = vld [vmem:[%s7743_s5 + $0x6f8] sm:$0xff]  ;;  %v3267_v61 = vld [vmem:[%s7743_s5 + $0x6e8] sm:$0xff] }
 0xaee   :  { %3738 = vmatpush.msrb.mxu0 %v3341_v43  ;;  %3518 = vmatpush.msrb.mxu3 %v3165_v52  ;;  %v3266_v43 = vld [vmem:[%s7743_s5 + $0x6e0] sm:$0xff]  ;;  %v3265_v52 = vld [vmem:[%s7743_s5 + $0x6d8] sm:$0xff] }
 0xaf0   :  { %3739 = vmatpush.msrb.mxu0 %v3340_v39  ;;  %3519 = vmatpush.msrb.mxu3 %v3164_v38  ;;  %v3264_v39 = vld [vmem:[%s7743_s5 + $0x6d0] sm:$0xff]  ;;  %v3263_v38 = vld [vmem:[%s7743_s5 + $0x6c8] sm:$0xff] }
 0xaf2   :  { %3740 = vmatpush.msrb.mxu0 %v3339_v21  ;;  %3520 = vmatpush.msrb.mxu3 %v3163_v44  ;;  %v3262_v21 = vld [vmem:[%s7743_s5 + $0x6c0] sm:$0xff]  ;;  %v3261_v44 = vld [vmem:[%s7743_s5 + $0x6b8] sm:$0xff] }
 0xaf4   :  { %3741 = vmatpush.msrb.mxu0 %v3338_v23  ;;  %3521 = vmatpush.msrb.mxu3 %v3162_v25  ;;  %v3260_v23 = vld [vmem:[%s7743_s5 + $0x6b0] sm:$0xff]  ;;  %v3259_v25 = vld [vmem:[%s7743_s5 + $0x6a8] sm:$0xff] }
 0xaf6   :  { %3742 = vmatpush.msrb.mxu0 %v3337_v4  ;;  %3522 = vmatpush.msrb.mxu3 %v3161_v1  ;;  %v3258_v4 = vld [vmem:[%s7743_s5 + $0x6a0] sm:$0xff]  ;;  %v3257_v1 = vld [vmem:[%s7743_s5 + $0x698] sm:$0xff] }
 0xaf8   :  { %3743 = vmatpush.msrb.mxu0 %v3336_v17  ;;  %3523 = vmatpush.msrb.mxu3 %v3160_v36  ;;  %v3256_v17 = vld [vmem:[%s7743_s5 + $0x690] sm:$0xff]  ;;  %v3019_v36 = vadd.f32 %v7466_v49, %v7101_v28 }
 0xaf9   :  { %v3300_v28 = vld [vmem:[%s7743_s5 + $0x7f0] sm:$0xff] }
 0xafa   :  { %3744 = vmatpush.msrb.mxu0 %v3335_v12  ;;  %3524 = vmatpush.msrb.mxu3 %v3159_v63  ;;  %v3254_v12 = vld [vmem:[%s7743_s5 + $0x680] sm:$0xff]  ;;  %v3039_v60 = vmax.f32 %v3019_v36, 0.0  ;;  %v3301_v63 = vld [vmem:[%s7743_s5 + $0x7f8] sm:$0xff] }
 0xafc   :  { %3745 = vmatpush.msrb.mxu0 %v3334_v59  ;;  %3525 = vmatpush.msrb.mxu3 %v3158_v33  ;;  %v3299_v59 = vld [vmem:[%s7743_s5 + $0x7e8] sm:$0xff]  ;;  %v3298_v33 = vld [vmem:[%s7743_s5 + $0x7e0] sm:$0xff] }
 0xafd   :  { %3746 = vmatmul.f32.vlgmr.msrb.gmra.mxu0 %v3044_v50  ;;  %3526 = vmatmul.f32.vlgmr.msrb.gmra.mxu3 %v3033_v22  ;;  %v3297_v50 = vld [vmem:[%s7743_s5 + $0x7d8] sm:$0xff]  ;;  %v3296_v22 = vld [vmem:[%s7743_s5 + $0x7d0] sm:$0xff] }
 0xafe   :  { %3550 = vmatpush.msra.mxu3 %v3205_v32  ;;  %v3295_v32 = vld [vmem:[%s7743_s5 + $0x7c8] sm:$0xff] }
 0xb00   :  { %3551 = vmatpush.msra.mxu3 %v3204_v2  ;;  %v3294_v2 = vld [vmem:[%s7743_s5 + $0x7c0] sm:$0xff] }
 0xb02   :  { %3552 = vmatpush.msra.mxu3 %v3203_v6  ;;  %v3293_v6 = vld [vmem:[%s7743_s5 + $0x7b8] sm:$0xff] }
 0xb04   :  { %3553 = vmatpush.msra.mxu3 %v3202_v9  ;;  %v3292_v9 = vld [vmem:[%s7743_s5 + $0x7b0] sm:$0xff] }
 0xb06   :  { %3554 = vmatpush.msra.mxu3 %v3201_v34  ;;  %v3291_v34 = vld [vmem:[%s7743_s5 + $0x7a8] sm:$0xff] }
 0xb08   :  { %3555 = vmatpush.msra.mxu3 %v3200_v13  ;;  %v3290_v13 = vld [vmem:[%s7743_s5 + $0x7a0] sm:$0xff] }
 0xb0a   :  { %3556 = vmatpush.msra.mxu3 %v3199_v18  ;;  %v3289_v18 = vld [vmem:[%s7743_s5 + $0x798] sm:$0xff] }
 0xb0c   :  { %3557 = vmatpush.msra.mxu3 %v3198_v47  ;;  %v3288_v47 = vld [vmem:[%s7743_s5 + $0x790] sm:$0xff] }
 0xb0e   :  { %3558 = vmatpush.msra.mxu3 %v3197_v31  ;;  %v3021_v31 = vadd.f32 %v7466_v49, %v7159_v20  ;;  %v3332_v20 = vld [vmem:[%s7743_s5 + $0x8f0] sm:$0xff] }
 0xb10   :  { %3559 = vmatpush.msra.mxu3 %v3196_v3  ;;  %v3287_v3 = vld [vmem:[%s7743_s5 + $0x788] sm:$0xff] }
 0xb12   :  { %3560 = vmatpush.msra.mxu3 %v3195_v57  ;;  %v3286_v57 = vld [vmem:[%s7743_s5 + $0x780] sm:$0xff] }
 0xb14   :  { %3561 = vmatpush.msra.mxu3 %v3194_v19  ;;  %v3041_v19 = vmax.f32 %v3021_v31, 0.0 }
 0xb16   :  { %3562 = vmatpush.msra.mxu3 %v3193_v41  ;;  %v3333_v41 = vld [vmem:[%s7743_s5 + $0x8f8] sm:$0xff] }
 0xb18   :  { %3563 = vmatpush.msra.mxu3 %v3192_v40  ;;  %v3331_v40 = vld [vmem:[%s7743_s5 + $0x8e8] sm:$0xff] }
 0xb1a   :  { %3564 = vmatpush.msra.mxu3 %v3191_v55  ;;  %v3329_v55 = vld [vmem:[%s7743_s5 + $0x8d8] sm:$0xff] }
 0xb1c   :  { %3565 = vmatpush.msra.mxu3 %v3190_v8  ;;  %v3328_v8 = vld [vmem:[%s7743_s5 + $0x8d0] sm:$0xff] }
 0xb1d   :  { %3566 = vmatmul.f32.vlgmr.msra.gmra.mxu3 %v3035_v14  ;;  %v3327_v14 = vld [vmem:[%s7743_s5 + $0x8c8] sm:$0xff] }
 0xb1e   :  { %3590 = vmatpush.msrb.mxu3 %v3237_v48  ;;  %v3326_v48 = vld [vmem:[%s7743_s5 + $0x8c0] sm:$0xff] }
 0xb20   :  { %3591 = vmatpush.msrb.mxu3 %v3236_v26  ;;  %v3325_v26 = vld [vmem:[%s7743_s5 + $0x8b8] sm:$0xff] }
 0xb22   :  { %3592 = vmatpush.msrb.mxu3 %v3235_v30  ;;  %v3324_v30 = vld [vmem:[%s7743_s5 + $0x8b0] sm:$0xff] }
 0xb24   :  { %3593 = vmatpush.msrb.mxu3 %v3234_v5  ;;  %v3323_v5 = vld [vmem:[%s7743_s5 + $0x8a8] sm:$0xff] }
 0xb26   :  { %3594 = vmatpush.msrb.mxu3 %v3233_v45  ;;  %v3322_v45 = vld [vmem:[%s7743_s5 + $0x8a0] sm:$0xff] }
 0xb28   :  { %3595 = vmatpush.msrb.mxu3 %v3232_v24  ;;  %v3321_v24 = vld [vmem:[%s7743_s5 + $0x898] sm:$0xff] }
 0xb2a   :  { %3596 = vmatpush.msrb.mxu3 %v3231_v37  ;;  %v3320_v37 = vld [vmem:[%s7743_s5 + $0x890] sm:$0xff] }
 0xb2c   :  { %3597 = vmatpush.msrb.mxu3 %v3230_v54  ;;  %v3023_v54 = vadd.f32 %v7466_v49, %v7222_v11  ;;  %v3364_v11 = vld [vmem:[%s7743_s5 + $0x9f0] sm:$0xff] }
 0xb2e   :  { %3598 = vmatpush.msrb.mxu3 %v3229_v42  ;;  %v3319_v42 = vld [vmem:[%s7743_s5 + $0x888] sm:$0xff] }
 0xb30   :  { %3599 = vmatpush.msrb.mxu3 %v3228_v27  ;;  %v3318_v27 = vld [vmem:[%s7743_s5 + $0x880] sm:$0xff] }
 0xb32   :  { %3600 = vmatpush.msrb.mxu3 %v3227_v10  ;;  %v3043_v10 = vmax.f32 %v3023_v54, 0.0  ;;  %v3930_v54 = vld [vmem:[%s7745_s7] ss:$0 sm:$0xff] }
 0xb34   :  { %3601 = vmatpush.msrb.mxu3 %v3226_v53  ;;  %v3365_v53 = vld [vmem:[%s7743_s5 + $0x9f8] sm:$0xff] }
 0xb36   :  { %3602 = vmatpush.msrb.mxu3 %v3225_v46  ;;  %v3363_v46 = vld [vmem:[%s7743_s5 + $0x9e8] sm:$0xff] }
 0xb38   :  { %3603 = vmatpush.msrb.mxu3 %v3224_v58  ;;  %v3362_v58 = vld [vmem:[%s7743_s5 + $0x9e0] sm:$0xff] }
 0xb3a   :  { %3604 = vmatpush.msrb.mxu3 %v3223_v35  ;;  %v3360_v35 = vld [vmem:[%s7743_s5 + $0x9d0] sm:$0xff] }
 0xb3c   :  { %3605 = vmatpush.msrb.mxu3 %v3222_v56  ;;  %v3359_v56 = vld [vmem:[%s7743_s5 + $0x9c8] sm:$0xff] }
 0xb3d   :  { %3606 = vmatmul.f32.vlgmr.msrb.gmra.mxu3 %v3037_v51  ;;  %v3358_v51 = vld [vmem:[%s7743_s5 + $0x9c0] sm:$0xff] }
 0xb3e   :  { %3630 = vmatpush.msra.mxu3 %v3269_v15  ;;  %v3357_v15 = vld [vmem:[%s7743_s5 + $0x9b8] sm:$0xff] }
 0xb40   :  { %3631 = vmatpush.msra.mxu3 %v3268_v0  ;;  %v3356_v0 = vld [vmem:[%s7743_s5 + $0x9b0] sm:$0xff] }
 0xb42   :  { %3632 = vmatpush.msra.mxu3 %v3267_v61  ;;  %v3355_v61 = vld [vmem:[%s7743_s5 + $0x9a8] sm:$0xff] }
 0xb44   :  { %3633 = vmatpush.msra.mxu3 %v3266_v43  ;;  %v3354_v43 = vld [vmem:[%s7743_s5 + $0x9a0] sm:$0xff] }
 0xb46   :  { %3634 = vmatpush.msra.mxu3 %v3265_v52  ;;  %v3353_v52 = vld [vmem:[%s7743_s5 + $0x998] sm:$0xff] }
 0xb48   :  { %3635 = vmatpush.msra.mxu3 %v3264_v39  ;;  %v3352_v39 = vld [vmem:[%s7743_s5 + $0x990] sm:$0xff] }
 0xb4a   :  { %3636 = vmatpush.msra.mxu3 %v3263_v38  ;;  %v3025_v38 = vadd.f32 %v7466_v49, %v7282_v29  ;;  %v3929_v49 = vld [vmem:[%s7744_s6] ss:$0 sm:$0xff] }
 0xb4c   :  { %3637 = vmatpush.msra.mxu3 %v3262_v21  ;;  %v3351_v21 = vld [vmem:[%s7743_s5 + $0x988] sm:$0xff] }
 0xb4e   :  { %3638 = vmatpush.msra.mxu3 %v3261_v44  ;;  %v3350_v44 = vld [vmem:[%s7743_s5 + $0x980] sm:$0xff] }
 0xb50   :  { %3639 = vmatpush.msra.mxu3 %v3260_v23  ;;  %v3045_v23 = vmax.f32 %v3025_v38, 0.0 }
 0xb52   :  { %3640 = vmatpush.msra.mxu3 %v3259_v25  ;;  %v3387_v25 = vpop.f32.mrf.mxu3 }
 0xb54   :  { %3641 = vmatpush.msra.mxu3 %v3258_v4 }
 0xb56   :  { %3642 = vmatpush.msra.mxu3 %v3257_v1 }
 0xb58   :  { %3643 = vmatpush.msra.mxu3 %v3256_v17 }
 0xb5a   :  { %3644 = vmatpush.msra.mxu3 %v3255_v16  ;;  %v3407_v4 = vpop.f32.mrf.mxu3 }
 0xb5c   :  { %3645 = vmatpush.msra.mxu3 %v3254_v12  ;;  %v3388_v12 = vadd.f32 %v3929_v49, %v3387_v25 }
 0xb5d   :  { %3646 = vmatmul.f32.vlgmr.msra.gmra.mxu3 %v3039_v60 }
 0xb5e   :  { %3670 = vmatpush.msrb.mxu3 %v3301_v63  ;;  %v3408_v63 = vadd.f32 %v3407_v4, %v3388_v12 }
 0xb60   :  { %3671 = vmatpush.msrb.mxu3 %v3300_v28 }
 0xb62   :  { %3672 = vmatpush.msrb.mxu3 %v3299_v59  ;;  %v3427_v1 = vpop.f32.mrf.mxu3 }
 0xb63   :  { %v3428_v28 = vadd.f32 %v3427_v1, %v3408_v63 }
 0xb64   :  { %3673 = vmatpush.msrb.mxu3 %v3298_v33  ;;  %v3547_v33 = vpop.f32.mrf.mxu0 }
 0xb66   :  { %3674 = vmatpush.msrb.mxu3 %v3297_v50 }
 0xb68   :  { %3675 = vmatpush.msrb.mxu3 %v3296_v22 }
 0xb6a   :  { %3676 = vmatpush.msrb.mxu3 %v3295_v32  ;;  %v3447_v17 = vpop.f32.mrf.mxu3 }
 0xb6b   :  { %v3448_v59 = vadd.f32 %v3447_v17, %v3428_v28 }
 0xb6c   :  { %3677 = vmatpush.msrb.mxu3 %v3294_v2 }
 0xb6e   :  { %3678 = vmatpush.msrb.mxu3 %v3293_v6 }
 0xb70   :  { %3679 = vmatpush.msrb.mxu3 %v3292_v9  ;;  %v3587_v9 = vpop.f32.mrf.mxu0 }
 0xb72   :  { %3680 = vmatpush.msrb.mxu3 %v3291_v34  ;;  %v3467_v36 = vpop.f32.mrf.mxu3 }
 0xb73   :  { %v3468_v50 = vadd.f32 %v3467_v36, %v3448_v59 }
 0xb74   :  { %3681 = vmatpush.msrb.mxu3 %v3290_v13 }
 0xb76   :  { %3682 = vmatpush.msrb.mxu3 %v3289_v18 }
 0xb78   :  { %3683 = vmatpush.msrb.mxu3 %v3288_v47  ;;  %v3627_v47 = vpop.f32.mrf.mxu0 }
 0xb7a   :  { %3684 = vmatpush.msrb.mxu3 %v3287_v3  ;;  %v3487_v16 = vpop.f32.mrf.mxu3  ;;  %v14_v3 = vstv %s7746_s8 }
 0xb7b   :  { %v3488_v32 = vadd.f32 %v3487_v16, %v3468_v50  ;;  %15 = vst [vmem:[#allocation3] sm:$0x1] %v14_v3 }
 0xb7c   :  { %3685 = vmatpush.msrb.mxu3 %v3286_v57 }
 0xb7d   :  { %3686 = vmatmul.f32.vlgmr.msrb.gmra.mxu3 %v3041_v19 }
 0xb7e   :  { %3710 = vmatpush.msra.mxu3 %v3333_v41 }
 0xb80   :  { %3711 = vmatpush.msra.mxu3 %v3332_v20  ;;  %v3667_v20 = vpop.f32.mrf.mxu0 }
 0xb82   :  { %3712 = vmatpush.msra.mxu3 %v3331_v40  ;;  %v3507_v29 = vpop.f32.mrf.mxu3 }
 0xb83   :  { %v3508_v2 = vadd.f32 %v3507_v29, %v3488_v32 }
 0xb84   :  { %3713 = vmatpush.msra.mxu3 %v3330_v7 }
 0xb86   :  { %3714 = vmatpush.msra.mxu3 %v3329_v55 }
 0xb88   :  { %3715 = vmatpush.msra.mxu3 %v3328_v8 }
 0xb8a   :  { %3716 = vmatpush.msra.mxu3 %v3327_v14  ;;  %v3527_v60 = vpop.f32.mrf.mxu3  ;;  %v3707_v14 = vpop.f32.mrf.mxu0 }
 0xb8b   :  { %v3528_v6 = vadd.f32 %v3527_v60, %v3508_v2 }
 0xb8c   :  { %3717 = vmatpush.msra.mxu3 %v3326_v48 }
 0xb8d   :  { %v3548_v13 = vadd.f32 %v3547_v33, %v3528_v6 }
 0xb8e   :  { %3718 = vmatpush.msra.mxu3 %v3325_v26 }
 0xb90   :  { %3719 = vmatpush.msra.mxu3 %v3324_v30 }
 0xb92   :  { %3720 = vmatpush.msra.mxu3 %v3323_v5  ;;  %v3747_v5 = vpop.f32.mrf.mxu0 }
 0xb94   :  { %3721 = vmatpush.msra.mxu3 %v3322_v45 }
 0xb96   :  { %3722 = vmatpush.msra.mxu3 %v3321_v24 }
 0xb98   :  { %3723 = vmatpush.msra.mxu3 %v3320_v37 }
 0xb9a   :  { %3724 = vmatpush.msra.mxu3 %v3319_v42 }
 0xb9c   :  { %3725 = vmatpush.msra.mxu3 %v3318_v27 }
 0xb9d   :  { %3726 = vmatmul.f32.vlgmr.msra.gmra.mxu3 %v3043_v10  ;;  %v4012_v10 = vmov 0  }
 0xb9e   :  { %3750 = vmatpush.msrb.mxu3 %v3365_v53  ;;  %3927 = vset.pattern.permute.xlu0 %v4012_v10  ;;  %v3931_v53 = vld [vmem:[#allocation3] ss:$0 sm:$0xff] }
 0xba0   :  { %3751 = vmatpush.msrb.mxu3 %v3364_v11  ;;  %v3567_v22 = vpop.f32.mrf.mxu3 }
 0xba1   :  { %v3568_v18 = vadd.f32 %v3567_v22, %v3548_v13 }
 0xba2   :  { %3752 = vmatpush.msrb.mxu3 %v3363_v46 }
 0xba3   :  { %v3588_v31 = vadd.f32 %v3587_v9, %v3568_v18 }
 0xba4   :  { %3753 = vmatpush.msrb.mxu3 %v3362_v58 }
 0xba6   :  { %3754 = vmatpush.msrb.mxu3 %v3361_v62 }
 0xba8   :  { %3755 = vmatpush.msrb.mxu3 %v3360_v35 }
 0xbaa   :  { %3756 = vmatpush.msrb.mxu3 %v3359_v56 }
 0xbac   :  { %3757 = vmatpush.msrb.mxu3 %v3358_v51 }
 0xbae   :  { %3758 = vmatpush.msrb.mxu3 %v3357_v15 }
 0xbb0   :  { %3759 = vmatpush.msrb.mxu3 %v3356_v0 }
 0xbb2   :  { %3760 = vmatpush.msrb.mxu3 %v3355_v61 }
 0xbb4   :  { %3761 = vmatpush.msrb.mxu3 %v3354_v43 }
 0xbb6   :  { %3762 = vmatpush.msrb.mxu3 %v3353_v52 }
 0xbb8   :  { %3763 = vmatpush.msrb.mxu3 %v3352_v39 }
 0xbba   :  { %3764 = vmatpush.msrb.mxu3 %v3351_v21 }
 0xbbc   :  { %3765 = vmatpush.msrb.mxu3 %v3350_v44 }
 0xbbd   :  { %3766 = vmatmul.f32.vlgmr.msrb.gmra.mxu3 %v3045_v23 }
 0xbc0   :  { %v3607_v34 = vpop.f32.mrf.mxu3 }
 0xbc1   :  { %v3608_v19 = vadd.f32 %v3607_v34, %v3588_v31 }
 0xbc3   :  { %v3628_v41 = vadd.f32 %v3627_v47, %v3608_v19 }
 0xbe0   :  { %v3647_v57 = vpop.f32.mrf.mxu3 }
 0xbe1   :  { %v3648_v40 = vadd.f32 %v3647_v57, %v3628_v41 }
 0xbe3   :  { %v3668_v55 = vadd.f32 %v3667_v20, %v3648_v40 }
 0xc00   :  { %v3687_v7 = vpop.f32.mrf.mxu3 }
 0xc01   :  { %v3688_v8 = vadd.f32 %v3687_v7, %v3668_v55 }
 0xc03   :  { %v3708_v26 = vadd.f32 %v3707_v14, %v3688_v8 }
 0xc20   :  { %v3727_v48 = vpop.f32.mrf.mxu3 }
 0xc21   :  { %v3728_v30 = vadd.f32 %v3727_v48, %v3708_v26 }
 0xc23   :  { %v3748_v45 = vadd.f32 %v3747_v5, %v3728_v30 }
 0xc40   :  { %v3767_v24 = vpop.f32.mrf.mxu3 }
 0xc41   :  { %v3768_v37 = vadd.f32 %v3767_v24, %v3748_v45 }
 0xc43   :  { %v3770_v42 = vmax.f32 %v3768_v37, 0.0 }
 0xc45   :  { %v3775_v27 = vmul.f32 %v3930_v54, %v3770_v42 }
 0xc47   :  { %3776 = vadd.xlane.f32.xlu0 %v3775_v27 }
 0xcba   :  { %v3777_v11 = vpop.xlane.xlu0 %3776 }
 0xcbb   :  { %v3782_v46 = vadd.f32 %v3931_v53, %v3777_v11 }
 0xcbd   :  { %v3783_v58 = vmax.f32 %v3782_v46, 0.0 }
 0xcbf   :  { %v3784_v62 = vsub.f32 0.0, %v3783_v58 }
 0xcc1   :  { %v3785_v35 = vmul.f32 1.442695, %v3784_v62 }
 0xcc3   :  { %3932 = vpow2.f32 %v3785_v35 }
 0xcc9   :  { %v3933_v56 = vpop.eup %3932 }
 0xcca   :  { %v3787_v51 = vadd.f32 1.0, %v3933_v56 }
 0xccc   :  { %3934 = vrcp.f32 %v3787_v51  ;;  %v3799_v43 = vand.u32 2147483648, %v3787_v51  ;;  %v3797_v39 = vand.u32 2147483647, %v3787_v51  ;;  %vm3793_vm2 = vweird.f32 %v3787_v51 }
 0xcce   :  { %v3800_v21 = vor.u32 1.1754944e-38, %v3799_v43  ;;  %vm3798_vm4 = vcmp.eq.f32.partialorder %v3797_v39, 8.507059e+37 }
 0xcd2   :  { %v3935_v15 = vpop.eup %3934 }
 0xcd3   :  { %v3789_v0 = vmul.f32 %v3935_v15, %v3787_v51  ;;  %vm3794_vm1 = vweird.f32 %v3935_v15 }
 0xcd4   :  { %vm3795_vm3 = vmor %vm3793_vm2, %vm3794_vm1 }
 0xcd5   :  { %v3790_v61 = vsub.f32 1.0, %v3789_v0 }
 0xcd7   :  { %v3791_v52 = vmul.f32 %v3935_v15, %v3790_v61 }
 0xcd9   :  { %v3792_v38 = vadd.f32 %v3935_v15, %v3791_v52 }
 0xcdb   :  { %v3796_v44 = vsel %vm3795_vm3, %v3935_v15, %v3792_v38 }
 0xcdc   :  { %v3801_v23 = vsel %vm3798_vm4, %v3800_v21, %v3796_v44 }
 0xcdd   :  { %3805 = vperm.xlu0 %3927, %v3801_v23  }
 0xd4f   :  { %v3806_v25 = vpop.permute.xlu0 %3805 }
 0xd50   :  { %3808 = vst [vmem:[%s7747_s9] sm:$0xff] %v3806_v25 }

</bundles_post_ra>
